<compile_context>
chip_gen: v7x
topology: tpu7x:2x2x1
jax: 0.10.0
libtpu: 0.0.40
codegen_flags: <defaults>
</compile_context>

<pallas_src>
import functools

import jax
import jax.numpy as jnp
from jax.experimental import pallas as pl
from jax.experimental.pallas import tpu as pltpu


# ---------------------------------------------------------------------------
# Kernel A: fused conv stack (conv1 as im2col matmul; conv2/conv3 as 3x3 convs
# over zero-padded VMEM scratch), folded BN scale + bias + ReLU per layer.
# ---------------------------------------------------------------------------
def conv_stack_kernel(xcol_ref, w1_ref, t1_ref, w2_ref, t2_ref, w3_ref, t3_ref,
                      o_ref, a1p_ref, a2p_ref, *, B, H, W):
    BHW = B * H * W
    C1 = w1_ref.shape[1]
    C2 = w2_ref.shape[2]
    C3 = w3_ref.shape[2]

    # conv1: one (B*H*W, 9*Cin) @ (9*Cin, C1) matmul, then shift + ReLU.
    a1 = jnp.dot(xcol_ref[...], w1_ref[...], preferred_element_type=jnp.float32)
    a1 = jnp.maximum(a1 + t1_ref[...], 0.0)          # (BHW, C1)

    def conv3x3(a, pad_ref, w_ref, t_ref, cin, cout):
        # a: (BHW, cin) activation; 3x3 conv, padding=1, via 9 shifted matmuls
        # over a zero-padded copy kept in VMEM scratch.
        pad_ref[...] = jnp.zeros_like(pad_ref)
        pad_ref[:, 1:1 + H, 1:1 + W, :] = a.reshape(B, H, W, cin)
        acc = jnp.zeros((BHW, cout), jnp.float32)
        for dy in range(3):
            for dx in range(3):
                patch = pad_ref[:, dy:dy + H, dx:dx + W, :].reshape(BHW, cin)
                acc = acc + jnp.dot(patch, w_ref[dy * 3 + dx],
                                    preferred_element_type=jnp.float32)
        return jnp.maximum(acc + t_ref[...], 0.0)

    a2 = conv3x3(a1, a1p_ref, w2_ref, t2_ref, C1, C2)   # (BHW, C2)
    a3 = conv3x3(a2, a2p_ref, w3_ref, t3_ref, C2, C3)   # (BHW, C3)

    # NHWC flatten order (y, x, c); fc1's weight rows are permuted to match.
    o_ref[...] = a3.reshape(B, H * W, C3).astype(o_ref.dtype)


def conv_stack(xcol, w1, t1, w2, t2, w3, t3, *, B, H, W):
    C3 = w3.shape[2]
    kernel = functools.partial(conv_stack_kernel, B=B, H=H, W=W)
    return pl.pallas_call(
        kernel,
        out_shape=jax.ShapeDtypeStruct((B, H * W, C3), jnp.bfloat16),
        grid=(1,),
        in_specs=[
            pl.BlockSpec(xcol.shape, lambda i: (0, 0)),
            pl.BlockSpec(w1.shape, lambda i: (0, 0)),
            pl.BlockSpec(t1.shape, lambda i: (0, 0)),
            pl.BlockSpec(w2.shape, lambda i: (0, 0, 0)),
            pl.BlockSpec(t2.shape, lambda i: (0, 0)),
            pl.BlockSpec(w3.shape, lambda i: (0, 0, 0)),
            pl.BlockSpec(t3.shape, lambda i: (0, 0)),
        ],
        out_specs=pl.BlockSpec((B, H * W, C3), lambda i: (0, 0, 0)),
        scratch_shapes=[
            pltpu.VMEM((B, H + 2, W + 2, w2.shape[1]), jnp.float32),
            pltpu.VMEM((B, H + 2, W + 2, w3.shape[1]), jnp.float32),
        ],
        compiler_params=pltpu.CompilerParams(
            dimension_semantics=("arbitrary",)),
    )(xcol, w1, t1, w2, t2, w3, t3)


# ---------------------------------------------------------------------------
# Kernel B: fc1 (bf16 weights, K-tiled, f32 accumulation) + fc2 + fc3 fused.
# ---------------------------------------------------------------------------
def fc_kernel(x_ref, fw1_ref, fb1_ref, fw2_ref, fb2_ref, fw3_ref, fb3_ref,
              o_ref, acc_ref):
    k = pl.program_id(0)

    @pl.when(k == 0)
    def _init():
        acc_ref[...] = jnp.zeros_like(acc_ref)

    # fc1 partial product for this K tile (bf16 x bf16, f32 accumulation).
    acc_ref[...] += jnp.dot(x_ref[...], fw1_ref[...],
                            preferred_element_type=jnp.float32)

    @pl.when(k == pl.num_programs(0) - 1)
    def _tail():
        h1 = jnp.maximum(acc_ref[...] + fb1_ref[...], 0.0).astype(jnp.bfloat16)
        h2 = jnp.dot(h1, fw2_ref[...], preferred_element_type=jnp.float32)
        h2 = jnp.maximum(h2 + fb2_ref[...], 0.0).astype(jnp.bfloat16)
        o_ref[...] = (jnp.dot(h2, fw3_ref[...],
                              preferred_element_type=jnp.float32)
                      + fb3_ref[...])


def fc_stack(xflat, fw1, fb1, fw2, fb2, fw3, fb3, *, tk=2048):
    B, K = xflat.shape
    N1, N2, N3 = fw1.shape[1], fw2.shape[1], fw3.shape[1]
    tk = min(tk, K)
    assert K % tk == 0
    return pl.pallas_call(
        fc_kernel,
        out_shape=jax.ShapeDtypeStruct((B, N3), jnp.float32),
        grid=(K // tk,),
        in_specs=[
            pl.BlockSpec((B, tk), lambda k: (0, k)),
            pl.BlockSpec((tk, N1), lambda k: (k, 0)),
            pl.BlockSpec((1, N1), lambda k: (0, 0)),
            pl.BlockSpec((N1, N2), lambda k: (0, 0)),
            pl.BlockSpec((1, N2), lambda k: (0, 0)),
            pl.BlockSpec((N2, N3), lambda k: (0, 0)),
            pl.BlockSpec((1, N3), lambda k: (0, 0)),
        ],
        out_specs=pl.BlockSpec((B, N3), lambda k: (0, 0)),
        scratch_shapes=[pltpu.VMEM((B, N1), jnp.float32)],
        compiler_params=pltpu.CompilerParams(
            dimension_semantics=("arbitrary",),
            vmem_limit_bytes=32 * 1024 * 1024),
    )(xflat, fw1, fb1, fw2, fb2, fw3, fb3)


# ---------------------------------------------------------------------------
# Parameters (deterministic, synthetic) with init-time folding / permutation.
# ---------------------------------------------------------------------------
def make_conv_params(key, cin, cout):
    """Conv3x3 + inference-mode BatchNorm folded into weights + per-channel shift."""
    k_w, k_b, k_g, k_be, k_m, k_v = jax.random.split(key, 6)
    fan_in = 3 * 3 * cin
    w = jax.random.normal(k_w, (3, 3, cin, cout), jnp.float32) / jnp.sqrt(fan_in)
    conv_b = 0.1 * jax.random.normal(k_b, (cout,), jnp.float32)
    gamma = 1.0 + 0.1 * jax.random.normal(k_g, (cout,), jnp.float32)
    beta = 0.1 * jax.random.normal(k_be, (cout,), jnp.float32)
    mean = 0.1 * jax.random.normal(k_m, (cout,), jnp.float32)
    var = jnp.abs(jax.random.normal(k_v, (cout,), jnp.float32)) + 0.5
    eps = 1e-5
    scale = gamma / jnp.sqrt(var + eps)       # folded BN scale
    w_folded = w * scale                      # fold scale into the weights
    shift = beta + (conv_b - mean) * scale    # folded conv-bias + BN shift
    return w_folded, shift.reshape(1, cout)


def make_linear_params(key, k_in, n_out):
    k_w, k_b = jax.random.split(key, 2)
    w = jax.random.normal(k_w, (k_in, n_out), jnp.float32) / jnp.sqrt(k_in)
    b = 0.1 * jax.random.normal(k_b, (n_out,), jnp.float32)
    return w, b


def init_dqn_params(key, width, height):
    ks = jax.random.split(key, 6)
    H, W = height, width
    p = {}

    w1, p["t1"] = make_conv_params(ks[0], 4, 32)
    p["w1"] = w1.reshape(9 * 4, 32)                 # im2col weight for conv1
    w2, p["t2"] = make_conv_params(ks[1], 32, 64)
    p["w2"] = w2.reshape(9, 32, 64)                 # per-tap weights for conv2
    w3, p["t3"] = make_conv_params(ks[2], 64, 128)
    p["w3"] = w3.reshape(9, 64, 128)                # per-tap weights for conv3

    fw1, fb1 = make_linear_params(ks[3], 128 * W * H, 512)
    # fc1 expects PyTorch's (C, H, W) flatten order; pre-permute its rows to the
    # kernel's NHWC (H, W, C) flatten order so no runtime activation transpose.
    fw1 = fw1.reshape(128, H, W, 512).transpose(1, 2, 0, 3).reshape(H * W * 128, 512)
    p["fw1"] = fw1.astype(jnp.bfloat16)             # bf16 weights, f32 accumulation
    p["fb1"] = fb1.reshape(1, 512)

    fw2, fb2 = make_linear_params(ks[4], 512, 256)
    p["fw2"] = fw2.astype(jnp.bfloat16)
    p["fb2"] = fb2.reshape(1, 256)

    fw3, fb3 = make_linear_params(ks[5], 256, W * H)
    p["fw3"] = fw3.astype(jnp.bfloat16)
    p["fb3"] = fb3.reshape(1, W * H)
    return p


# ---------------------------------------------------------------------------
# Forward pass.
# ---------------------------------------------------------------------------
def im2col_3x3(x_nhwc):
    """3x3 / pad=1 im2col: (B,H,W,C) -> (B*H*W, 9*C), tap-major / channel-minor."""
    B, H, W, C = x_nhwc.shape
    xp = jnp.pad(x_nhwc, ((0, 0), (1, 1), (1, 1), (0, 0)))
    cols = [xp[:, dy:dy + H, dx:dx + W, :]
            for dy in range(3) for dx in range(3)]
    return jnp.concatenate(cols, axis=-1).reshape(B * H * W, 9 * C)


@jax.jit
def dqn_forward(x_nchw, params):
    x = jnp.transpose(x_nchw, (0, 2, 3, 1)).astype(jnp.float32)   # NCHW -> NHWC (tiny)
    B, H, W, _ = x.shape
    xcol = im2col_3x3(x)                                          # (B*H*W, 36)
    a = conv_stack(xcol, params["w1"], params["t1"],
                   params["w2"], params["t2"],
                   params["w3"], params["t3"], B=B, H=H, W=W)     # (B, H*W, 128) bf16
    xflat = a.reshape(B, -1)                                      # NHWC flatten order
    return fc_stack(xflat, params["fw1"], params["fb1"],
                    params["fw2"], params["fb2"],
                    params["fw3"], params["fb3"])


if __name__ == "__main__":
    width = height = 8
    batch = 2
    key = jax.random.PRNGKey(0)
    k_param, k_x = jax.random.split(key)

    params = init_dqn_params(k_param, width, height)
    x = jax.random.normal(k_x, (batch, 4, height, width), jnp.float32)  # NCHW

    out = dqn_forward(x, params)
    out = jax.block_until_ready(out)

    assert out.shape == (batch, width * height), out.shape
    assert bool(jnp.all(jnp.isfinite(out)))
    print("KERNEL_OK")
</pallas_src>

<mosaic_0001>
module attributes {stable_mosaic.version = 11 : i64} {
  func.func @conv_stack_kernel(%arg0: i32, %arg1: memref<128x36xf32, #tpu.memory_space<vmem>>, %arg2: memref<36x32xf32, #tpu.memory_space<vmem>>, %arg3: memref<1x32xf32, #tpu.memory_space<vmem>>, %arg4: memref<9x32x64xf32, #tpu.memory_space<vmem>>, %arg5: memref<1x64xf32, #tpu.memory_space<vmem>>, %arg6: memref<9x64x128xf32, #tpu.memory_space<vmem>>, %arg7: memref<1x128xf32, #tpu.memory_space<vmem>>, %arg8: memref<2x64x128xbf16, #tpu.memory_space<vmem>>, %arg9: memref<2x10x10x32xf32, #tpu.memory_space<vmem>>, %arg10: memref<2x10x10x64xf32, #tpu.memory_space<vmem>>) attributes {dimension_semantics = [#tpu.dimension_semantics<arbitrary>], iteration_bounds = array<i64: 1>, scalar_prefetch = 0 : i64, scratch_operands = 2 : i64, tpu.core_type = #tpu.core_type<tc>, window_params = [{pipeline_mode = #tpu.pipeline_mode<synchronous>, transform_indices = @transform_0, window_bounds = array<i64: 128, 36>}, {pipeline_mode = #tpu.pipeline_mode<synchronous>, transform_indices = @transform_1, window_bounds = array<i64: 36, 32>}, {pipeline_mode = #tpu.pipeline_mode<synchronous>, transform_indices = @transform_2, window_bounds = array<i64: 1, 32>}, {pipeline_mode = #tpu.pipeline_mode<synchronous>, transform_indices = @transform_3, window_bounds = array<i64: 9, 32, 64>}, {pipeline_mode = #tpu.pipeline_mode<synchronous>, transform_indices = @transform_4, window_bounds = array<i64: 1, 64>}, {pipeline_mode = #tpu.pipeline_mode<synchronous>, transform_indices = @transform_5, window_bounds = array<i64: 9, 64, 128>}, {pipeline_mode = #tpu.pipeline_mode<synchronous>, transform_indices = @transform_6, window_bounds = array<i64: 1, 128>}, {pipeline_mode = #tpu.pipeline_mode<synchronous>, transform_indices = @transform_7, window_bounds = array<i64: 2, 64, 128>}]} {
    %c0 = arith.constant 0 : index
    %c0_0 = arith.constant 0 : index
    %0 = vector.load %arg1[%c0, %c0_0] : memref<128x36xf32, #tpu.memory_space<vmem>>, vector<128x36xf32>
    %c0_1 = arith.constant 0 : index
    %c0_2 = arith.constant 0 : index
    %1 = vector.load %arg2[%c0_1, %c0_2] : memref<36x32xf32, #tpu.memory_space<vmem>>, vector<36x32xf32>
    %cst = arith.constant dense<0.000000e+00> : vector<128x32xf32>
    %2 = tpu.matmul %0, %1, %cst {dimension_numbers = #tpu.dot_dimension_numbers<[1], [0], [0], [1], [0, 0, 1, 1], [], []>} : vector<128x36xf32>, vector<36x32xf32>, vector<128x32xf32> -> vector<128x32xf32>
    %c0_3 = arith.constant 0 : index
    %c0_4 = arith.constant 0 : index
    %3 = vector.load %arg3[%c0_3, %c0_4] : memref<1x32xf32, #tpu.memory_space<vmem>>, vector<1x32xf32>
    %4 = vector.broadcast %3 : vector<1x32xf32> to vector<128x32xf32>
    %5 = arith.addf %2, %4 : vector<128x32xf32>
    %cst_5 = arith.constant 0.000000e+00 : f32
    %6 = vector.broadcast %cst_5 : f32 to vector<128x32xf32>
    %7 = arith.maximumf %5, %6 : vector<128x32xf32>
    %cst_6 = arith.constant 0.000000e+00 : f32
    %8 = vector.broadcast %cst_6 : f32 to vector<2x10x10x32xf32>
    %c0_7 = arith.constant 0 : index
    %c0_8 = arith.constant 0 : index
    %c0_9 = arith.constant 0 : index
    %c0_10 = arith.constant 0 : index
    %9 = vector.load %arg9[%c0_7, %c0_8, %c0_9, %c0_10] : memref<2x10x10x32xf32, #tpu.memory_space<vmem>>, vector<2x10x10x32xf32>
    tpu.vector_store %arg9[%c0_7, %c0_8, %c0_9, %c0_10], %8 {strides = array<i32>} : memref<2x10x10x32xf32, #tpu.memory_space<vmem>>, vector<2x10x10x32xf32>,
    %10 = vector.shape_cast %7 : vector<128x32xf32> to vector<2x8x8x32xf32>
    %c0_11 = arith.constant 0 : index
    %c1 = arith.constant 1 : index
    %c1_12 = arith.constant 1 : index
    %c0_13 = arith.constant 0 : index
    %11 = vector.load %arg9[%c0_11, %c1, %c1_12, %c0_13] : memref<2x10x10x32xf32, #tpu.memory_space<vmem>>, vector<2x8x8x32xf32>
    tpu.vector_store %arg9[%c0_11, %c1, %c1_12, %c0_13], %10 {strides = array<i32>} : memref<2x10x10x32xf32, #tpu.memory_space<vmem>>, vector<2x8x8x32xf32>,
    %cst_14 = arith.constant 0.000000e+00 : f32
    %12 = vector.broadcast %cst_14 : f32 to vector<128x64xf32>
    %c0_15 = arith.constant 0 : index
    %c0_16 = arith.constant 0 : index
    %c0_17 = arith.constant 0 : index
    %c0_18 = arith.constant 0 : index
    %13 = vector.load %arg9[%c0_15, %c0_16, %c0_17, %c0_18] : memref<2x10x10x32xf32, #tpu.memory_space<vmem>>, vector<2x8x8x32xf32>
    %14 = vector.shape_cast %13 : vector<2x8x8x32xf32> to vector<128x32xf32>
    %c0_19 = arith.constant 0 : index
    %c0_20 = arith.constant 0 : index
    %c0_21 = arith.constant 0 : index
    %15 = vector.load %arg4[%c0_19, %c0_20, %c0_21] : memref<9x32x64xf32, #tpu.memory_space<vmem>>, vector<1x32x64xf32>
    %16 = vector.shape_cast %15 : vector<1x32x64xf32> to vector<32x64xf32>
    %cst_22 = arith.constant dense<0.000000e+00> : vector<128x64xf32>
    %17 = tpu.matmul %14, %16, %cst_22 {dimension_numbers = #tpu.dot_dimension_numbers<[1], [0], [0], [1], [0, 0, 1, 1], [], []>} : vector<128x32xf32>, vector<32x64xf32>, vector<128x64xf32> -> vector<128x64xf32>
    %18 = arith.addf %12, %17 : vector<128x64xf32>
    %c0_23 = arith.constant 0 : index
    %c0_24 = arith.constant 0 : index
    %c1_25 = arith.constant 1 : index
    %c0_26 = arith.constant 0 : index
    %19 = vector.load %arg9[%c0_23, %c0_24, %c1_25, %c0_26] : memref<2x10x10x32xf32, #tpu.memory_space<vmem>>, vector<2x8x8x32xf32>
    %20 = vector.shape_cast %19 : vector<2x8x8x32xf32> to vector<128x32xf32>
    %c1_27 = arith.constant 1 : index
    %c0_28 = arith.constant 0 : index
    %c0_29 = arith.constant 0 : index
    %21 = vector.load %arg4[%c1_27, %c0_28, %c0_29] : memref<9x32x64xf32, #tpu.memory_space<vmem>>, vector<1x32x64xf32>
    %22 = vector.shape_cast %21 : vector<1x32x64xf32> to vector<32x64xf32>
    %cst_30 = arith.constant dense<0.000000e+00> : vector<128x64xf32>
    %23 = tpu.matmul %20, %22, %cst_30 {dimension_numbers = #tpu.dot_dimension_numbers<[1], [0], [0], [1], [0, 0, 1, 1], [], []>} : vector<128x32xf32>, vector<32x64xf32>, vector<128x64xf32> -> vector<128x64xf32>
    %24 = arith.addf %18, %23 : vector<128x64xf32>
    %c0_31 = arith.constant 0 : index
    %c0_32 = arith.constant 0 : index
    %c2 = arith.constant 2 : index
    %c0_33 = arith.constant 0 : index
    %25 = vector.load %arg9[%c0_31, %c0_32, %c2, %c0_33] : memref<2x10x10x32xf32, #tpu.memory_space<vmem>>, vector<2x8x8x32xf32>
    %26 = vector.shape_cast %25 : vector<2x8x8x32xf32> to vector<128x32xf32>
    %c2_34 = arith.constant 2 : index
    %c0_35 = arith.constant 0 : index
    %c0_36 = arith.constant 0 : index
    %27 = vector.load %arg4[%c2_34, %c0_35, %c0_36] : memref<9x32x64xf32, #tpu.memory_space<vmem>>, vector<1x32x64xf32>
    %28 = vector.shape_cast %27 : vector<1x32x64xf32> to vector<32x64xf32>
    %cst_37 = arith.constant dense<0.000000e+00> : vector<128x64xf32>
    %29 = tpu.matmul %26, %28, %cst_37 {dimension_numbers = #tpu.dot_dimension_numbers<[1], [0], [0], [1], [0, 0, 1, 1], [], []>} : vector<128x32xf32>, vector<32x64xf32>, vector<128x64xf32> -> vector<128x64xf32>
    %30 = arith.addf %24, %29 : vector<128x64xf32>
    %c0_38 = arith.constant 0 : index
    %c1_39 = arith.constant 1 : index
    %c0_40 = arith.constant 0 : index
    %c0_41 = arith.constant 0 : index
    %31 = vector.load %arg9[%c0_38, %c1_39, %c0_40, %c0_41] : memref<2x10x10x32xf32, #tpu.memory_space<vmem>>, vector<2x8x8x32xf32>
    %32 = vector.shape_cast %31 : vector<2x8x8x32xf32> to vector<128x32xf32>
    %c3 = arith.constant 3 : index
    %c0_42 = arith.constant 0 : index
    %c0_43 = arith.constant 0 : index
    %33 = vector.load %arg4[%c3, %c0_42, %c0_43] : memref<9x32x64xf32, #tpu.memory_space<vmem>>, vector<1x32x64xf32>
    %34 = vector.shape_cast %33 : vector<1x32x64xf32> to vector<32x64xf32>
    %cst_44 = arith.constant dense<0.000000e+00> : vector<128x64xf32>
    %35 = tpu.matmul %32, %34, %cst_44 {dimension_numbers = #tpu.dot_dimension_numbers<[1], [0], [0], [1], [0, 0, 1, 1], [], []>} : vector<128x32xf32>, vector<32x64xf32>, vector<128x64xf32> -> vector<128x64xf32>
    %36 = arith.addf %30, %35 : vector<128x64xf32>
    %c0_45 = arith.constant 0 : index
    %c1_46 = arith.constant 1 : index
    %c1_47 = arith.constant 1 : index
    %c0_48 = arith.constant 0 : index
    %37 = vector.load %arg9[%c0_45, %c1_46, %c1_47, %c0_48] : memref<2x10x10x32xf32, #tpu.memory_space<vmem>>, vector<2x8x8x32xf32>
    %38 = vector.shape_cast %37 : vector<2x8x8x32xf32> to vector<128x32xf32>
    %c4 = arith.constant 4 : index
    %c0_49 = arith.constant 0 : index
    %c0_50 = arith.constant 0 : index
    %39 = vector.load %arg4[%c4, %c0_49, %c0_50] : memref<9x32x64xf32, #tpu.memory_space<vmem>>, vector<1x32x64xf32>
    %40 = vector.shape_cast %39 : vector<1x32x64xf32> to vector<32x64xf32>
    %cst_51 = arith.constant dense<0.000000e+00> : vector<128x64xf32>
    %41 = tpu.matmul %38, %40, %cst_51 {dimension_numbers = #tpu.dot_dimension_numbers<[1], [0], [0], [1], [0, 0, 1, 1], [], []>} : vector<128x32xf32>, vector<32x64xf32>, vector<128x64xf32> -> vector<128x64xf32>
    %42 = arith.addf %36, %41 : vector<128x64xf32>
    %c0_52 = arith.constant 0 : index
    %c1_53 = arith.constant 1 : index
    %c2_54 = arith.constant 2 : index
    %c0_55 = arith.constant 0 : index
    %43 = vector.load %arg9[%c0_52, %c1_53, %c2_54, %c0_55] : memref<2x10x10x32xf32, #tpu.memory_space<vmem>>, vector<2x8x8x32xf32>
    %44 = vector.shape_cast %43 : vector<2x8x8x32xf32> to vector<128x32xf32>
    %c5 = arith.constant 5 : index
    %c0_56 = arith.constant 0 : index
    %c0_57 = arith.constant 0 : index
    %45 = vector.load %arg4[%c5, %c0_56, %c0_57] : memref<9x32x64xf32, #tpu.memory_space<vmem>>, vector<1x32x64xf32>
    %46 = vector.shape_cast %45 : vector<1x32x64xf32> to vector<32x64xf32>
    %cst_58 = arith.constant dense<0.000000e+00> : vector<128x64xf32>
    %47 = tpu.matmul %44, %46, %cst_58 {dimension_numbers = #tpu.dot_dimension_numbers<[1], [0], [0], [1], [0, 0, 1, 1], [], []>} : vector<128x32xf32>, vector<32x64xf32>, vector<128x64xf32> -> vector<128x64xf32>
    %48 = arith.addf %42, %47 : vector<128x64xf32>
    %c0_59 = arith.constant 0 : index
    %c2_60 = arith.constant 2 : index
    %c0_61 = arith.constant 0 : index
    %c0_62 = arith.constant 0 : index
    %49 = vector.load %arg9[%c0_59, %c2_60, %c0_61, %c0_62] : memref<2x10x10x32xf32, #tpu.memory_space<vmem>>, vector<2x8x8x32xf32>
    %50 = vector.shape_cast %49 : vector<2x8x8x32xf32> to vector<128x32xf32>
    %c6 = arith.constant 6 : index
    %c0_63 = arith.constant 0 : index
    %c0_64 = arith.constant 0 : index
    %51 = vector.load %arg4[%c6, %c0_63, %c0_64] : memref<9x32x64xf32, #tpu.memory_space<vmem>>, vector<1x32x64xf32>
    %52 = vector.shape_cast %51 : vector<1x32x64xf32> to vector<32x64xf32>
    %cst_65 = arith.constant dense<0.000000e+00> : vector<128x64xf32>
    %53 = tpu.matmul %50, %52, %cst_65 {dimension_numbers = #tpu.dot_dimension_numbers<[1], [0], [0], [1], [0, 0, 1, 1], [], []>} : vector<128x32xf32>, vector<32x64xf32>, vector<128x64xf32> -> vector<128x64xf32>
    %54 = arith.addf %48, %53 : vector<128x64xf32>
    %c0_66 = arith.constant 0 : index
    %c2_67 = arith.constant 2 : index
    %c1_68 = arith.constant 1 : index
    %c0_69 = arith.constant 0 : index
    %55 = vector.load %arg9[%c0_66, %c2_67, %c1_68, %c0_69] : memref<2x10x10x32xf32, #tpu.memory_space<vmem>>, vector<2x8x8x32xf32>
    %56 = vector.shape_cast %55 : vector<2x8x8x32xf32> to vector<128x32xf32>
    %c7 = arith.constant 7 : index
    %c0_70 = arith.constant 0 : index
    %c0_71 = arith.constant 0 : index
    %57 = vector.load %arg4[%c7, %c0_70, %c0_71] : memref<9x32x64xf32, #tpu.memory_space<vmem>>, vector<1x32x64xf32>
    %58 = vector.shape_cast %57 : vector<1x32x64xf32> to vector<32x64xf32>
    %cst_72 = arith.constant dense<0.000000e+00> : vector<128x64xf32>
    %59 = tpu.matmul %56, %58, %cst_72 {dimension_numbers = #tpu.dot_dimension_numbers<[1], [0], [0], [1], [0, 0, 1, 1], [], []>} : vector<128x32xf32>, vector<32x64xf32>, vector<128x64xf32> -> vector<128x64xf32>
    %60 = arith.addf %54, %59 : vector<128x64xf32>
    %c0_73 = arith.constant 0 : index
    %c2_74 = arith.constant 2 : index
    %c2_75 = arith.constant 2 : index
    %c0_76 = arith.constant 0 : index
    %61 = vector.load %arg9[%c0_73, %c2_74, %c2_75, %c0_76] : memref<2x10x10x32xf32, #tpu.memory_space<vmem>>, vector<2x8x8x32xf32>
    %62 = vector.shape_cast %61 : vector<2x8x8x32xf32> to vector<128x32xf32>
    %c8 = arith.constant 8 : index
    %c0_77 = arith.constant 0 : index
    %c0_78 = arith.constant 0 : index
    %63 = vector.load %arg4[%c8, %c0_77, %c0_78] : memref<9x32x64xf32, #tpu.memory_space<vmem>>, vector<1x32x64xf32>
    %64 = vector.shape_cast %63 : vector<1x32x64xf32> to vector<32x64xf32>
    %cst_79 = arith.constant dense<0.000000e+00> : vector<128x64xf32>
    %65 = tpu.matmul %62, %64, %cst_79 {dimension_numbers = #tpu.dot_dimension_numbers<[1], [0], [0], [1], [0, 0, 1, 1], [], []>} : vector<128x32xf32>, vector<32x64xf32>, vector<128x64xf32> -> vector<128x64xf32>
    %66 = arith.addf %60, %65 : vector<128x64xf32>
    %c0_80 = arith.constant 0 : index
    %c0_81 = arith.constant 0 : index
    %67 = vector.load %arg5[%c0_80, %c0_81] : memref<1x64xf32, #tpu.memory_space<vmem>>, vector<1x64xf32>
    %68 = vector.broadcast %67 : vector<1x64xf32> to vector<128x64xf32>
    %69 = arith.addf %66, %68 : vector<128x64xf32>
    %cst_82 = arith.constant 0.000000e+00 : f32
    %70 = vector.broadcast %cst_82 : f32 to vector<128x64xf32>
    %71 = arith.maximumf %69, %70 : vector<128x64xf32>
    %cst_83 = arith.constant 0.000000e+00 : f32
    %72 = vector.broadcast %cst_83 : f32 to vector<2x10x10x64xf32>
    %c0_84 = arith.constant 0 : index
    %c0_85 = arith.constant 0 : index
    %c0_86 = arith.constant 0 : index
    %c0_87 = arith.constant 0 : index
    %73 = vector.load %arg10[%c0_84, %c0_85, %c0_86, %c0_87] : memref<2x10x10x64xf32, #tpu.memory_space<vmem>>, vector<2x10x10x64xf32>
    tpu.vector_store %arg10[%c0_84, %c0_85, %c0_86, %c0_87], %72 {strides = array<i32>} : memref<2x10x10x64xf32, #tpu.memory_space<vmem>>, vector<2x10x10x64xf32>,
    %74 = vector.shape_cast %71 : vector<128x64xf32> to vector<2x8x8x64xf32>
    %c0_88 = arith.constant 0 : index
    %c1_89 = arith.constant 1 : index
    %c1_90 = arith.constant 1 : index
    %c0_91 = arith.constant 0 : index
    %75 = vector.load %arg10[%c0_88, %c1_89, %c1_90, %c0_91] : memref<2x10x10x64xf32, #tpu.memory_space<vmem>>, vector<2x8x8x64xf32>
    tpu.vector_store %arg10[%c0_88, %c1_89, %c1_90, %c0_91], %74 {strides = array<i32>} : memref<2x10x10x64xf32, #tpu.memory_space<vmem>>, vector<2x8x8x64xf32>,
    %cst_92 = arith.constant 0.000000e+00 : f32
    %76 = vector.broadcast %cst_92 : f32 to vector<128x128xf32>
    %c0_93 = arith.constant 0 : index
    %c0_94 = arith.constant 0 : index
    %c0_95 = arith.constant 0 : index
    %c0_96 = arith.constant 0 : index
    %77 = vector.load %arg10[%c0_93, %c0_94, %c0_95, %c0_96] : memref<2x10x10x64xf32, #tpu.memory_space<vmem>>, vector<2x8x8x64xf32>
    %78 = vector.shape_cast %77 : vector<2x8x8x64xf32> to vector<128x64xf32>
    %c0_97 = arith.constant 0 : index
    %c0_98 = arith.constant 0 : index
    %c0_99 = arith.constant 0 : index
    %79 = vector.load %arg6[%c0_97, %c0_98, %c0_99] : memref<9x64x128xf32, #tpu.memory_space<vmem>>, vector<1x64x128xf32>
    %80 = vector.shape_cast %79 : vector<1x64x128xf32> to vector<64x128xf32>
    %cst_100 = arith.constant dense<0.000000e+00> : vector<128x128xf32>
    %81 = tpu.matmul %78, %80, %cst_100 {dimension_numbers = #tpu.dot_dimension_numbers<[1], [0], [0], [1], [0, 0, 1, 1], [], []>} : vector<128x64xf32>, vector<64x128xf32>, vector<128x128xf32> -> vector<128x128xf32>
    %82 = arith.addf %76, %81 : vector<128x128xf32>
    %c0_101 = arith.constant 0 : index
    %c0_102 = arith.constant 0 : index
    %c1_103 = arith.constant 1 : index
    %c0_104 = arith.constant 0 : index
    %83 = vector.load %arg10[%c0_101, %c0_102, %c1_103, %c0_104] : memref<2x10x10x64xf32, #tpu.memory_space<vmem>>, vector<2x8x8x64xf32>
    %84 = vector.shape_cast %83 : vector<2x8x8x64xf32> to vector<128x64xf32>
    %c1_105 = arith.constant 1 : index
    %c0_106 = arith.constant 0 : index
    %c0_107 = arith.constant 0 : index
    %85 = vector.load %arg6[%c1_105, %c0_106, %c0_107] : memref<9x64x128xf32, #tpu.memory_space<vmem>>, vector<1x64x128xf32>
    %86 = vector.shape_cast %85 : vector<1x64x128xf32> to vector<64x128xf32>
    %cst_108 = arith.constant dense<0.000000e+00> : vector<128x128xf32>
    %87 = tpu.matmul %84, %86, %cst_108 {dimension_numbers = #tpu.dot_dimension_numbers<[1], [0], [0], [1], [0, 0, 1, 1], [], []>} : vector<128x64xf32>, vector<64x128xf32>, vector<128x128xf32> -> vector<128x128xf32>
    %88 = arith.addf %82, %87 : vector<128x128xf32>
    %c0_109 = arith.constant 0 : index
    %c0_110 = arith.constant 0 : index
    %c2_111 = arith.constant 2 : index
    %c0_112 = arith.constant 0 : index
    %89 = vector.load %arg10[%c0_109, %c0_110, %c2_111, %c0_112] : memref<2x10x10x64xf32, #tpu.memory_space<vmem>>, vector<2x8x8x64xf32>
    %90 = vector.shape_cast %89 : vector<2x8x8x64xf32> to vector<128x64xf32>
    %c2_113 = arith.constant 2 : index
    %c0_114 = arith.constant 0 : index
    %c0_115 = arith.constant 0 : index
    %91 = vector.load %arg6[%c2_113, %c0_114, %c0_115] : memref<9x64x128xf32, #tpu.memory_space<vmem>>, vector<1x64x128xf32>
    %92 = vector.shape_cast %91 : vector<1x64x128xf32> to vector<64x128xf32>
    %cst_116 = arith.constant dense<0.000000e+00> : vector<128x128xf32>
    %93 = tpu.matmul %90, %92, %cst_116 {dimension_numbers = #tpu.dot_dimension_numbers<[1], [0], [0], [1], [0, 0, 1, 1], [], []>} : vector<128x64xf32>, vector<64x128xf32>, vector<128x128xf32> -> vector<128x128xf32>
    %94 = arith.addf %88, %93 : vector<128x128xf32>
    %c0_117 = arith.constant 0 : index
    %c1_118 = arith.constant 1 : index
    %c0_119 = arith.constant 0 : index
    %c0_120 = arith.constant 0 : index
    %95 = vector.load %arg10[%c0_117, %c1_118, %c0_119, %c0_120] : memref<2x10x10x64xf32, #tpu.memory_space<vmem>>, vector<2x8x8x64xf32>
    %96 = vector.shape_cast %95 : vector<2x8x8x64xf32> to vector<128x64xf32>
    %c3_121 = arith.constant 3 : index
    %c0_122 = arith.constant 0 : index
    %c0_123 = arith.constant 0 : index
    %97 = vector.load %arg6[%c3_121, %c0_122, %c0_123] : memref<9x64x128xf32, #tpu.memory_space<vmem>>, vector<1x64x128xf32>
    %98 = vector.shape_cast %97 : vector<1x64x128xf32> to vector<64x128xf32>
    %cst_124 = arith.constant dense<0.000000e+00> : vector<128x128xf32>
    %99 = tpu.matmul %96, %98, %cst_124 {dimension_numbers = #tpu.dot_dimension_numbers<[1], [0], [0], [1], [0, 0, 1, 1], [], []>} : vector<128x64xf32>, vector<64x128xf32>, vector<128x128xf32> -> vector<128x128xf32>
    %100 = arith.addf %94, %99 : vector<128x128xf32>
    %c0_125 = arith.constant 0 : index
    %c1_126 = arith.constant 1 : index
    %c1_127 = arith.constant 1 : index
    %c0_128 = arith.constant 0 : index
    %101 = vector.load %arg10[%c0_125, %c1_126, %c1_127, %c0_128] : memref<2x10x10x64xf32, #tpu.memory_space<vmem>>, vector<2x8x8x64xf32>
    %102 = vector.shape_cast %101 : vector<2x8x8x64xf32> to vector<128x64xf32>
    %c4_129 = arith.constant 4 : index
    %c0_130 = arith.constant 0 : index
    %c0_131 = arith.constant 0 : index
    %103 = vector.load %arg6[%c4_129, %c0_130, %c0_131] : memref<9x64x128xf32, #tpu.memory_space<vmem>>, vector<1x64x128xf32>
    %104 = vector.shape_cast %103 : vector<1x64x128xf32> to vector<64x128xf32>
    %cst_132 = arith.constant dense<0.000000e+00> : vector<128x128xf32>
    %105 = tpu.matmul %102, %104, %cst_132 {dimension_numbers = #tpu.dot_dimension_numbers<[1], [0], [0], [1], [0, 0, 1, 1], [], []>} : vector<128x64xf32>, vector<64x128xf32>, vector<128x128xf32> -> vector<128x128xf32>
    %106 = arith.addf %100, %105 : vector<128x128xf32>
    %c0_133 = arith.constant 0 : index
    %c1_134 = arith.constant 1 : index
    %c2_135 = arith.constant 2 : index
    %c0_136 = arith.constant 0 : index
    %107 = vector.load %arg10[%c0_133, %c1_134, %c2_135, %c0_136] : memref<2x10x10x64xf32, #tpu.memory_space<vmem>>, vector<2x8x8x64xf32>
    %108 = vector.shape_cast %107 : vector<2x8x8x64xf32> to vector<128x64xf32>
    %c5_137 = arith.constant 5 : index
    %c0_138 = arith.constant 0 : index
    %c0_139 = arith.constant 0 : index
    %109 = vector.load %arg6[%c5_137, %c0_138, %c0_139] : memref<9x64x128xf32, #tpu.memory_space<vmem>>, vector<1x64x128xf32>
    %110 = vector.shape_cast %109 : vector<1x64x128xf32> to vector<64x128xf32>
    %cst_140 = arith.constant dense<0.000000e+00> : vector<128x128xf32>
    %111 = tpu.matmul %108, %110, %cst_140 {dimension_numbers = #tpu.dot_dimension_numbers<[1], [0], [0], [1], [0, 0, 1, 1], [], []>} : vector<128x64xf32>, vector<64x128xf32>, vector<128x128xf32> -> vector<128x128xf32>
    %112 = arith.addf %106, %111 : vector<128x128xf32>
    %c0_141 = arith.constant 0 : index
    %c2_142 = arith.constant 2 : index
    %c0_143 = arith.constant 0 : index
    %c0_144 = arith.constant 0 : index
    %113 = vector.load %arg10[%c0_141, %c2_142, %c0_143, %c0_144] : memref<2x10x10x64xf32, #tpu.memory_space<vmem>>, vector<2x8x8x64xf32>
    %114 = vector.shape_cast %113 : vector<2x8x8x64xf32> to vector<128x64xf32>
    %c6_145 = arith.constant 6 : index
    %c0_146 = arith.constant 0 : index
    %c0_147 = arith.constant 0 : index
    %115 = vector.load %arg6[%c6_145, %c0_146, %c0_147] : memref<9x64x128xf32, #tpu.memory_space<vmem>>, vector<1x64x128xf32>
    %116 = vector.shape_cast %115 : vector<1x64x128xf32> to vector<64x128xf32>
    %cst_148 = arith.constant dense<0.000000e+00> : vector<128x128xf32>
    %117 = tpu.matmul %114, %116, %cst_148 {dimension_numbers = #tpu.dot_dimension_numbers<[1], [0], [0], [1], [0, 0, 1, 1], [], []>} : vector<128x64xf32>, vector<64x128xf32>, vector<128x128xf32> -> vector<128x128xf32>
    %118 = arith.addf %112, %117 : vector<128x128xf32>
    %c0_149 = arith.constant 0 : index
    %c2_150 = arith.constant 2 : index
    %c1_151 = arith.constant 1 : index
    %c0_152 = arith.constant 0 : index
    %119 = vector.load %arg10[%c0_149, %c2_150, %c1_151, %c0_152] : memref<2x10x10x64xf32, #tpu.memory_space<vmem>>, vector<2x8x8x64xf32>
    %120 = vector.shape_cast %119 : vector<2x8x8x64xf32> to vector<128x64xf32>
    %c7_153 = arith.constant 7 : index
    %c0_154 = arith.constant 0 : index
    %c0_155 = arith.constant 0 : index
    %121 = vector.load %arg6[%c7_153, %c0_154, %c0_155] : memref<9x64x128xf32, #tpu.memory_space<vmem>>, vector<1x64x128xf32>
    %122 = vector.shape_cast %121 : vector<1x64x128xf32> to vector<64x128xf32>
    %cst_156 = arith.constant dense<0.000000e+00> : vector<128x128xf32>
    %123 = tpu.matmul %120, %122, %cst_156 {dimension_numbers = #tpu.dot_dimension_numbers<[1], [0], [0], [1], [0, 0, 1, 1], [], []>} : vector<128x64xf32>, vector<64x128xf32>, vector<128x128xf32> -> vector<128x128xf32>
    %124 = arith.addf %118, %123 : vector<128x128xf32>
    %c0_157 = arith.constant 0 : index
    %c2_158 = arith.constant 2 : index
    %c2_159 = arith.constant 2 : index
    %c0_160 = arith.constant 0 : index
    %125 = vector.load %arg10[%c0_157, %c2_158, %c2_159, %c0_160] : memref<2x10x10x64xf32, #tpu.memory_space<vmem>>, vector<2x8x8x64xf32>
    %126 = vector.shape_cast %125 : vector<2x8x8x64xf32> to vector<128x64xf32>
    %c8_161 = arith.constant 8 : index
    %c0_162 = arith.constant 0 : index
    %c0_163 = arith.constant 0 : index
    %127 = vector.load %arg6[%c8_161, %c0_162, %c0_163] : memref<9x64x128xf32, #tpu.memory_space<vmem>>, vector<1x64x128xf32>
    %128 = vector.shape_cast %127 : vector<1x64x128xf32> to vector<64x128xf32>
    %cst_164 = arith.constant dense<0.000000e+00> : vector<128x128xf32>
    %129 = tpu.matmul %126, %128, %cst_164 {dimension_numbers = #tpu.dot_dimension_numbers<[1], [0], [0], [1], [0, 0, 1, 1], [], []>} : vector<128x64xf32>, vector<64x128xf32>, vector<128x128xf32> -> vector<128x128xf32>
    %130 = arith.addf %124, %129 : vector<128x128xf32>
    %c0_165 = arith.constant 0 : index
    %c0_166 = arith.constant 0 : index
    %131 = vector.load %arg7[%c0_165, %c0_166] : memref<1x128xf32, #tpu.memory_space<vmem>>, vector<1x128xf32>
    %132 = vector.broadcast %131 : vector<1x128xf32> to vector<128x128xf32>
    %133 = arith.addf %130, %132 : vector<128x128xf32>
    %cst_167 = arith.constant 0.000000e+00 : f32
    %134 = vector.broadcast %cst_167 : f32 to vector<128x128xf32>
    %135 = arith.maximumf %133, %134 : vector<128x128xf32>
    %136 = vector.shape_cast %135 : vector<128x128xf32> to vector<2x64x128xf32>
    %137 = arith.truncf %136 : vector<2x64x128xf32> to vector<2x64x128xbf16>
    %c0_168 = arith.constant 0 : index
    %c0_169 = arith.constant 0 : index
    %c0_170 = arith.constant 0 : index
    %138 = vector.load %arg8[%c0_168, %c0_169, %c0_170] : memref<2x64x128xbf16, #tpu.memory_space<vmem>>, vector<2x64x128xbf16>
    tpu.vector_store %arg8[%c0_168, %c0_169, %c0_170], %137 {strides = array<i32>} : memref<2x64x128xbf16, #tpu.memory_space<vmem>>, vector<2x64x128xbf16>,
    return
  }
  func.func @transform_0(%arg0: i32) -> (i32, i32) {
    %c0_i32 = arith.constant 0 : i32
    %c0_i32_0 = arith.constant 0 : i32
    %c0_i32_1 = arith.constant 0 : i32
    return %c0_i32, %c0_i32_0 : i32, i32
  }
  func.func @transform_1(%arg0: i32) -> (i32, i32) {
    %c0_i32 = arith.constant 0 : i32
    %c0_i32_0 = arith.constant 0 : i32
    %c0_i32_1 = arith.constant 0 : i32
    return %c0_i32, %c0_i32_0 : i32, i32
  }
  func.func @transform_2(%arg0: i32) -> (i32, i32) {
    %c0_i32 = arith.constant 0 : i32
    %c0_i32_0 = arith.constant 0 : i32
    %c0_i32_1 = arith.constant 0 : i32
    return %c0_i32, %c0_i32_0 : i32, i32
  }
  func.func @transform_3(%arg0: i32) -> (i32, i32, i32) {
    %c0_i32 = arith.constant 0 : i32
    %c0_i32_0 = arith.constant 0 : i32
    %c0_i32_1 = arith.constant 0 : i32
    %c0_i32_2 = arith.constant 0 : i32
    return %c0_i32, %c0_i32_0, %c0_i32_1 : i32, i32, i32
  }
  func.func @transform_4(%arg0: i32) -> (i32, i32) {
    %c0_i32 = arith.constant 0 : i32
    %c0_i32_0 = arith.constant 0 : i32
    %c0_i32_1 = arith.constant 0 : i32
    return %c0_i32, %c0_i32_0 : i32, i32
  }
  func.func @transform_5(%arg0: i32) -> (i32, i32, i32) {
    %c0_i32 = arith.constant 0 : i32
    %c0_i32_0 = arith.constant 0 : i32
    %c0_i32_1 = arith.constant 0 : i32
    %c0_i32_2 = arith.constant 0 : i32
    return %c0_i32, %c0_i32_0, %c0_i32_1 : i32, i32, i32
  }
  func.func @transform_6(%arg0: i32) -> (i32, i32) {
    %c0_i32 = arith.constant 0 : i32
    %c0_i32_0 = arith.constant 0 : i32
    %c0_i32_1 = arith.constant 0 : i32
    return %c0_i32, %c0_i32_0 : i32, i32
  }
  func.func @transform_7(%arg0: i32) -> (i32, i32, i32) {
    %c0_i32 = arith.constant 0 : i32
    %c0_i32_0 = arith.constant 0 : i32
    %c0_i32_1 = arith.constant 0 : i32
    %c0_i32_2 = arith.constant 0 : i32
    return %c0_i32, %c0_i32_0, %c0_i32_1 : i32, i32, i32
  }
}

module attributes {stable_mosaic.version = 11 : i64} {
  func.func @fc_kernel(%arg0: i32, %arg1: memref<2x2048xbf16, #tpu.memory_space<vmem>>, %arg2: memref<2048x512xbf16, #tpu.memory_space<vmem>>, %arg3: memref<1x512xf32, #tpu.memory_space<vmem>>, %arg4: memref<512x256xbf16, #tpu.memory_space<vmem>>, %arg5: memref<1x256xf32, #tpu.memory_space<vmem>>, %arg6: memref<256x64xbf16, #tpu.memory_space<vmem>>, %arg7: memref<1x64xf32, #tpu.memory_space<vmem>>, %arg8: memref<2x64xf32, #tpu.memory_space<vmem>>, %arg9: memref<2x512xf32, #tpu.memory_space<vmem>>) attributes {dimension_semantics = [#tpu.dimension_semantics<arbitrary>], iteration_bounds = array<i64: 4>, scalar_prefetch = 0 : i64, scratch_operands = 1 : i64, tpu.core_type = #tpu.core_type<tc>, window_params = [{transform_indices = @transform_0, window_bounds = array<i64: 2, 2048>}, {transform_indices = @transform_1, window_bounds = array<i64: 2048, 512>}, {pipeline_mode = #tpu.pipeline_mode<synchronous>, transform_indices = @transform_2, window_bounds = array<i64: 1, 512>}, {pipeline_mode = #tpu.pipeline_mode<synchronous>, transform_indices = @transform_3, window_bounds = array<i64: 512, 256>}, {pipeline_mode = #tpu.pipeline_mode<synchronous>, transform_indices = @transform_4, window_bounds = array<i64: 1, 256>}, {pipeline_mode = #tpu.pipeline_mode<synchronous>, transform_indices = @transform_5, window_bounds = array<i64: 256, 64>}, {pipeline_mode = #tpu.pipeline_mode<synchronous>, transform_indices = @transform_6, window_bounds = array<i64: 1, 64>}, {pipeline_mode = #tpu.pipeline_mode<synchronous>, transform_indices = @transform_7, window_bounds = array<i64: 2, 64>}]} {
    %c0_i32 = arith.constant 0 : i32
    %0 = arith.cmpi eq, %arg0, %c0_i32 : i32
    %1 = arith.extui %0 : i1 to i32
    %c0_i32_0 = arith.constant 0 : i32
    %2 = arith.cmpi ne, %1, %c0_i32_0 : i32
    scf.if %2 {
      %cst_9 = arith.constant 0.000000e+00 : f32
      %12 = vector.broadcast %cst_9 : f32 to vector<2x512xf32>
      %c0_10 = arith.constant 0 : index
      %c0_11 = arith.constant 0 : index
      %13 = vector.load %arg9[%c0_10, %c0_11] : memref<2x512xf32, #tpu.memory_space<vmem>>, vector<2x512xf32>
      tpu.vector_store %arg9[%c0_10, %c0_11], %12 {strides = array<i32>} : memref<2x512xf32, #tpu.memory_space<vmem>>, vector<2x512xf32>,
    } else {
    }
    %c0 = arith.constant 0 : index
    %c0_1 = arith.constant 0 : index
    %3 = vector.load %arg9[%c0, %c0_1] : memref<2x512xf32, #tpu.memory_space<vmem>>, vector<2x512xf32>
    %c0_2 = arith.constant 0 : index
    %c0_3 = arith.constant 0 : index
    %4 = vector.load %arg1[%c0_2, %c0_3] : memref<2x2048xbf16, #tpu.memory_space<vmem>>, vector<2x2048xbf16>
    %c0_4 = arith.constant 0 : index
    %c0_5 = arith.constant 0 : index
    %5 = vector.load %arg2[%c0_4, %c0_5] : memref<2048x512xbf16, #tpu.memory_space<vmem>>, vector<2048x512xbf16>
    %cst = arith.constant dense<0.000000e+00> : vector<2x512xf32>
    %6 = tpu.matmul %4, %5, %cst {dimension_numbers = #tpu.dot_dimension_numbers<[1], [0], [0], [1], [0, 0, 1, 1], [], []>} : vector<2x2048xbf16>, vector<2048x512xbf16>, vector<2x512xf32> -> vector<2x512xf32>
    %7 = arith.addf %3, %6 : vector<2x512xf32>
    %c0_6 = arith.constant 0 : index
    %c0_7 = arith.constant 0 : index
    %8 = vector.load %arg9[%c0_6, %c0_7] : memref<2x512xf32, #tpu.memory_space<vmem>>, vector<2x512xf32>
    tpu.vector_store %arg9[%c0_6, %c0_7], %7 {strides = array<i32>} : memref<2x512xf32, #tpu.memory_space<vmem>>, vector<2x512xf32>,
    %c3_i32 = arith.constant 3 : i32
    %9 = arith.cmpi eq, %arg0, %c3_i32 : i32
    %10 = arith.extui %9 : i1 to i32
    %c0_i32_8 = arith.constant 0 : i32
    %11 = arith.cmpi ne, %10, %c0_i32_8 : i32
    scf.if %11 {
      %c0_9 = arith.constant 0 : index
      %c0_10 = arith.constant 0 : index
      %12 = vector.load %arg9[%c0_9, %c0_10] : memref<2x512xf32, #tpu.memory_space<vmem>>, vector<2x512xf32>
      %c0_11 = arith.constant 0 : index
      %c0_12 = arith.constant 0 : index
      %13 = vector.load %arg3[%c0_11, %c0_12] : memref<1x512xf32, #tpu.memory_space<vmem>>, vector<1x512xf32>
      %14 = vector.broadcast %13 : vector<1x512xf32> to vector<2x512xf32>
      %15 = arith.addf %12, %14 : vector<2x512xf32>
      %cst_13 = arith.constant 0.000000e+00 : f32
      %16 = vector.broadcast %cst_13 : f32 to vector<2x512xf32>
      %17 = arith.maximumf %15, %16 : vector<2x512xf32>
      %18 = arith.truncf %17 : vector<2x512xf32> to vector<2x512xbf16>
      %c0_14 = arith.constant 0 : index
      %c0_15 = arith.constant 0 : index
      %19 = vector.load %arg4[%c0_14, %c0_15] : memref<512x256xbf16, #tpu.memory_space<vmem>>, vector<512x256xbf16>
      %cst_16 = arith.constant dense<0.000000e+00> : vector<2x256xf32>
      %20 = tpu.matmul %18, %19, %cst_16 {dimension_numbers = #tpu.dot_dimension_numbers<[1], [0], [0], [1], [0, 0, 1, 1], [], []>} : vector<2x512xbf16>, vector<512x256xbf16>, vector<2x256xf32> -> vector<2x256xf32>
      %c0_17 = arith.constant 0 : index
      %c0_18 = arith.constant 0 : index
      %21 = vector.load %arg5[%c0_17, %c0_18] : memref<1x256xf32, #tpu.memory_space<vmem>>, vector<1x256xf32>
      %22 = vector.broadcast %21 : vector<1x256xf32> to vector<2x256xf32>
      %23 = arith.addf %20, %22 : vector<2x256xf32>
      %cst_19 = arith.constant 0.000000e+00 : f32
      %24 = vector.broadcast %cst_19 : f32 to vector<2x256xf32>
      %25 = arith.maximumf %23, %24 : vector<2x256xf32>
      %26 = arith.truncf %25 : vector<2x256xf32> to vector<2x256xbf16>
      %c0_20 = arith.constant 0 : index
      %c0_21 = arith.constant 0 : index
      %27 = vector.load %arg6[%c0_20, %c0_21] : memref<256x64xbf16, #tpu.memory_space<vmem>>, vector<256x64xbf16>
      %cst_22 = arith.constant dense<0.000000e+00> : vector<2x64xf32>
      %28 = tpu.matmul %26, %27, %cst_22 {dimension_numbers = #tpu.dot_dimension_numbers<[1], [0], [0], [1], [0, 0, 1, 1], [], []>} : vector<2x256xbf16>, vector<256x64xbf16>, vector<2x64xf32> -> vector<2x64xf32>
      %c0_23 = arith.constant 0 : index
      %c0_24 = arith.constant 0 : index
      %29 = vector.load %arg7[%c0_23, %c0_24] : memref<1x64xf32, #tpu.memory_space<vmem>>, vector<1x64xf32>
      %30 = vector.broadcast %29 : vector<1x64xf32> to vector<2x64xf32>
      %31 = arith.addf %28, %30 : vector<2x64xf32>
      %c0_25 = arith.constant 0 : index
      %c0_26 = arith.constant 0 : index
      %32 = vector.load %arg8[%c0_25, %c0_26] : memref<2x64xf32, #tpu.memory_space<vmem>>, vector<2x64xf32>
      tpu.vector_store %arg8[%c0_25, %c0_26], %31 {strides = array<i32>} : memref<2x64xf32, #tpu.memory_space<vmem>>, vector<2x64xf32>,
    } else {
    }
    return
  }
  func.func @transform_0(%arg0: i32) -> (i32, i32) {
    %c0_i32 = arith.constant 0 : i32
    %c0_i32_0 = arith.constant 0 : i32
    return %c0_i32, %arg0 : i32, i32
  }
  func.func @transform_1(%arg0: i32) -> (i32, i32) {
    %c0_i32 = arith.constant 0 : i32
    %c0_i32_0 = arith.constant 0 : i32
    return %arg0, %c0_i32 : i32, i32
  }
  func.func @transform_2(%arg0: i32) -> (i32, i32) {
    %c0_i32 = arith.constant 0 : i32
    %c0_i32_0 = arith.constant 0 : i32
    %c0_i32_1 = arith.constant 0 : i32
    return %c0_i32, %c0_i32_0 : i32, i32
  }
  func.func @transform_3(%arg0: i32) -> (i32, i32) {
    %c0_i32 = arith.constant 0 : i32
    %c0_i32_0 = arith.constant 0 : i32
    %c0_i32_1 = arith.constant 0 : i32
    return %c0_i32, %c0_i32_0 : i32, i32
  }
  func.func @transform_4(%arg0: i32) -> (i32, i32) {
    %c0_i32 = arith.constant 0 : i32
    %c0_i32_0 = arith.constant 0 : i32
    %c0_i32_1 = arith.constant 0 : i32
    return %c0_i32, %c0_i32_0 : i32, i32
  }
  func.func @transform_5(%arg0: i32) -> (i32, i32) {
    %c0_i32 = arith.constant 0 : i32
    %c0_i32_0 = arith.constant 0 : i32
    %c0_i32_1 = arith.constant 0 : i32
    return %c0_i32, %c0_i32_0 : i32, i32
  }
  func.func @transform_6(%arg0: i32) -> (i32, i32) {
    %c0_i32 = arith.constant 0 : i32
    %c0_i32_0 = arith.constant 0 : i32
    %c0_i32_1 = arith.constant 0 : i32
    return %c0_i32, %c0_i32_0 : i32, i32
  }
  func.func @transform_7(%arg0: i32) -> (i32, i32) {
    %c0_i32 = arith.constant 0 : i32
    %c0_i32_0 = arith.constant 0 : i32
    %c0_i32_1 = arith.constant 0 : i32
    return %c0_i32, %c0_i32_0 : i32, i32
  }
}

</mosaic_0001>

<bundles_post_ra>
// kernel: dqn_forward.2
= control target key start
LH: loop header
LB: loop body
LE: loop exit
PB: predicated region body
PF: predicated region fallthrough
CT: control target
= control target key end

     0   :  { %12 = vsyncpa [#allocation5], 0  ;;  %s8008_s0 = inlined_call_operand.vmem [shape: f32[128,36], index: 0, kind: input, shape index: {}]   ;;  %s8009_s1 = inlined_call_operand.vmem [shape: f32[36,32], index: 1, kind: input, shape index: {}]   ;;  %s8010_s2 = inlined_call_operand.hbm [shape: f32[1,32], index: 2, kind: input, shape index: {}]   ;;  %s8011_s3 = inlined_call_operand.hbm [shape: f32[9,32,64], index: 3, kind: input, shape index: {}]   ;;  %s8012_s4 = inlined_call_operand.hbm [shape: f32[1,64], index: 4, kind: input, shape index: {}]   ;;  %s8013_s5 = inlined_call_operand.hbm [shape: f32[9,64,128], index: 5, kind: input, shape index: {}]   ;;  %s8014_s6 = inlined_call_operand.hbm [shape: f32[1,128], index: 6, kind: input, shape index: {}]   ;;  %s8015_s7 = inlined_call_operand.vmem [shape: bf16[2,64,128], index: 7, kind: output, shape index: {}]  }
   0x1   :  { %13 = vsyncpa [#allocation7], 0 }
   0x2   :  { %14 = vsyncpa [#allocation10], 0  ;;  %s6821_s24 = smov [#allocation6]   ;;  %s6705_s28 = scalar_lea.hbm %s8011_s3, 4608 }
   0x3   :  { %s34_s25 = sshll.u32 %s6821_s24, 4  ;;  %p6706_p0 = scmp.ne.s32.totalorder %s8011_s3, %s6705_s28  ;;  %s35_s25 = int_to_ptr.vmem [resolvable:$true] %s34_s25 }
   0x4   :  { %p6709_p1 = scmp.lt.u32.totalorder %s6705_s28, %s8011_s3 }
   0x6   :  { %p6711_p2 = pnand %p6709_p1, %p6706_p0 }
   0x8   :  { %6714 = shalt.err (!%p6711_p2)
}
   0x9   :  { %s6715_s10 = scalar_lea.vmem %s35_s25, 4608  ;;  %p6720_p4 = scmp.lt.s32.totalorder %s35_s25, %s35_s25 }
   0xa   :  { %p6716_p3 = scmp.ne.s32.totalorder %s35_s25, %s6715_s10  ;;  %p6721_p5 = scmp.lt.s32.totalorder %s6715_s10, %s6715_s10 }
   0xc   :  { %p6722_p6 = por %p6721_p5, %p6720_p4 }
   0xe   :  { %p6723_p7 = pnand %p6722_p6, %p6716_p3 }
  0x10   :  { %6726 = shalt.err (!%p6723_p7)
}
  0x11   :  { %s6822_s11 = smov 128   ;;  %s6823_s12 = smov 8  }
  0x12   :  { %40 = dma.hbm_to_vmem [thread:$0]  %s8011_s3, 4608, %s35_s25, [#allocation7], %s6822_s11, %s6822_s11, %s6823_s12  }
  0x13   :  { %s6824_s15 = smov [#allocation9]   ;;  %s6825_s17 = smov [#allocation4]  }
  0x14   :  { %s56_s16 = sshll.u32 %s6824_s15, 4  ;;  %s25_s18 = sshll.u32 %s6825_s17, 4  ;;  %s57_s16 = int_to_ptr.vmem [resolvable:$true] %s56_s16  ;;  %s26_s18 = int_to_ptr.vmem [resolvable:$true] %s25_s18 }
  0x15   :  { %s6727_s21 = scalar_lea.hbm %s8013_s5, 9216 }
  0x16   :  { %p6728_p8 = scmp.ne.s32.totalorder %s8013_s5, %s6727_s21  ;;  %p6731_p9 = scmp.lt.u32.totalorder %s6727_s21, %s8013_s5 }
  0x18   :  { %p6733_p10 = pnand %p6731_p9, %p6728_p8 }
  0x1a   :  { %6736 = shalt.err (!%p6733_p10)
}
  0x1b   :  { %s6737_s3 = scalar_lea.vmem %s57_s16, 9216  ;;  %p6742_p12 = scmp.lt.s32.totalorder %s57_s16, %s57_s16 }
  0x1c   :  { %p6738_p11 = scmp.ne.s32.totalorder %s57_s16, %s6737_s3  ;;  %p6743_p13 = scmp.lt.s32.totalorder %s6737_s3, %s6737_s3 }
  0x1e   :  { %p6744_p0 = por %p6743_p13, %p6742_p12 }
  0x20   :  { %p6745_p1 = pnand %p6744_p0, %p6738_p11 }
  0x22   :  { %6748 = shalt.err (!%p6745_p1)
}
  0x23   :  { %62 = dma.hbm_to_vmem [thread:$0]  %s8013_s5, 9216, %s57_s16, [#allocation10], %s6822_s11, %s6822_s11, %s6823_s12  }
  0x24   :  { %s6749_s30 = scalar_lea.hbm %s8010_s2, 16 }
  0x25   :  { %p6750_p2 = scmp.ne.s32.totalorder %s8010_s2, %s6749_s30  ;;  %p6753_p3 = scmp.lt.u32.totalorder %s6749_s30, %s8010_s2 }
  0x27   :  { %p6755_p4 = pnand %p6753_p3, %p6750_p2 }
  0x29   :  { %6758 = shalt.err (!%p6755_p4)
}
  0x2a   :  { %s6759_s14 = scalar_lea.vmem %s26_s18, 16  ;;  %s6763_s15 = scalar_lea.vmem %s26_s18, 32 }
  0x2b   :  { %p6760_p5 = scmp.ne.s32.totalorder %s26_s18, %s6759_s14  ;;  %p6764_p6 = scmp.lt.s32.totalorder %s26_s18, %s26_s18 }
  0x2c   :  { %p6765_p7 = scmp.lt.s32.totalorder %s6763_s15, %s6759_s14 }
  0x2e   :  { %p6766_p8 = por %p6765_p7, %p6764_p6 }
  0x30   :  { %p6767_p9 = pnand %p6766_p8, %p6760_p5 }
  0x32   :  { %6770 = shalt.err (!%p6767_p9)
}
  0x33   :  { %28 = dma.hbm_to_vmem [thread:$0]  %s8010_s2, 16, %s26_s18, [#allocation5]  }
  0x34   :  { %s6826_s12 = smov [#allocation8]   ;;  %s6827_s17 = smov [#allocation11]  }
  0x35   :  { %s47_s16 = sshll.u32 %s6826_s12, 4  ;;  %s69_s19 = sshll.u32 %s6827_s17, 4  ;;  %s48_s16 = int_to_ptr.vmem [resolvable:$true] %s47_s16  ;;  %s70_s19 = int_to_ptr.vmem [resolvable:$true] %s69_s19 }
  0x36   :  { %s6771_s22 = scalar_lea.hbm %s8012_s4, 16 }
  0x37   :  { %p6772_p10 = scmp.ne.s32.totalorder %s8012_s4, %s6771_s22  ;;  %p6775_p11 = scmp.lt.u32.totalorder %s6771_s22, %s8012_s4 }
  0x39   :  { %p6777_p12 = pnand %p6775_p11, %p6772_p10 }
  0x3b   :  { %6780 = shalt.err (!%p6777_p12)
}
  0x3c   :  { %s6781_s2 = scalar_lea.vmem %s48_s16, 16  ;;  %s6785_s18 = scalar_lea.vmem %s48_s16, 32 }
  0x3d   :  { %p6782_p13 = scmp.ne.s32.totalorder %s48_s16, %s6781_s2  ;;  %p6786_p0 = scmp.lt.s32.totalorder %s48_s16, %s48_s16 }
  0x3e   :  { %p6787_p1 = scmp.lt.s32.totalorder %s6785_s18, %s6781_s2 }
  0x40   :  { %p6788_p2 = por %p6787_p1, %p6786_p0 }
  0x42   :  { %p6789_p3 = pnand %p6788_p2, %p6782_p13 }
  0x44   :  { %6792 = shalt.err (!%p6789_p3)
}
  0x45   :  { %50 = dma.hbm_to_vmem [thread:$0]  %s8012_s4, 16, %s48_s16, [#allocation7]  }
  0x46   :  { %s6793_s30 = scalar_lea.hbm %s8014_s6, 16 }
  0x47   :  { %p6794_p4 = scmp.ne.s32.totalorder %s8014_s6, %s6793_s30  ;;  %p6797_p5 = scmp.lt.u32.totalorder %s6793_s30, %s8014_s6 }
  0x49   :  { %p6799_p6 = pnand %p6797_p5, %p6794_p4 }
  0x4b   :  { %6802 = shalt.err (!%p6799_p6)
}
  0x4c   :  { %s6803_s14 = scalar_lea.vmem %s70_s19, 16  ;;  %s6807_s15 = scalar_lea.vmem %s70_s19, 32 }
  0x4d   :  { %p6804_p7 = scmp.ne.s32.totalorder %s70_s19, %s6803_s14  ;;  %p6808_p8 = scmp.lt.s32.totalorder %s70_s19, %s70_s19 }
  0x4e   :  { %p6809_p9 = scmp.lt.s32.totalorder %s6807_s15, %s6803_s14 }
  0x50   :  { %p6810_p10 = por %p6809_p9, %p6808_p8 }
  0x52   :  { %p6811_p11 = pnand %p6810_p10, %p6804_p7 }
  0x54   :  { %6814 = shalt.err (!%p6811_p11)
}
  0x55   :  { %72 = dma.hbm_to_vmem [thread:$0]  %s8014_s6, 16, %s70_s19, [#allocation10]  }
  0x56   :  { %6815 = dma.done.wait [#allocation5], 16  }
  0x57   :  { %6816 = vsyncadd [#allocation5], 4294967280 }
  0x58   :  { %6817 = dma.done.wait [#allocation7], 4624  }
  0x59   :  { %6818 = vsyncadd [#allocation7], 4294962672 }
  0x5a   :  { %6819 = dma.done.wait [#allocation10], 9232  }
  0x5b   :  { %6820 = vsyncadd [#allocation10], 4294958064  ;;  %vm116_vm0 = vcmask 293888   ;;  %v104_v0 = vld [vmem:[%s8009_s1] sm:$0xff]  ;;  %v105_v1 = vld [vmem:[%s8009_s1 + $0x8] sm:$0xff]  ;;  %vm165_vm1 = vcmask 1043456  }
  0x5c   :  { %v106_v2 = vld [vmem:[%s8009_s1 + $0x10] sm:$0xff]  ;;  %v6211_v3 = vpack.c.bf16 %v105_v1, %v104_v0  ;;  %v107_v4 = vld [vmem:[%s8009_s1 + $0x18] sm:$0xff]  ;;  %v88_v5 = vld [vmem:[%s8008_s0] sm:$0xff]  ;;  %vm330_vm2 = vcmask 261120   ;;  %vm332_vm3 = vcmask 254976   ;;  %v6828_v26 = vmov 0.0  }
  0x5d   :  { %v6215_v6 = vpack.c.bf16 %v107_v4, %v106_v2  ;;  %5539 = vmatprep.mubr.msk.f32.mxu0 %vm116_vm0, %v88_v5  ;;  %v96_v7 = vld [vmem:[%s8008_s0 + $0x40] sm:$0xff]  ;;  %v427_v10 = vld [vmem:[#allocation6 + $0x28] sm:$0xff]  ;;  %v91_v16 = vld [vmem:[%s8008_s0 + $0x18] sm:$0xff]  ;;  %336 = vst.msk [vmem:[#allocation2 + $0x20] sm:$0xff] %vm330_vm2, %v6828_v26  ;;  %vm2466_vm4 = vcmask 523264   ;;  %vm2468_vm5 = vcmask 517120  }
  0x5e   :  { %6212 = vmatprep.subr.bf16.mxu0 %v6211_v3  ;;  %6435 = vmatprep.subr.bf16.mxu1 %v6211_v3  ;;  %v108_v8 = vld [vmem:[%s8009_s1 + $0x20] sm:$0xf]  ;;  %v89_v11 = vld [vmem:[%s8008_s0 + $0x8] sm:$0xff]  ;;  %v90_v13 = vld [vmem:[%s8008_s0 + $0x10] sm:$0xff]  ;;  %337 = vst.msk [vmem:[#allocation2 + $0x28] sm:$0x3] %vm332_vm3, %v6828_v26 }
  0x5f   :  { %6214 = vmatpush3.bf16.msra.mxu0 %v6211_v3  ;;  %6438 = vmatpush3.bf16.msra.mxu1 %v6211_v3  ;;  %v426_v9 = vld [vmem:[#allocation6 + $0x20] sm:$0xff]  ;;  %v98_v14 = vld [vmem:[%s8008_s0 + $0x50] sm:$0xff]  ;;  %v99_v17 = vld [vmem:[%s8008_s0 + $0x58] sm:$0xff]  ;;  %331 = vst.msk [vmem:[#allocation2] sm:$0xff] %vm330_vm2, %v6828_v26 }
  0x60   :  { %6216 = vmatprep.subr.bf16.mxu0 %v6215_v6  ;;  %6436 = vmatprep.subr.bf16.mxu1 %v6215_v6  ;;  %v97_v12 = vld [vmem:[%s8008_s0 + $0x48] sm:$0xff]  ;;  %v6219_v15 = vpack.c.bf16 %v427_v10, %v426_v9  ;;  %v92_v18 = vld [vmem:[%s8008_s0 + $0x20] sm:$0xff]  ;;  %v94_v22 = vld [vmem:[%s8008_s0 + $0x30] sm:$0xff]  ;;  %333 = vst.msk [vmem:[#allocation2 + $0x8] sm:$0x3] %vm332_vm3, %v6828_v26 }
  0x61   :  { %5551 = vmatprep.mubr.msk.f32.mxu1 %vm116_vm0, %v96_v7  ;;  %v100_v19 = vld [vmem:[%s8008_s0 + $0x60] sm:$0xff]  ;;  %v93_v20 = vld [vmem:[%s8008_s0 + $0x28] sm:$0xff]  ;;  %v102_v23 = vld [vmem:[%s8008_s0 + $0x70] sm:$0xff]  ;;  %334 = vst.msk [vmem:[#allocation2 + $0x10] sm:$0xff] %vm330_vm2, %v6828_v26 }
  0x62   :  { %v101_v21 = vld [vmem:[%s8008_s0 + $0x68] sm:$0xff]  ;;  %v95_v24 = vld [vmem:[%s8008_s0 + $0x38] sm:$0xff]  ;;  %335 = vst.msk [vmem:[#allocation2 + $0x18] sm:$0x3] %vm332_vm3, %v6828_v26  ;;  %339 = vst.msk [vmem:[#allocation2 + $0x38] sm:$0x3] %vm332_vm3, %v6828_v26 }
  0x63   :  { %6218 = vmatpush3.bf16.msra.mxu0 %v6215_v6  ;;  %6439 = vmatpush3.bf16.msra.mxu1 %v6215_v6  ;;  %v103_v25 = vld [vmem:[%s8008_s0 + $0x78] sm:$0xff]  ;;  %338 = vst.msk [vmem:[#allocation2 + $0x30] sm:$0xff] %vm330_vm2, %v6828_v26  ;;  %340 = vst.msk [vmem:[#allocation2 + $0x40] sm:$0xff] %vm330_vm2, %v6828_v26  ;;  %v405_v31 = vld [vmem:[#allocation6] sm:$0xff] }
  0x64   :  { %5537 = vmatprep.subr.msk.mxu0 %vm165_vm1, %v108_v8  ;;  %6437 = vmatprep.subr.msk.mxu1 %vm165_vm1, %v108_v8  ;;  %341 = vst.msk [vmem:[#allocation2 + $0x48] sm:$0x3] %vm332_vm3, %v6828_v26  ;;  %343 = vst.msk [vmem:[#allocation2 + $0x58] sm:$0x3] %vm332_vm3, %v6828_v26  ;;  %v428_v27 = vld [vmem:[#allocation6 + $0x30] sm:$0xff]  ;;  %v429_v28 = vld [vmem:[#allocation6 + $0x38] sm:$0xff] }
  0x65   :  { %342 = vst.msk [vmem:[#allocation2 + $0x50] sm:$0xff] %vm330_vm2, %v6828_v26  ;;  %344 = vst.msk [vmem:[#allocation2 + $0x60] sm:$0xff] %vm330_vm2, %v6828_v26  ;;  %v6223_v29 = vpack.c.bf16 %v429_v28, %v428_v27  ;;  %v406_v32 = vld [vmem:[#allocation6 + $0x8] sm:$0xff]  ;;  %v7092_v34 = vld [vmem:[#allocation4] ss:$0 sm:$0xff] }
  0x66   :  { %345 = vst.msk [vmem:[#allocation2 + $0x68] sm:$0x3] %vm332_vm3, %v6828_v26  ;;  %347 = vst.msk [vmem:[#allocation2 + $0x78] sm:$0x3] %vm332_vm3, %v6828_v26  ;;  %v7089_v33 = vpack.c.bf16 %v406_v32, %v405_v31  ;;  %v407_v1 = vld [vmem:[#allocation6 + $0x10] sm:$0xff]  ;;  %v408_v2 = vld [vmem:[#allocation6 + $0x18] sm:$0xff] }
  0x67   :  { %5538 = vmatpush3.msk.msra.mxu0 %vm165_vm1, %v108_v8  ;;  %6440 = vmatpush3.msk.msra.mxu1 %vm165_vm1, %v108_v8  ;;  %346 = vst.msk [vmem:[#allocation2 + $0x70] sm:$0xff] %vm330_vm2, %v6828_v26  ;;  %348 = vst.msk [vmem:[#allocation2 + $0x80] sm:$0xff] %vm330_vm2, %v6828_v26  ;;  %v409_v30 = vld [vmem:[#allocation2 + $0x1] sm:$0xff] }
  0x68   :  { %5540 = vmatmul.mubr.msk.f32.vlgmr.msra.gmra.mrb[0].mxu0 %vm116_vm0, %v89_v11  ;;  %5552 = vmatmul.mubr.msk.f32.vlgmr.msra.gmra.mrb[0].mxu1 %vm116_vm0, %v97_v12  ;;  %349 = vst.msk [vmem:[#allocation2 + $0x88] sm:$0x3] %vm332_vm3, %v6828_v26  ;;  %351 = vst.msk [vmem:[#allocation2 + $0x98] sm:$0x3] %vm332_vm3, %v6828_v26  ;;  %v6231_v11 = vpack.c.bf16 %v408_v2, %v407_v1  ;;  %v1066_v1 = vld [vmem:[#allocation6 + $0x78] sm:$0xff] }
  0x69   :  { %5542 = vmatprep.mubr.msk.f32.mxu0 %vm116_vm0, %v90_v13  ;;  %5554 = vmatprep.mubr.msk.f32.mxu1 %vm116_vm0, %v98_v14  ;;  %350 = vst.msk [vmem:[#allocation2 + $0x90] sm:$0xff] %vm330_vm2, %v6828_v26  ;;  %352 = vst.msk [vmem:[#allocation2 + $0xa0] sm:$0xff] %vm330_vm2, %v6828_v26 }
  0x6a   :  { %6220 = vmatprep.subr.bf16.mxu1 %v6219_v15  ;;  %353 = vst.msk [vmem:[#allocation2 + $0xa8] sm:$0x3] %vm332_vm3, %v6828_v26  ;;  %355 = vst.msk [vmem:[#allocation2 + $0xb8] sm:$0x3] %vm332_vm3, %v6828_v26 }
  0x6b   :  { %6222 = vmatpush3.bf16.msra.mxu1 %v6219_v15  ;;  %354 = vst.msk [vmem:[#allocation2 + $0xb0] sm:$0xff] %vm330_vm2, %v6828_v26  ;;  %356 = vst.msk [vmem:[#allocation2 + $0xc0] sm:$0xff] %vm330_vm2, %v6828_v26 }
  0x6c   :  { %5543 = vmatmul.mubr.msk.f32.gmra.mrb[2].mxu0 %vm116_vm0, %v91_v16  ;;  %5555 = vmatmul.mubr.msk.f32.gmra.mrb[2].mxu1 %vm116_vm0, %v99_v17  ;;  %357 = vst.msk [vmem:[#allocation2 + $0xc8] sm:$0x3] %vm332_vm3, %v6828_v26  ;;  %359 = vst.msk [vmem:[#allocation2 + $0xd8] sm:$0x3] %vm332_vm3, %v6828_v26  ;;  %v833_v17 = vld [vmem:[#allocation6 + $0x40] sm:$0xff] }
  0x6d   :  { %5545 = vmatprep.mubr.msk.f32.mxu0 %vm116_vm0, %v92_v18  ;;  %5557 = vmatprep.mubr.msk.f32.mxu1 %vm116_vm0, %v100_v19  ;;  %358 = vst.msk [vmem:[#allocation2 + $0xd0] sm:$0xff] %vm330_vm2, %v6828_v26  ;;  %360 = vst.msk [vmem:[#allocation2 + $0xe0] sm:$0xff] %vm330_vm2, %v6828_v26  ;;  %v834_v18 = vld [vmem:[#allocation6 + $0x48] sm:$0xff] }
  0x6e   :  { %361 = vst.msk [vmem:[#allocation2 + $0xe8] sm:$0x3] %vm332_vm3, %v6828_v26  ;;  %363 = vst.msk [vmem:[#allocation2 + $0xf8] sm:$0x3] %vm332_vm3, %v6828_v26  ;;  %6224 = vmatprep.subr.bf16.mxu1 %v6223_v29  ;;  %v6235_v27 = vpack.c.bf16 %v834_v18, %v833_v17 }
  0x6f   :  { %362 = vst.msk [vmem:[#allocation2 + $0xf0] sm:$0xff] %vm330_vm2, %v6828_v26  ;;  %364 = vst.msk [vmem:[#allocation2 + $0x100] sm:$0xff] %vm330_vm2, %v6828_v26  ;;  %6226 = vmatpush3.bf16.msra.mxu1 %v6223_v29 }
  0x70   :  { %5546 = vmatmul.mubr.msk.f32.gmra.mrb[4].mxu0 %vm116_vm0, %v93_v20  ;;  %5558 = vmatmul.mubr.msk.f32.gmra.mrb[4].mxu1 %vm116_vm0, %v101_v21  ;;  %365 = vst.msk [vmem:[#allocation2 + $0x108] sm:$0x3] %vm332_vm3, %v6828_v26  ;;  %367 = vst.msk [vmem:[#allocation2 + $0x118] sm:$0x3] %vm332_vm3, %v6828_v26 }
  0x71   :  { %5548 = vmatprep.mubr.msk.f32.mxu0 %vm116_vm0, %v94_v22  ;;  %5560 = vmatprep.mubr.msk.f32.mxu1 %vm116_vm0, %v102_v23  ;;  %366 = vst.msk [vmem:[#allocation2 + $0x110] sm:$0xff] %vm330_vm2, %v6828_v26  ;;  %368 = vst.msk [vmem:[#allocation2 + $0x120] sm:$0xff] %vm330_vm2, %v6828_v26  ;;  %v417_v32 = vld [vmem:[#allocation2 + $0xa1] sm:$0xff] }
  0x72   :  { %369 = vst.msk [vmem:[#allocation2 + $0x128] sm:$0x3] %vm332_vm3, %v6828_v26  ;;  %371 = vst.msk [vmem:[#allocation2 + $0x138] sm:$0x3] %vm332_vm3, %v6828_v26  ;;  %6228 = vmatprep.subr.bf16.mxu1 %v7089_v33 }
  0x73   :  { %370 = vst.msk [vmem:[#allocation2 + $0x130] sm:$0xff] %vm330_vm2, %v6828_v26 }
  0x74   :  { %5549 = vmatmul.mubr.msk.f32.gmra.mrb[6].mxu0 %vm116_vm0, %v95_v24  ;;  %5561 = vmatmul.mubr.msk.f32.gmra.mrb[6].mxu1 %vm116_vm0, %v103_v25  ;;  %2472 = vst.msk [vmem:[#allocation3 + $0x20] sm:$0xff] %vm2466_vm4, %v6828_v26  ;;  %2467 = vst.msk [vmem:[#allocation3] sm:$0xff] %vm2466_vm4, %v6828_v26 }
  0x75   :  { %5571 = vmatprep.mubr.msk.f32.mxu1 %vm330_vm2, %v409_v30  ;;  %2473 = vst.msk [vmem:[#allocation3 + $0x28] sm:$0x3] %vm2468_vm5, %v6828_v26  ;;  %2469 = vst.msk [vmem:[#allocation3 + $0x8] sm:$0x3] %vm2468_vm5, %v6828_v26 }
  0x76   :  { %2470 = vst.msk [vmem:[#allocation3 + $0x10] sm:$0xff] %vm2466_vm4, %v6828_v26  ;;  %2474 = vst.msk [vmem:[#allocation3 + $0x30] sm:$0xff] %vm2466_vm4, %v6828_v26 }
  0x77   :  { %2471 = vst.msk [vmem:[#allocation3 + $0x18] sm:$0x3] %vm2468_vm5, %v6828_v26  ;;  %2475 = vst.msk [vmem:[#allocation3 + $0x38] sm:$0x3] %vm2468_vm5, %v6828_v26 }
  0x78   :  { %2476 = vst.msk [vmem:[#allocation3 + $0x40] sm:$0xff] %vm2466_vm4, %v6828_v26  ;;  %2478 = vst.msk [vmem:[#allocation3 + $0x50] sm:$0xff] %vm2466_vm4, %v6828_v26 }
  0x79   :  { %2477 = vst.msk [vmem:[#allocation3 + $0x48] sm:$0x3] %vm2468_vm5, %v6828_v26  ;;  %2479 = vst.msk [vmem:[#allocation3 + $0x58] sm:$0x3] %vm2468_vm5, %v6828_v26 }
  0x7a   :  { %2480 = vst.msk [vmem:[#allocation3 + $0x60] sm:$0xff] %vm2466_vm4, %v6828_v26  ;;  %2482 = vst.msk [vmem:[#allocation3 + $0x70] sm:$0xff] %vm2466_vm4, %v6828_v26 }
  0x7b   :  { %2481 = vst.msk [vmem:[#allocation3 + $0x68] sm:$0x3] %vm2468_vm5, %v6828_v26  ;;  %2483 = vst.msk [vmem:[#allocation3 + $0x78] sm:$0x3] %vm2468_vm5, %v6828_v26 }
  0x7c   :  { %2484 = vst.msk [vmem:[#allocation3 + $0x80] sm:$0xff] %vm2466_vm4, %v6828_v26  ;;  %2486 = vst.msk [vmem:[#allocation3 + $0x90] sm:$0xff] %vm2466_vm4, %v6828_v26 }
  0x7d   :  { %2485 = vst.msk [vmem:[#allocation3 + $0x88] sm:$0x3] %vm2468_vm5, %v6828_v26  ;;  %2487 = vst.msk [vmem:[#allocation3 + $0x98] sm:$0x3] %vm2468_vm5, %v6828_v26 }
  0x7e   :  { %2488 = vst.msk [vmem:[#allocation3 + $0xa0] sm:$0xff] %vm2466_vm4, %v6828_v26  ;;  %2490 = vst.msk [vmem:[#allocation3 + $0xb0] sm:$0xff] %vm2466_vm4, %v6828_v26 }
  0x7f   :  { %2489 = vst.msk [vmem:[#allocation3 + $0xa8] sm:$0x3] %vm2468_vm5, %v6828_v26  ;;  %2491 = vst.msk [vmem:[#allocation3 + $0xb8] sm:$0x3] %vm2468_vm5, %v6828_v26 }
  0x80   :  { %2492 = vst.msk [vmem:[#allocation3 + $0xc0] sm:$0xff] %vm2466_vm4, %v6828_v26  ;;  %2494 = vst.msk [vmem:[#allocation3 + $0xd0] sm:$0xff] %vm2466_vm4, %v6828_v26 }
  0x81   :  { %2493 = vst.msk [vmem:[#allocation3 + $0xc8] sm:$0x3] %vm2468_vm5, %v6828_v26  ;;  %2495 = vst.msk [vmem:[#allocation3 + $0xd8] sm:$0x3] %vm2468_vm5, %v6828_v26 }
  0x82   :  { %2496 = vst.msk [vmem:[#allocation3 + $0xe0] sm:$0xff] %vm2466_vm4, %v6828_v26  ;;  %2498 = vst.msk [vmem:[#allocation3 + $0xf0] sm:$0xff] %vm2466_vm4, %v6828_v26 }
  0x83   :  { %2497 = vst.msk [vmem:[#allocation3 + $0xe8] sm:$0x3] %vm2468_vm5, %v6828_v26  ;;  %2499 = vst.msk [vmem:[#allocation3 + $0xf8] sm:$0x3] %vm2468_vm5, %v6828_v26 }
  0x84   :  { %2500 = vst.msk [vmem:[#allocation3 + $0x100] sm:$0xff] %vm2466_vm4, %v6828_v26  ;;  %2502 = vst.msk [vmem:[#allocation3 + $0x110] sm:$0xff] %vm2466_vm4, %v6828_v26 }
  0x85   :  { %2501 = vst.msk [vmem:[#allocation3 + $0x108] sm:$0x3] %vm2468_vm5, %v6828_v26  ;;  %2503 = vst.msk [vmem:[#allocation3 + $0x118] sm:$0x3] %vm2468_vm5, %v6828_v26 }
  0x86   :  { %2504 = vst.msk [vmem:[#allocation3 + $0x120] sm:$0xff] %vm2466_vm4, %v6828_v26  ;;  %2506 = vst.msk [vmem:[#allocation3 + $0x130] sm:$0xff] %vm2466_vm4, %v6828_v26 }
  0x87   :  { %2505 = vst.msk [vmem:[#allocation3 + $0x128] sm:$0x3] %vm2468_vm5, %v6828_v26  ;;  %2507 = vst.msk [vmem:[#allocation3 + $0x138] sm:$0x3] %vm2468_vm5, %v6828_v26  ;;  %v7579_v26 = vld [vmem:[#allocation8] ss:$0 sm:$0xff] }
 0x13b   :  { %v5541_v35 = vpop.f32.mrb[0].mxu0  ;;  %v5553_v36 = vpop.f32.mrb[0].mxu1 }
 0x13c   :  { %v241_v37 = vadd.f32 %v5541_v35, %v7092_v34  ;;  %v235_v38 = vpop.f32.mrb[1].mxu0  ;;  %v281_v39 = vadd.f32 %v5553_v36, %v7092_v34  ;;  %v275_v40 = vpop.f32.mrb[1].mxu1 }
 0x13d   :  { %v236_v41 = vadd.f32 %v7092_v34, %v235_v38  ;;  %v276_v42 = vadd.f32 %v7092_v34, %v275_v40 }
 0x13e   :  { %v315_v43 = vmax.f32 %v241_v37, 0.0  ;;  %v323_v44 = vmax.f32 %v281_v39, 0.0 }
 0x13f   :  { %v314_v45 = vmax.f32 %v236_v41, 0.0  ;;  %v5544_v46 = vpop.f32.mrb[2].mxu0  ;;  %v322_v47 = vmax.f32 %v276_v42, 0.0  ;;  %v5556_v48 = vpop.f32.mrb[2].mxu1  ;;  %v389_v41 = vld [vmem:[#allocation2] sm:$0xff]  ;;  %v835_v42 = vld [vmem:[#allocation6 + $0x50] sm:$0xff] }
 0x140   :  { %374 = vst.msk [vmem:[#allocation2 + $0x21] sm:$0xff] %vm330_vm2, %v315_v43  ;;  %v251_v49 = vadd.f32 %v5544_v46, %v7092_v34  ;;  %v245_v50 = vpop.f32.mrb[3].mxu0  ;;  %382 = vst.msk [vmem:[#allocation2 + $0xc1] sm:$0xff] %vm330_vm2, %v323_v44  ;;  %v291_v51 = vadd.f32 %v5556_v48, %v7092_v34  ;;  %v285_v52 = vpop.f32.mrb[3].mxu1  ;;  %v836_v43 = vld [vmem:[#allocation6 + $0x58] sm:$0xff]  ;;  %v1063_v46 = vld [vmem:[#allocation6 + $0x60] sm:$0xff] }
 0x141   :  { %373 = vst.msk [vmem:[#allocation2 + $0x11] sm:$0xff] %vm330_vm2, %v314_v45  ;;  %v246_v53 = vadd.f32 %v7092_v34, %v245_v50  ;;  %381 = vst.msk [vmem:[#allocation2 + $0xb1] sm:$0xff] %vm330_vm2, %v322_v47  ;;  %v286_v54 = vadd.f32 %v7092_v34, %v285_v52  ;;  %v6239_v44 = vpack.c.bf16 %v836_v43, %v835_v42  ;;  %v1064_v47 = vld [vmem:[#allocation6 + $0x68] sm:$0xff] }
 0x142   :  { %v317_v55 = vmax.f32 %v251_v49, 0.0  ;;  %v325_v56 = vmax.f32 %v291_v51, 0.0  ;;  %v6243_v49 = vpack.c.bf16 %v1064_v47, %v1063_v46  ;;  %v1754_v47 = vld [vmem:[#allocation6 + $0xc0] sm:$0xff] }
 0x143   :  { %v316_v57 = vmax.f32 %v246_v53, 0.0  ;;  %v5547_v58 = vpop.f32.mrb[4].mxu0  ;;  %v324_v59 = vmax.f32 %v286_v54, 0.0  ;;  %v5559_v60 = vpop.f32.mrb[4].mxu1  ;;  %v397_v54 = vld [vmem:[#allocation2 + $0xa0] sm:$0xff] }
 0x144   :  { %376 = vst.msk [vmem:[#allocation2 + $0x41] sm:$0xff] %vm330_vm2, %v317_v55  ;;  %v261_v61 = vadd.f32 %v5547_v58, %v7092_v34  ;;  %v255_v62 = vpop.f32.mrb[5].mxu0  ;;  %384 = vst.msk [vmem:[#allocation2 + $0xe1] sm:$0xff] %vm330_vm2, %v325_v56  ;;  %v301_v63 = vadd.f32 %v5559_v60, %v7092_v34  ;;  %v295_v0 = vpop.f32.mrb[5].mxu1 }
 0x145   :  { %375 = vst.msk [vmem:[#allocation2 + $0x31] sm:$0xff] %vm330_vm2, %v316_v57  ;;  %v256_v3 = vadd.f32 %v7092_v34, %v255_v62  ;;  %383 = vst.msk [vmem:[#allocation2 + $0xd1] sm:$0xff] %vm330_vm2, %v324_v59  ;;  %v296_v4 = vadd.f32 %v7092_v34, %v295_v0  ;;  %v816_v62 = vld [vmem:[#allocation2 + $0x2] sm:$0xff]  ;;  %v1065_v0 = vld [vmem:[#allocation6 + $0x70] sm:$0xff] }
 0x146   :  { %v319_v5 = vmax.f32 %v261_v61, 0.0  ;;  %v327_v6 = vmax.f32 %v301_v63, 0.0  ;;  %v6247_v2 = vpack.c.bf16 %v1066_v1, %v1065_v0  ;;  %v2566_v0 = vld [vmem:[#allocation9 + $0x40] sm:$0xff]  ;;  %v2567_v1 = vld [vmem:[#allocation9 + $0x48] sm:$0xff] }
 0x147   :  { %v318_v7 = vmax.f32 %v256_v3, 0.0  ;;  %v5550_v8 = vpop.f32.mrb[6].mxu0  ;;  %v326_v9 = vmax.f32 %v296_v4, 0.0  ;;  %v5562_v10 = vpop.f32.mrb[6].mxu1  ;;  %v7124_v20 = vld [vmem:[#allocation2 + $0x21] sm:$0xff] }
 0x148   :  { %378 = vst.msk [vmem:[#allocation2 + $0x61] sm:$0xff] %vm330_vm2, %v319_v5  ;;  %v271_v12 = vadd.f32 %v5550_v8, %v7092_v34  ;;  %v265_v13 = vpop.f32.mrb[7].mxu0  ;;  %v7116_v14 = vld [vmem:[#allocation2 + $0x11] sm:$0xff]  ;;  %386 = vst.msk [vmem:[#allocation2 + $0x101] sm:$0xff] %vm330_vm2, %v327_v6  ;;  %v311_v15 = vadd.f32 %v5562_v10, %v7092_v34  ;;  %v305_v16 = vpop.f32.mrb[7].mxu1  ;;  %v7160_v35 = vld [vmem:[#allocation2 + $0xc1] sm:$0xff] }
 0x149   :  { %377 = vst.msk [vmem:[#allocation2 + $0x51] sm:$0xff] %vm330_vm2, %v318_v7  ;;  %v266_v19 = vadd.f32 %v7092_v34, %v265_v13  ;;  %5572 = vmatmul.mubr.msk.f32.vlgmr.msra.gmra.mrb[8].mxu1 %vm330_vm2, %v7116_v14  ;;  %385 = vst.msk [vmem:[#allocation2 + $0xf1] sm:$0xff] %vm330_vm2, %v326_v9  ;;  %v306_v21 = vadd.f32 %v7092_v34, %v305_v16  ;;  %v7156_v34 = vld [vmem:[#allocation2 + $0xb1] sm:$0xff]  ;;  %v7189_v48 = vld [vmem:[#allocation2 + $0x20] sm:$0xff] }
 0x14a   :  { %v321_v22 = vmax.f32 %v271_v12, 0.0  ;;  %6230 = vmatpush3.bf16.msra.mxu1 %v7089_v33  ;;  %5574 = vmatprep.mubr.msk.f32.mxu1 %vm330_vm2, %v7124_v20  ;;  %v329_v23 = vmax.f32 %v311_v15, 0.0  ;;  %v7185_v45 = vld [vmem:[#allocation2 + $0x10] sm:$0xff]  ;;  %v7218_v57 = vld [vmem:[#allocation2 + $0xc0] sm:$0xff] }
 0x14b   :  { %v320_v24 = vmax.f32 %v266_v19, 0.0  ;;  %v328_v25 = vmax.f32 %v306_v21, 0.0  ;;  %6232 = vmatprep.subr.bf16.mxu1 %v6231_v11  ;;  %v7138_v29 = vld [vmem:[#allocation2 + $0x41] sm:$0xff]  ;;  %v7214_v56 = vld [vmem:[#allocation2 + $0xb0] sm:$0xff] }
 0x14c   :  { %380 = vst.msk [vmem:[#allocation2 + $0x81] sm:$0xff] %vm330_vm2, %v321_v22  ;;  %v7132_v28 = vld [vmem:[#allocation2 + $0x31] sm:$0xff]  ;;  %388 = vst.msk [vmem:[#allocation2 + $0x121] sm:$0xff] %vm330_vm2, %v329_v23  ;;  %v7168_v37 = vld [vmem:[#allocation2 + $0xe1] sm:$0xff] }
 0x14d   :  { %379 = vst.msk [vmem:[#allocation2 + $0x71] sm:$0xff] %vm330_vm2, %v320_v24  ;;  %5575 = vmatmul.mubr.msk.f32.gmra.mrb[10].mxu1 %vm330_vm2, %v7132_v28  ;;  %387 = vst.msk [vmem:[#allocation2 + $0x111] sm:$0xff] %vm330_vm2, %v328_v25  ;;  %v7164_v36 = vld [vmem:[#allocation2 + $0xd1] sm:$0xff]  ;;  %v7197_v51 = vld [vmem:[#allocation2 + $0x40] sm:$0xff] }
 0x14e   :  { %5577 = vmatprep.mubr.msk.f32.mxu1 %vm330_vm2, %v7138_v29  ;;  %6234 = vmatpush3.bf16.msra.mxu1 %v6231_v11  ;;  %v7193_v50 = vld [vmem:[#allocation2 + $0x30] sm:$0xff]  ;;  %v7226_v59 = vld [vmem:[#allocation2 + $0xe0] sm:$0xff] }
 0x14f   :  { %6236 = vmatprep.subr.bf16.mxu1 %v6235_v27  ;;  %v7147_v31 = vld [vmem:[#allocation2 + $0x61] sm:$0xff]  ;;  %v7222_v58 = vld [vmem:[#allocation2 + $0xd0] sm:$0xff] }
 0x150   :  { %v7143_v30 = vld [vmem:[#allocation2 + $0x51] sm:$0xff]  ;;  %v7176_v39 = vld [vmem:[#allocation2 + $0x101] sm:$0xff] }
 0x151   :  { %5578 = vmatmul.mubr.msk.f32.gmra.mrb[12].mxu1 %vm330_vm2, %v7143_v30  ;;  %v7172_v38 = vld [vmem:[#allocation2 + $0xf1] sm:$0xff]  ;;  %v7205_v53 = vld [vmem:[#allocation2 + $0x60] sm:$0xff] }
 0x152   :  { %5580 = vmatprep.mubr.msk.f32.mxu1 %vm330_vm2, %v7147_v31  ;;  %v7201_v52 = vld [vmem:[#allocation2 + $0x50] sm:$0xff]  ;;  %v7234_v61 = vld [vmem:[#allocation2 + $0x100] sm:$0xff] }
 0x153   :  { %v7230_v60 = vld [vmem:[#allocation2 + $0xf0] sm:$0xff]  ;;  %v1293_v4 = vld [vmem:[#allocation6 + $0x80] sm:$0xff]  ;;  %v1296_v24 = vld [vmem:[#allocation6 + $0x98] sm:$0xff] }
 0x154   :  { %v7151_v33 = vld [vmem:[#allocation2 + $0x71] sm:$0xff]  ;;  %v7247_v6 = vld [vmem:[#allocation2 + $0x22] sm:$0xff] }
 0x155   :  { %5581 = vmatmul.mubr.msk.f32.gmra.mrb[14].mxu1 %vm330_vm2, %v7151_v33  ;;  %v7180_v40 = vld [vmem:[#allocation2 + $0x111] sm:$0xff]  ;;  %v7255_v9 = vld [vmem:[#allocation2 + $0x42] sm:$0xff] }
 0x156   :  { %5583 = vmatprep.mubr.msk.f32.mxu1 %vm330_vm2, %v417_v32  ;;  %v7209_v55 = vld [vmem:[#allocation2 + $0x70] sm:$0xff]  ;;  %v7263_v11 = vld [vmem:[#allocation2 + $0x62] sm:$0xff] }
 0x157   :  { %v7238_v63 = vld [vmem:[#allocation2 + $0x110] sm:$0xff]  ;;  %v824_v12 = vld [vmem:[#allocation2 + $0xa2] sm:$0xff] }
 0x158   :  { %v7243_v3 = vld [vmem:[#allocation2 + $0x12] sm:$0xff]  ;;  %v1294_v5 = vld [vmem:[#allocation6 + $0x88] sm:$0xff]  ;;  %v7276_v16 = vld [vmem:[#allocation2 + $0xc2] sm:$0xff] }
 0x159   :  { %5584 = vmatmul.mubr.msk.f32.gmra.mrb[16].mxu1 %vm330_vm2, %v7156_v34  ;;  %v6251_v7 = vpack.c.bf16 %v1294_v5, %v1293_v4  ;;  %v7251_v8 = vld [vmem:[#allocation2 + $0x32] sm:$0xff]  ;;  %v7284_v18 = vld [vmem:[#allocation2 + $0xe2] sm:$0xff]  ;;  %v1524_v32 = vld [vmem:[#allocation6 + $0xa8] sm:$0xff] }
 0x15a   :  { %5586 = vmatprep.mubr.msk.f32.mxu1 %vm330_vm2, %v7160_v35  ;;  %v7259_v10 = vld [vmem:[#allocation2 + $0x52] sm:$0xff]  ;;  %v7292_v21 = vld [vmem:[#allocation2 + $0x102] sm:$0xff] }
 0x15b   :  { %v7267_v13 = vld [vmem:[#allocation2 + $0x72] sm:$0xff]  ;;  %v7314_v42 = vld [vmem:[#allocation2 + $0x80] sm:$0xff] }
 0x15c   :  { %v7272_v15 = vld [vmem:[#allocation2 + $0xb2] sm:$0xff]  ;;  %v7332_v43 = vld [vmem:[#allocation2 + $0x120] sm:$0xff] }
 0x15d   :  { %5587 = vmatmul.mubr.msk.f32.gmra.mrb[18].mxu1 %vm330_vm2, %v7164_v36  ;;  %v7280_v17 = vld [vmem:[#allocation2 + $0xd2] sm:$0xff]  ;;  %v1984_v5 = vld [vmem:[#allocation6 + $0xe0] sm:$0xff] }
 0x15e   :  { %5589 = vmatprep.mubr.msk.f32.mxu1 %vm330_vm2, %v7168_v37  ;;  %v7288_v19 = vld [vmem:[#allocation2 + $0xf2] sm:$0xff] }
 0x15f   :  { %v7296_v22 = vld [vmem:[#allocation2 + $0x112] sm:$0xff] }
 0x160   :  { %v1295_v23 = vld [vmem:[#allocation6 + $0x90] sm:$0xff] }
 0x161   :  { %5590 = vmatmul.mubr.msk.f32.gmra.mrb[20].mxu1 %vm330_vm2, %v7172_v38  ;;  %v6255_v25 = vpack.c.bf16 %v1296_v24, %v1295_v23  ;;  %v7404_v23 = vld [vmem:[#allocation2 + $0x122] sm:$0xff]  ;;  %v1987_v24 = vld [vmem:[#allocation6 + $0xf8] sm:$0xff] }
 0x162   :  { %5592 = vmatprep.mubr.msk.f32.mxu1 %vm330_vm2, %v7176_v39 }
 0x165   :  { %5593 = vmatmul.mubr.msk.f32.gmra.mrb[22].mxu1 %vm330_vm2, %v7180_v40 }
 0x166   :  { %5603 = vmatprep.mubr.msk.f32.mxu1 %vm330_vm2, %v389_v41 }
 0x169   :  { %5604 = vmatmul.mubr.msk.f32.vlgmr.msra.gmra.mrb[8].mxu1 %vm330_vm2, %v7185_v45 }
 0x16a   :  { %6238 = vmatpush3.bf16.msra.mxu1 %v6235_v27  ;;  %5606 = vmatprep.mubr.msk.f32.mxu1 %vm330_vm2, %v7189_v48  ;;  %v1523_v27 = vld [vmem:[#allocation6 + $0xa0] sm:$0xff] }
 0x16b   :  { %6240 = vmatprep.subr.bf16.mxu1 %v6239_v44  ;;  %v6259_v41 = vpack.c.bf16 %v1524_v32, %v1523_v27  ;;  %v2214_v27 = vld [vmem:[#allocation6 + $0x100] sm:$0xff]  ;;  %v2215_v32 = vld [vmem:[#allocation6 + $0x108] sm:$0xff] }
 0x16d   :  { %5607 = vmatmul.mubr.msk.f32.gmra.mrb[10].mxu1 %vm330_vm2, %v7193_v50 }
 0x16e   :  { %5609 = vmatprep.mubr.msk.f32.mxu1 %vm330_vm2, %v7197_v51  ;;  %6242 = vmatpush3.bf16.msra.mxu1 %v6239_v44  ;;  %v1525_v44 = vld [vmem:[#allocation6 + $0xb0] sm:$0xff] }
 0x16f   :  { %6244 = vmatprep.subr.bf16.mxu1 %v6243_v49 }
 0x171   :  { %5610 = vmatmul.mubr.msk.f32.gmra.mrb[12].mxu1 %vm330_vm2, %v7201_v52 }
 0x172   :  { %5612 = vmatprep.mubr.msk.f32.mxu1 %vm330_vm2, %v7205_v53 }
 0x175   :  { %5613 = vmatmul.mubr.msk.f32.gmra.mrb[14].mxu1 %vm330_vm2, %v7209_v55 }
 0x176   :  { %5615 = vmatprep.mubr.msk.f32.mxu1 %vm330_vm2, %v397_v54 }
 0x179   :  { %5616 = vmatmul.mubr.msk.f32.gmra.mrb[16].mxu1 %vm330_vm2, %v7214_v56 }
 0x17a   :  { %5618 = vmatprep.mubr.msk.f32.mxu1 %vm330_vm2, %v7218_v57 }
 0x17d   :  { %5619 = vmatmul.mubr.msk.f32.gmra.mrb[18].mxu1 %vm330_vm2, %v7222_v58 }
 0x17e   :  { %5621 = vmatprep.mubr.msk.f32.mxu1 %vm330_vm2, %v7226_v59 }
 0x181   :  { %5622 = vmatmul.mubr.msk.f32.gmra.mrb[20].mxu1 %vm330_vm2, %v7230_v60 }
 0x182   :  { %5624 = vmatprep.mubr.msk.f32.mxu1 %vm330_vm2, %v7234_v61 }
 0x185   :  { %5625 = vmatmul.mubr.msk.f32.gmra.mrb[22].mxu1 %vm330_vm2, %v7238_v63 }
 0x186   :  { %5635 = vmatprep.mubr.msk.f32.mxu1 %vm330_vm2, %v816_v62  ;;  %v1757_v62 = vld [vmem:[#allocation6 + $0xd8] sm:$0xff] }
 0x189   :  { %5636 = vmatmul.mubr.msk.f32.vlgmr.msra.gmra.mrb[8].mxu1 %vm330_vm2, %v7243_v3 }
 0x18a   :  { %6246 = vmatpush3.bf16.msra.mxu1 %v6243_v49  ;;  %5638 = vmatprep.mubr.msk.f32.mxu1 %vm330_vm2, %v7247_v6  ;;  %v1755_v49 = vld [vmem:[#allocation6 + $0xc8] sm:$0xff] }
 0x18b   :  { %6248 = vmatprep.subr.bf16.mxu1 %v6247_v2  ;;  %v6267_v54 = vpack.c.bf16 %v1755_v49, %v1754_v47 }
 0x18d   :  { %5639 = vmatmul.mubr.msk.f32.gmra.mrb[10].mxu1 %vm330_vm2, %v7251_v8 }
 0x18e   :  { %5641 = vmatprep.mubr.msk.f32.mxu1 %vm330_vm2, %v7255_v9  ;;  %6250 = vmatpush3.bf16.msra.mxu1 %v6247_v2  ;;  %v6291_v2 = vpack.c.bf16 %v2567_v1, %v2566_v0  ;;  %v2546_v0 = vld [vmem:[#allocation9 + $0x28] sm:$0xff] }
 0x18f   :  { %6252 = vmatprep.subr.bf16.mxu1 %v6251_v7 }
 0x190   :  { %6292 = vmatprep.subr.bf16.mxu0 %v6291_v2 }
 0x191   :  { %5642 = vmatmul.mubr.msk.f32.gmra.mrb[12].mxu1 %vm330_vm2, %v7259_v10  ;;  %6294 = vmatpush3.bf16.msra.mxu0 %v6291_v2 }
 0x192   :  { %5644 = vmatprep.mubr.msk.f32.mxu1 %vm330_vm2, %v7263_v11 }
 0x195   :  { %5645 = vmatmul.mubr.msk.f32.gmra.mrb[14].mxu1 %vm330_vm2, %v7267_v13 }
 0x196   :  { %5647 = vmatprep.mubr.msk.f32.mxu1 %vm330_vm2, %v824_v12 }
 0x199   :  { %5648 = vmatmul.mubr.msk.f32.gmra.mrb[16].mxu1 %vm330_vm2, %v7272_v15 }
 0x19a   :  { %5650 = vmatprep.mubr.msk.f32.mxu1 %vm330_vm2, %v7276_v16 }
 0x19d   :  { %5651 = vmatmul.mubr.msk.f32.gmra.mrb[18].mxu1 %vm330_vm2, %v7280_v17 }
 0x19e   :  { %5653 = vmatprep.mubr.msk.f32.mxu1 %vm330_vm2, %v7284_v18 }
 0x1a1   :  { %5654 = vmatmul.mubr.msk.f32.gmra.mrb[20].mxu1 %vm330_vm2, %v7288_v19 }
 0x1a2   :  { %5656 = vmatprep.mubr.msk.f32.mxu1 %vm330_vm2, %v7292_v21 }
 0x1a5   :  { %5657 = vmatmul.mubr.msk.f32.gmra.mrb[22].mxu1 %vm330_vm2, %v7296_v22 }
 0x1a6   :  { %5667 = vmatprep.mubr.msk.f32.mxu1 %vm330_vm2, %v7185_v45  ;;  %v1526_v45 = vld [vmem:[#allocation6 + $0xb8] sm:$0xff] }
 0x1a7   :  { %v6263_v46 = vpack.c.bf16 %v1526_v45, %v1525_v44  ;;  %v2544_v44 = vld [vmem:[#allocation9 + $0x18] sm:$0xff] }
 0x1a9   :  { %5668 = vmatmul.mubr.msk.f32.vlgmr.msra.gmra.mrb[8].mxu1 %vm330_vm2, %v7189_v48 }
 0x1aa   :  { %6254 = vmatpush3.bf16.msra.mxu1 %v6251_v7  ;;  %5670 = vmatprep.mubr.msk.f32.mxu1 %vm330_vm2, %v7193_v50  ;;  %v1985_v7 = vld [vmem:[#allocation6 + $0xe8] sm:$0xff] }
 0x1ab   :  { %6256 = vmatprep.subr.bf16.mxu1 %v6255_v25  ;;  %v6275_v12 = vpack.c.bf16 %v1985_v7, %v1984_v5 }
 0x1ad   :  { %5671 = vmatmul.mubr.msk.f32.gmra.mrb[10].mxu1 %vm330_vm2, %v7197_v51 }
 0x1ae   :  { %5673 = vmatprep.mubr.msk.f32.mxu1 %vm330_vm2, %v7201_v52  ;;  %6258 = vmatpush3.bf16.msra.mxu1 %v6255_v25 }
 0x1af   :  { %6260 = vmatprep.subr.bf16.mxu1 %v6259_v41 }
 0x1b1   :  { %5674 = vmatmul.mubr.msk.f32.gmra.mrb[12].mxu1 %vm330_vm2, %v7205_v53 }
 0x1b2   :  { %5676 = vmatprep.mubr.msk.f32.mxu1 %vm330_vm2, %v7209_v55 }
 0x1b5   :  { %5677 = vmatmul.mubr.msk.f32.gmra.mrb[14].mxu1 %vm330_vm2, %v7314_v42 }
 0x1b6   :  { %5679 = vmatprep.mubr.msk.f32.mxu1 %vm330_vm2, %v7214_v56  ;;  %v7368_v56 = vld [vmem:[#allocation2 + $0x121] sm:$0xff] }
 0x1b9   :  { %5680 = vmatmul.mubr.msk.f32.gmra.mrb[16].mxu1 %vm330_vm2, %v7218_v57 }
 0x1ba   :  { %5682 = vmatprep.mubr.msk.f32.mxu1 %vm330_vm2, %v7222_v58 }
 0x1bd   :  { %5683 = vmatmul.mubr.msk.f32.gmra.mrb[18].mxu1 %vm330_vm2, %v7226_v59 }
 0x1be   :  { %5685 = vmatprep.mubr.msk.f32.mxu1 %vm330_vm2, %v7230_v60 }
 0x1c1   :  { %5686 = vmatmul.mubr.msk.f32.gmra.mrb[20].mxu1 %vm330_vm2, %v7234_v61 }
 0x1c2   :  { %5688 = vmatprep.mubr.msk.f32.mxu1 %vm330_vm2, %v7238_v63 }
 0x1c5   :  { %5689 = vmatmul.mubr.msk.f32.gmra.mrb[22].mxu1 %vm330_vm2, %v7332_v43 }
 0x1c6   :  { %5699 = vmatprep.mubr.msk.f32.mxu1 %vm330_vm2, %v7116_v14  ;;  %v7350_v14 = vld [vmem:[#allocation2 + $0x81] sm:$0xff] }
 0x1c9   :  { %5700 = vmatmul.mubr.msk.f32.vlgmr.msra.gmra.mrb[8].mxu1 %vm330_vm2, %v7124_v20 }
 0x1ca   :  { %6262 = vmatpush3.bf16.msra.mxu1 %v6259_v41  ;;  %5702 = vmatprep.mubr.msk.f32.mxu1 %vm330_vm2, %v7132_v28  ;;  %v6283_v41 = vpack.c.bf16 %v2215_v32, %v2214_v27 }
 0x1cb   :  { %6264 = vmatprep.subr.bf16.mxu1 %v6263_v46 }
 0x1cd   :  { %5703 = vmatmul.mubr.msk.f32.gmra.mrb[10].mxu1 %vm330_vm2, %v7138_v29 }
 0x1ce   :  { %5705 = vmatprep.mubr.msk.f32.mxu1 %vm330_vm2, %v7143_v30  ;;  %6266 = vmatpush3.bf16.msra.mxu1 %v6263_v46 }
 0x1cf   :  { %6268 = vmatprep.subr.bf16.mxu1 %v6267_v54 }
 0x1d1   :  { %5706 = vmatmul.mubr.msk.f32.gmra.mrb[12].mxu1 %vm330_vm2, %v7147_v31 }
 0x1d2   :  { %5708 = vmatprep.mubr.msk.f32.mxu1 %vm330_vm2, %v7151_v33 }
 0x1d5   :  { %5709 = vmatmul.mubr.msk.f32.gmra.mrb[14].mxu1 %vm330_vm2, %v7350_v14 }
 0x1d6   :  { %5711 = vmatprep.mubr.msk.f32.mxu1 %vm330_vm2, %v7156_v34  ;;  %v1756_v34 = vld [vmem:[#allocation6 + $0xd0] sm:$0xff] }
 0x1d7   :  { %v6271_v4 = vpack.c.bf16 %v1757_v62, %v1756_v34  ;;  %v2545_v62 = vld [vmem:[#allocation9 + $0x20] sm:$0xff] }
 0x1d9   :  { %5712 = vmatmul.mubr.msk.f32.gmra.mrb[16].mxu1 %vm330_vm2, %v7160_v35 }
 0x1da   :  { %5714 = vmatprep.mubr.msk.f32.mxu1 %vm330_vm2, %v7164_v36 }
 0x1dd   :  { %5715 = vmatmul.mubr.msk.f32.gmra.mrb[18].mxu1 %vm330_vm2, %v7168_v37 }
 0x1de   :  { %5717 = vmatprep.mubr.msk.f32.mxu1 %vm330_vm2, %v7172_v38 }
 0x1e1   :  { %5718 = vmatmul.mubr.msk.f32.gmra.mrb[20].mxu1 %vm330_vm2, %v7176_v39 }
 0x1e2   :  { %5720 = vmatprep.mubr.msk.f32.mxu1 %vm330_vm2, %v7180_v40 }
 0x1e5   :  { %5721 = vmatmul.mubr.msk.f32.gmra.mrb[22].mxu1 %vm330_vm2, %v7368_v56 }
 0x1e6   :  { %5731 = vmatprep.mubr.msk.f32.mxu1 %vm330_vm2, %v7243_v3  ;;  %v7386_v3 = vld [vmem:[#allocation2 + $0x82] sm:$0xff] }
 0x1e9   :  { %5732 = vmatmul.mubr.msk.f32.vlgmr.msra.gmra.mrb[8].mxu1 %vm330_vm2, %v7247_v6 }
 0x1ea   :  { %6270 = vmatpush3.bf16.msra.mxu1 %v6267_v54  ;;  %5734 = vmatprep.mubr.msk.f32.mxu1 %vm330_vm2, %v7251_v8 }
 0x1eb   :  { %6272 = vmatprep.subr.bf16.mxu1 %v6271_v4 }
 0x1ed   :  { %5735 = vmatmul.mubr.msk.f32.gmra.mrb[10].mxu1 %vm330_vm2, %v7255_v9 }
 0x1ee   :  { %5737 = vmatprep.mubr.msk.f32.mxu1 %vm330_vm2, %v7259_v10  ;;  %6274 = vmatpush3.bf16.msra.mxu1 %v6271_v4 }
 0x1ef   :  { %6276 = vmatprep.subr.bf16.mxu1 %v6275_v12 }
 0x1f1   :  { %5738 = vmatmul.mubr.msk.f32.gmra.mrb[12].mxu1 %vm330_vm2, %v7263_v11 }
 0x1f2   :  { %5740 = vmatprep.mubr.msk.f32.mxu1 %vm330_vm2, %v7267_v13 }
 0x1f5   :  { %5741 = vmatmul.mubr.msk.f32.gmra.mrb[14].mxu1 %vm330_vm2, %v7386_v3 }
 0x1f6   :  { %5743 = vmatprep.mubr.msk.f32.mxu1 %vm330_vm2, %v7272_v15  ;;  %v1986_v15 = vld [vmem:[#allocation6 + $0xf0] sm:$0xff] }
 0x1f7   :  { %v6279_v25 = vpack.c.bf16 %v1987_v24, %v1986_v15  ;;  %v2547_v24 = vld [vmem:[#allocation9 + $0x30] sm:$0xff] }
 0x1f9   :  { %5744 = vmatmul.mubr.msk.f32.gmra.mrb[16].mxu1 %vm330_vm2, %v7276_v16 }
 0x1fa   :  { %5746 = vmatprep.mubr.msk.f32.mxu1 %vm330_vm2, %v7280_v17 }
 0x1fd   :  { %5747 = vmatmul.mubr.msk.f32.gmra.mrb[18].mxu1 %vm330_vm2, %v7284_v18 }
 0x1fe   :  { %5749 = vmatprep.mubr.msk.f32.mxu1 %vm330_vm2, %v7288_v19 }
 0x201   :  { %5750 = vmatmul.mubr.msk.f32.gmra.mrb[20].mxu1 %vm330_vm2, %v7292_v21 }
 0x202   :  { %5752 = vmatprep.mubr.msk.f32.mxu1 %vm330_vm2, %v7296_v22 }
 0x205   :  { %5753 = vmatmul.mubr.msk.f32.gmra.mrb[22].mxu1 %vm330_vm2, %v7404_v23 }
 0x206   :  { %5763 = vmatprep.mubr.msk.f32.mxu1 %vm330_vm2, %v7189_v48  ;;  %v1744_v48 = vld [vmem:[#allocation2 + $0x90] sm:$0xff] }
 0x209   :  { %5764 = vmatmul.mubr.msk.f32.vlgmr.msra.gmra.mrb[8].mxu1 %vm330_vm2, %v7193_v50  ;;  %v1752_v50 = vld [vmem:[#allocation2 + $0x130] sm:$0xff] }
 0x20a   :  { %6278 = vmatpush3.bf16.msra.mxu1 %v6275_v12  ;;  %5766 = vmatprep.mubr.msk.f32.mxu1 %vm330_vm2, %v7197_v51  ;;  %v2216_v51 = vld [vmem:[#allocation6 + $0x110] sm:$0xff]  ;;  %v6315_v12 = vpack.c.bf16 %v2546_v0, %v2545_v62 }
 0x20b   :  { %6280 = vmatprep.subr.bf16.mxu1 %v6279_v25 }
 0x20d   :  { %5767 = vmatmul.mubr.msk.f32.gmra.mrb[10].mxu1 %vm330_vm2, %v7201_v52  ;;  %v2217_v52 = vld [vmem:[#allocation6 + $0x118] sm:$0xff] }
 0x20e   :  { %5769 = vmatprep.mubr.msk.f32.mxu1 %vm330_vm2, %v7205_v53  ;;  %6282 = vmatpush3.bf16.msra.mxu1 %v6279_v25  ;;  %v6287_v53 = vpack.c.bf16 %v2217_v52, %v2216_v51  ;;  %v2548_v25 = vld [vmem:[#allocation9 + $0x38] sm:$0xff] }
 0x20f   :  { %6284 = vmatprep.subr.bf16.mxu1 %v6283_v41  ;;  %v6319_v51 = vpack.c.bf16 %v2548_v25, %v2547_v24 }
 0x211   :  { %5770 = vmatmul.mubr.msk.f32.gmra.mrb[12].mxu1 %vm330_vm2, %v7209_v55 }
 0x212   :  { %5772 = vmatprep.mubr.msk.f32.mxu1 %vm330_vm2, %v7314_v42 }
 0x215   :  { %5773 = vmatmul.mubr.msk.f32.gmra.mrb[14].mxu1 %vm330_vm2, %v1744_v48 }
 0x216   :  { %5775 = vmatprep.mubr.msk.f32.mxu1 %vm330_vm2, %v7218_v57  ;;  %v2549_v57 = vld [vmem:[#allocation3 + $0x1] sm:$0xff] }
 0x217   :  { %5867 = vmatprep.mubr.msk.f32.mxu0 %vm2466_vm4, %v2549_v57 }
 0x219   :  { %5776 = vmatmul.mubr.msk.f32.gmra.mrb[16].mxu1 %vm330_vm2, %v7222_v58  ;;  %v2541_v58 = vld [vmem:[#allocation9] sm:$0xff] }
 0x21a   :  { %5778 = vmatprep.mubr.msk.f32.mxu1 %vm330_vm2, %v7226_v59  ;;  %v2542_v59 = vld [vmem:[#allocation9 + $0x8] sm:$0xff] }
 0x21d   :  { %5779 = vmatmul.mubr.msk.f32.gmra.mrb[18].mxu1 %vm330_vm2, %v7230_v60  ;;  %v6307_v60 = vpack.c.bf16 %v2542_v59, %v2541_v58 }
 0x21e   :  { %5781 = vmatprep.mubr.msk.f32.mxu1 %vm330_vm2, %v7234_v61 }
 0x221   :  { %5782 = vmatmul.mubr.msk.f32.gmra.mrb[20].mxu1 %vm330_vm2, %v7238_v63 }
 0x222   :  { %5784 = vmatprep.mubr.msk.f32.mxu1 %vm330_vm2, %v7332_v43  ;;  %v2543_v43 = vld [vmem:[#allocation9 + $0x10] sm:$0xff] }
 0x223   :  { %v6311_v54 = vpack.c.bf16 %v2544_v44, %v2543_v43  ;;  %v2981_v44 = vld [vmem:[#allocation9 + $0xa0] sm:$0xff] }
 0x225   :  { %5785 = vmatmul.mubr.msk.f32.gmra.mrb[22].mxu1 %vm330_vm2, %v1752_v50 }
 0x226   :  { %5795 = vmatprep.mubr.msk.f32.mxu1 %vm330_vm2, %v7124_v20  ;;  %v1974_v20 = vld [vmem:[#allocation2 + $0x91] sm:$0xff] }
 0x229   :  { %5796 = vmatmul.mubr.msk.f32.vlgmr.msra.gmra.mrb[8].mxu1 %vm330_vm2, %v7132_v28  ;;  %v1982_v28 = vld [vmem:[#allocation2 + $0x131] sm:$0xff] }
 0x22a   :  { %6286 = vmatpush3.bf16.msra.mxu1 %v6283_v41  ;;  %5798 = vmatprep.mubr.msk.f32.mxu1 %vm330_vm2, %v7138_v29  ;;  %v2204_v29 = vld [vmem:[#allocation2 + $0x92] sm:$0xff] }
 0x22b   :  { %6288 = vmatprep.subr.bf16.mxu1 %v6287_v53 }
 0x22d   :  { %5799 = vmatmul.mubr.msk.f32.gmra.mrb[10].mxu1 %vm330_vm2, %v7143_v30  ;;  %v2212_v30 = vld [vmem:[#allocation2 + $0x132] sm:$0xff] }
 0x22e   :  { %5801 = vmatprep.mubr.msk.f32.mxu1 %vm330_vm2, %v7147_v31  ;;  %6290 = vmatpush3.bf16.msra.mxu1 %v6287_v53  ;;  %v2568_v31 = vld [vmem:[#allocation9 + $0x50] sm:$0xff] }
 0x231   :  { %5802 = vmatmul.mubr.msk.f32.gmra.mrb[12].mxu1 %vm330_vm2, %v7151_v33  ;;  %v2569_v33 = vld [vmem:[#allocation9 + $0x58] sm:$0xff] }
 0x232   :  { %5804 = vmatprep.mubr.msk.f32.mxu1 %vm330_vm2, %v7350_v14 }
 0x235   :  { %5805 = vmatmul.mubr.msk.f32.gmra.mrb[14].mxu1 %vm330_vm2, %v1974_v20 }
 0x236   :  { %5807 = vmatprep.mubr.msk.f32.mxu1 %vm330_vm2, %v7160_v35  ;;  %v6295_v35 = vpack.c.bf16 %v2569_v33, %v2568_v31 }
 0x238   :  { %6296 = vmatprep.subr.bf16.mxu0 %v6295_v35 }
 0x239   :  { %5808 = vmatmul.mubr.msk.f32.gmra.mrb[16].mxu1 %vm330_vm2, %v7164_v36  ;;  %6298 = vmatpush3.bf16.msra.mxu0 %v6295_v35  ;;  %v2570_v36 = vld [vmem:[#allocation9 + $0x60] sm:$0xff] }
 0x23a   :  { %5810 = vmatprep.mubr.msk.f32.mxu1 %vm330_vm2, %v7168_v37  ;;  %v2571_v37 = vld [vmem:[#allocation9 + $0x68] sm:$0xff] }
 0x23d   :  { %5811 = vmatmul.mubr.msk.f32.gmra.mrb[18].mxu1 %vm330_vm2, %v7172_v38  ;;  %v6299_v38 = vpack.c.bf16 %v2571_v37, %v2570_v36  ;;  %v2557_v37 = vld [vmem:[#allocation3 + $0xa1] sm:$0xff] }
 0x23e   :  { %5813 = vmatprep.mubr.msk.f32.mxu1 %vm330_vm2, %v7176_v39  ;;  %v2572_v39 = vld [vmem:[#allocation9 + $0x70] sm:$0xff] }
 0x23f   :  { %6300 = vmatprep.subr.bf16.mxu0 %v6299_v38 }
 0x240   :  { %6302 = vmatpush3.bf16.msra.mxu0 %v6299_v38 }
 0x241   :  { %5814 = vmatmul.mubr.msk.f32.gmra.mrb[20].mxu1 %vm330_vm2, %v7180_v40  ;;  %v2573_v40 = vld [vmem:[#allocation9 + $0x78] sm:$0xff] }
 0x242   :  { %5816 = vmatprep.mubr.msk.f32.mxu1 %vm330_vm2, %v7368_v56  ;;  %v6303_v55 = vpack.c.bf16 %v2573_v40, %v2572_v39 }
 0x244   :  { %6304 = vmatprep.subr.bf16.mxu0 %v6303_v55 }
 0x245   :  { %5817 = vmatmul.mubr.msk.f32.gmra.mrb[22].mxu1 %vm330_vm2, %v1982_v28  ;;  %6306 = vmatpush3.bf16.msra.mxu0 %v6303_v55  ;;  %v2977_v28 = vld [vmem:[#allocation9 + $0x80] sm:$0xff] }
 0x246   :  { %5827 = vmatprep.mubr.msk.f32.mxu1 %vm330_vm2, %v7247_v6  ;;  %6308 = vmatprep.subr.bf16.mxu0 %v6307_v60 }
 0x249   :  { %5828 = vmatmul.mubr.msk.f32.vlgmr.msra.gmra.mrb[8].mxu1 %vm330_vm2, %v7251_v8 }
 0x24a   :  { %5830 = vmatprep.mubr.msk.f32.mxu1 %vm330_vm2, %v7255_v9 }
 0x24d   :  { %5831 = vmatmul.mubr.msk.f32.gmra.mrb[10].mxu1 %vm330_vm2, %v7259_v10 }
 0x24e   :  { %5833 = vmatprep.mubr.msk.f32.mxu1 %vm330_vm2, %v7263_v11 }
 0x251   :  { %5834 = vmatmul.mubr.msk.f32.gmra.mrb[12].mxu1 %vm330_vm2, %v7267_v13 }
 0x252   :  { %5836 = vmatprep.mubr.msk.f32.mxu1 %vm330_vm2, %v7386_v3 }
 0x255   :  { %5837 = vmatmul.mubr.msk.f32.gmra.mrb[14].mxu1 %vm330_vm2, %v2204_v29  ;;  %v2978_v29 = vld [vmem:[#allocation9 + $0x88] sm:$0xff] }
 0x256   :  { %5839 = vmatprep.mubr.msk.f32.mxu1 %vm330_vm2, %v7276_v16  ;;  %v6323_v38 = vpack.c.bf16 %v2978_v29, %v2977_v28 }
 0x259   :  { %5840 = vmatmul.mubr.msk.f32.gmra.mrb[16].mxu1 %vm330_vm2, %v7280_v17 }
 0x25a   :  { %5842 = vmatprep.mubr.msk.f32.mxu1 %vm330_vm2, %v7284_v18 }
 0x25d   :  { %5843 = vmatmul.mubr.msk.f32.gmra.mrb[18].mxu1 %vm330_vm2, %v7288_v19 }
 0x25e   :  { %5845 = vmatprep.mubr.msk.f32.mxu1 %vm330_vm2, %v7292_v21 }
 0x261   :  { %5846 = vmatmul.mubr.msk.f32.gmra.mrb[20].mxu1 %vm330_vm2, %v7296_v22 }
 0x262   :  { %5848 = vmatprep.mubr.msk.f32.mxu1 %vm330_vm2, %v7404_v23 }
 0x265   :  { %5849 = vmatmul.mubr.msk.f32.gmra.mrb[22].mxu1 %vm330_vm2, %v2212_v30 }
 0x31c   :  { %v5829_v61 = vpop.f32.mrb[8].mxu1 }
 0x31d   :  { %v2435_v63 = vadd.f32 %v5829_v61, %v7579_v26  ;;  %v2332_v6 = vpop.f32.mrb[9].mxu1 }
 0x31e   :  { %v2434_v8 = vadd.f32 %v7579_v26, %v2332_v6 }
 0x31f   :  { %v2451_v9 = vmax.f32 %v2435_v63, 0.0 }
 0x320   :  { %v2450_v10 = vmax.f32 %v2434_v8, 0.0  ;;  %v5832_v11 = vpop.f32.mrb[10].mxu1 }
 0x321   :  { %2510 = vst.msk [vmem:[#allocation3 + $0x21] sm:$0xff] %vm2466_vm4, %v2451_v9  ;;  %v2437_v13 = vadd.f32 %v5832_v11, %v7579_v26  ;;  %v2342_v16 = vpop.f32.mrb[11].mxu1 }
 0x322   :  { %2509 = vst.msk [vmem:[#allocation3 + $0x11] sm:$0xff] %vm2466_vm4, %v2450_v10  ;;  %v2436_v17 = vadd.f32 %v7579_v26, %v2342_v16 }
 0x323   :  { %v2453_v18 = vmax.f32 %v2437_v13, 0.0 }
 0x324   :  { %v2452_v19 = vmax.f32 %v2436_v17, 0.0  ;;  %v5835_v21 = vpop.f32.mrb[12].mxu1 }
 0x325   :  { %2512 = vst.msk [vmem:[#allocation3 + $0x41] sm:$0xff] %vm2466_vm4, %v2453_v18  ;;  %v2439_v22 = vadd.f32 %v5835_v21, %v7579_v26  ;;  %v2352_v42 = vpop.f32.mrb[13].mxu1  ;;  %v2525_v18 = vld [vmem:[#allocation3] sm:$0xff]  ;;  %v2979_v21 = vld [vmem:[#allocation9 + $0x90] sm:$0xff] }
 0x326   :  { %2511 = vst.msk [vmem:[#allocation3 + $0x31] sm:$0xff] %vm2466_vm4, %v2452_v19  ;;  %v2438_v45 = vadd.f32 %v7579_v26, %v2352_v42 }
 0x327   :  { %v2455_v46 = vmax.f32 %v2439_v22, 0.0  ;;  %v2980_v22 = vld [vmem:[#allocation9 + $0x98] sm:$0xff] }
 0x328   :  { %v2454_v47 = vmax.f32 %v2438_v45, 0.0  ;;  %v5838_v49 = vpop.f32.mrb[14].mxu1  ;;  %v7599_v2 = vld [vmem:[#allocation3 + $0x21] sm:$0xff]  ;;  %v6327_v42 = vpack.c.bf16 %v2980_v22, %v2979_v21  ;;  %v2982_v45 = vld [vmem:[#allocation9 + $0xa8] sm:$0xff] }
 0x329   :  { %2514 = vst.msk [vmem:[#allocation3 + $0x61] sm:$0xff] %vm2466_vm4, %v2455_v46  ;;  %v2441_v14 = vadd.f32 %v5838_v49, %v7579_v26  ;;  %v2362_v56 = vpop.f32.mrb[15].mxu1  ;;  %v7593_v34 = vld [vmem:[#allocation3 + $0x11] sm:$0xff]  ;;  %v7675_v46 = vld [vmem:[#allocation3 + $0x20] sm:$0xff] }
 0x32a   :  { %2513 = vst.msk [vmem:[#allocation3 + $0x51] sm:$0xff] %vm2466_vm4, %v2454_v47  ;;  %v2440_v1 = vadd.f32 %v7579_v26, %v2362_v56  ;;  %5868 = vmatmul.mubr.msk.f32.vlgmr.msra.gmra.mrb[8].mxu0 %vm2466_vm4, %v7593_v34  ;;  %v7671_v43 = vld [vmem:[#allocation3 + $0x10] sm:$0xff]  ;;  %v6331_v47 = vpack.c.bf16 %v2982_v45, %v2981_v44 }
 0x32b   :  { %v2457_v4 = vmax.f32 %v2441_v14, 0.0  ;;  %6310 = vmatpush3.bf16.msra.mxu0 %v6307_v60  ;;  %5870 = vmatprep.mubr.msk.f32.mxu0 %vm2466_vm4, %v7599_v2  ;;  %v2984_v14 = vld [vmem:[#allocation9 + $0xb8] sm:$0xff]  ;;  %v7729_v29 = vld [vmem:[#allocation3 + $0x12] sm:$0xff] }
 0x32c   :  { %v2456_v5 = vmax.f32 %v2440_v1, 0.0  ;;  %v5841_v7 = vpop.f32.mrb[16].mxu1  ;;  %6312 = vmatprep.subr.bf16.mxu0 %v6311_v54  ;;  %v7611_v32 = vld [vmem:[#allocation3 + $0x41] sm:$0xff] }
 0x32d   :  { %2516 = vst.msk [vmem:[#allocation3 + $0x81] sm:$0xff] %vm2466_vm4, %v2457_v4  ;;  %v2443_v3 = vadd.f32 %v5841_v7, %v7579_v26  ;;  %v2372_v23 = vpop.f32.mrb[17].mxu1  ;;  %v7605_v15 = vld [vmem:[#allocation3 + $0x31] sm:$0xff]  ;;  %v7683_v56 = vld [vmem:[#allocation3 + $0x40] sm:$0xff] }
 0x32e   :  { %2515 = vst.msk [vmem:[#allocation3 + $0x71] sm:$0xff] %vm2466_vm4, %v2456_v5  ;;  %v2442_v27 = vadd.f32 %v7579_v26, %v2372_v23  ;;  %5871 = vmatmul.mubr.msk.f32.gmra.mrb[10].mxu0 %vm2466_vm4, %v7605_v15  ;;  %v7679_v49 = vld [vmem:[#allocation3 + $0x30] sm:$0xff]  ;;  %v3211_v1 = vld [vmem:[#allocation9 + $0xc0] sm:$0xff] }
 0x32f   :  { %v2459_v41 = vmax.f32 %v2443_v3, 0.0  ;;  %5873 = vmatprep.mubr.msk.f32.mxu0 %vm2466_vm4, %v7611_v32  ;;  %6314 = vmatpush3.bf16.msra.mxu0 %v6311_v54  ;;  %v2983_v54 = vld [vmem:[#allocation9 + $0xb0] sm:$0xff]  ;;  %v3212_v4 = vld [vmem:[#allocation9 + $0xc8] sm:$0xff]  ;;  %v2533_v7 = vld [vmem:[#allocation3 + $0xa0] sm:$0xff] }
 0x330   :  { %v2458_v48 = vmax.f32 %v2442_v27, 0.0  ;;  %v5844_v50 = vpop.f32.mrb[18].mxu1  ;;  %6316 = vmatprep.subr.bf16.mxu0 %v6315_v12  ;;  %v7623_v31 = vld [vmem:[#allocation3 + $0x61] sm:$0xff]  ;;  %v6335_v62 = vpack.c.bf16 %v2984_v14, %v2983_v54 }
 0x331   :  { %2518 = vst.msk [vmem:[#allocation3 + $0xc1] sm:$0xff] %vm2466_vm4, %v2459_v41  ;;  %v2445_v52 = vadd.f32 %v5844_v50, %v7579_v26  ;;  %v2382_v53 = vpop.f32.mrb[19].mxu1  ;;  %v7617_v20 = vld [vmem:[#allocation3 + $0x51] sm:$0xff]  ;;  %v7691_v5 = vld [vmem:[#allocation3 + $0x60] sm:$0xff] }
 0x332   :  { %2517 = vst.msk [vmem:[#allocation3 + $0xb1] sm:$0xff] %vm2466_vm4, %v2458_v48  ;;  %v2444_v30 = vadd.f32 %v7579_v26, %v2382_v53  ;;  %5874 = vmatmul.mubr.msk.f32.gmra.mrb[12].mxu0 %vm2466_vm4, %v7617_v20  ;;  %v7687_v0 = vld [vmem:[#allocation3 + $0x50] sm:$0xff]  ;;  %v2960_v50 = vld [vmem:[#allocation3 + $0x2] sm:$0xff] }
 0x333   :  { %v2461_v33 = vmax.f32 %v2445_v52, 0.0  ;;  %5876 = vmatprep.mubr.msk.f32.mxu0 %vm2466_vm4, %v7623_v31  ;;  %6318 = vmatpush3.bf16.msra.mxu0 %v6315_v12  ;;  %v6339_v12 = vpack.c.bf16 %v3212_v4, %v3211_v1  ;;  %v3213_v52 = vld [vmem:[#allocation9 + $0xd0] sm:$0xff]  ;;  %v3214_v53 = vld [vmem:[#allocation9 + $0xd8] sm:$0xff]  ;;  %v3450_v1 = vld [vmem:[#allocation9 + $0x128] sm:$0xff] }
 0x334   :  { %v2460_v35 = vmax.f32 %v2444_v30, 0.0  ;;  %v5847_v36 = vpop.f32.mrb[20].mxu1  ;;  %6320 = vmatprep.subr.bf16.mxu0 %v6319_v51  ;;  %v6343_v28 = vpack.c.bf16 %v3214_v53, %v3213_v52  ;;  %v3215_v30 = vld [vmem:[#allocation9 + $0xe0] sm:$0xff]  ;;  %v3448_v54 = vld [vmem:[#allocation9 + $0x118] sm:$0xff]  ;;  %v3680_v52 = vld [vmem:[#allocation9 + $0x148] sm:$0xff] }
 0x335   :  { %2520 = vst.msk [vmem:[#allocation3 + $0xe1] sm:$0xff] %vm2466_vm4, %v2461_v33  ;;  %v2447_v39 = vadd.f32 %v5847_v36, %v7579_v26  ;;  %v2392_v40 = vpop.f32.mrb[21].mxu1  ;;  %v7629_v55 = vld [vmem:[#allocation3 + $0x71] sm:$0xff] }
 0x336   :  { %2519 = vst.msk [vmem:[#allocation3 + $0xd1] sm:$0xff] %vm2466_vm4, %v2460_v35  ;;  %v2446_v57 = vadd.f32 %v7579_v26, %v2392_v40  ;;  %5877 = vmatmul.mubr.msk.f32.gmra.mrb[14].mxu0 %vm2466_vm4, %v7629_v55  ;;  %v7695_v3 = vld [vmem:[#allocation3 + $0x70] sm:$0xff]  ;;  %v7733_v35 = vld [vmem:[#allocation3 + $0x22] sm:$0xff] }
 0x337   :  { %v2463_v58 = vmax.f32 %v2447_v39, 0.0  ;;  %5879 = vmatprep.mubr.msk.f32.mxu0 %vm2466_vm4, %v2557_v37  ;;  %6322 = vmatpush3.bf16.msra.mxu0 %v6319_v51  ;;  %v3216_v33 = vld [vmem:[#allocation9 + $0xe8] sm:$0xff]  ;;  %v3218_v39 = vld [vmem:[#allocation9 + $0xf8] sm:$0xff] }
 0x338   :  { %v2462_v59 = vmax.f32 %v2446_v57, 0.0  ;;  %v5850_v60 = vpop.f32.mrb[22].mxu1  ;;  %6324 = vmatprep.subr.bf16.mxu0 %v6323_v38  ;;  %v7644_v9 = vld [vmem:[#allocation3 + $0xc1] sm:$0xff]  ;;  %v6347_v36 = vpack.c.bf16 %v3216_v33, %v3215_v30  ;;  %v7737_v37 = vld [vmem:[#allocation3 + $0x32] sm:$0xff] }
 0x339   :  { %2522 = vst.msk [vmem:[#allocation3 + $0x101] sm:$0xff] %vm2466_vm4, %v2463_v58  ;;  %v2449_v61 = vadd.f32 %v5850_v60, %v7579_v26  ;;  %v2402_v63 = vpop.f32.mrb[23].mxu1  ;;  %v7638_v6 = vld [vmem:[#allocation3 + $0xb1] sm:$0xff]  ;;  %v7704_v24 = vld [vmem:[#allocation3 + $0xc0] sm:$0xff] }
 0x33a   :  { %2521 = vst.msk [vmem:[#allocation3 + $0xf1] sm:$0xff] %vm2466_vm4, %v2462_v59  ;;  %v2448_v8 = vadd.f32 %v7579_v26, %v2402_v63  ;;  %5880 = vmatmul.mubr.msk.f32.gmra.mrb[16].mxu0 %vm2466_vm4, %v7638_v6  ;;  %v7700_v23 = vld [vmem:[#allocation3 + $0xb0] sm:$0xff]  ;;  %v7741_v40 = vld [vmem:[#allocation3 + $0x42] sm:$0xff] }
 0x33b   :  { %v2465_v10 = vmax.f32 %v2449_v61, 0.0  ;;  %5882 = vmatprep.mubr.msk.f32.mxu0 %vm2466_vm4, %v7644_v9  ;;  %v7745_v58 = vld [vmem:[#allocation3 + $0x52] sm:$0xff]  ;;  %v3445_v59 = vld [vmem:[#allocation9 + $0x100] sm:$0xff]  ;;  %v3682_v33 = vld [vmem:[#allocation9 + $0x158] sm:$0xff] }
 0x33c   :  { %v2464_v11 = vmax.f32 %v2448_v8, 0.0  ;;  %v7654_v26 = vld [vmem:[#allocation3 + $0xe1] sm:$0xff]  ;;  %v3446_v60 = vld [vmem:[#allocation9 + $0x108] sm:$0xff]  ;;  %v3681_v30 = vld [vmem:[#allocation9 + $0x150] sm:$0xff] }
 0x33d   :  { %2524 = vst.msk [vmem:[#allocation3 + $0x121] sm:$0xff] %vm2466_vm4, %v2465_v10  ;;  %v7649_v13 = vld [vmem:[#allocation3 + $0xd1] sm:$0xff]  ;;  %v7712_v27 = vld [vmem:[#allocation3 + $0xe0] sm:$0xff]  ;;  %v6355_v8 = vpack.c.bf16 %v3446_v60, %v3445_v59 }
 0x33e   :  { %2523 = vst.msk [vmem:[#allocation3 + $0x111] sm:$0xff] %vm2466_vm4, %v2464_v11  ;;  %5883 = vmatmul.mubr.msk.f32.gmra.mrb[18].mxu0 %vm2466_vm4, %v7649_v13  ;;  %v7708_v25 = vld [vmem:[#allocation3 + $0xd0] sm:$0xff]  ;;  %v7749_v61 = vld [vmem:[#allocation3 + $0x62] sm:$0xff] }
 0x33f   :  { %5885 = vmatprep.mubr.msk.f32.mxu0 %vm2466_vm4, %v7654_v26  ;;  %v2968_v63 = vld [vmem:[#allocation3 + $0xa2] sm:$0xff]  ;;  %v7753_v10 = vld [vmem:[#allocation3 + $0x72] sm:$0xff] }
 0x340   :  { %v7662_v17 = vld [vmem:[#allocation3 + $0x101] sm:$0xff]  ;;  %v7758_v11 = vld [vmem:[#allocation3 + $0xb2] sm:$0xff] }
 0x341   :  { %v7658_v16 = vld [vmem:[#allocation3 + $0xf1] sm:$0xff]  ;;  %v7720_v48 = vld [vmem:[#allocation3 + $0x100] sm:$0xff] }
 0x342   :  { %5886 = vmatmul.mubr.msk.f32.gmra.mrb[20].mxu0 %vm2466_vm4, %v7658_v16  ;;  %v7716_v41 = vld [vmem:[#allocation3 + $0xf0] sm:$0xff]  ;;  %v7770_v22 = vld [vmem:[#allocation3 + $0xe2] sm:$0xff] }
 0x343   :  { %5888 = vmatprep.mubr.msk.f32.mxu0 %vm2466_vm4, %v7662_v17  ;;  %v7766_v21 = vld [vmem:[#allocation3 + $0xd2] sm:$0xff]  ;;  %v7778_v44 = vld [vmem:[#allocation3 + $0x102] sm:$0xff] }
 0x344   :  { %v3685_v59 = vld [vmem:[#allocation9 + $0x170] sm:$0xff]  ;;  %v3686_v60 = vld [vmem:[#allocation9 + $0x178] sm:$0xff] }
 0x345   :  { %v7666_v19 = vld [vmem:[#allocation3 + $0x111] sm:$0xff] }
 0x346   :  { %5889 = vmatmul.mubr.msk.f32.gmra.mrb[22].mxu0 %vm2466_vm4, %v7666_v19  ;;  %v7724_v51 = vld [vmem:[#allocation3 + $0x110] sm:$0xff] }
 0x347   :  { %5907 = vmatprep.mubr.msk.f32.mxu0 %vm2466_vm4, %v2525_v18  ;;  %v7762_v18 = vld [vmem:[#allocation3 + $0xc2] sm:$0xff]  ;;  %v7782_v45 = vld [vmem:[#allocation3 + $0x112] sm:$0xff] }
 0x34a   :  { %5908 = vmatmul.mubr.msk.f32.vlgmr.msra.gmra.mrb[8].mxu0 %vm2466_vm4, %v7671_v43 }
 0x34b   :  { %6326 = vmatpush3.bf16.msra.mxu0 %v6323_v38  ;;  %5910 = vmatprep.mubr.msk.f32.mxu0 %vm2466_vm4, %v7675_v46  ;;  %v3217_v38 = vld [vmem:[#allocation9 + $0xf0] sm:$0xff] }
 0x34c   :  { %6328 = vmatprep.subr.bf16.mxu0 %v6327_v42  ;;  %v6351_v57 = vpack.c.bf16 %v3218_v39, %v3217_v38  ;;  %v3683_v38 = vld [vmem:[#allocation9 + $0x160] sm:$0xff]  ;;  %v3684_v39 = vld [vmem:[#allocation9 + $0x168] sm:$0xff] }
 0x34e   :  { %5911 = vmatmul.mubr.msk.f32.gmra.mrb[10].mxu0 %vm2466_vm4, %v7679_v49 }
 0x34f   :  { %5913 = vmatprep.mubr.msk.f32.mxu0 %vm2466_vm4, %v7683_v56  ;;  %6330 = vmatpush3.bf16.msra.mxu0 %v6327_v42  ;;  %v7774_v42 = vld [vmem:[#allocation3 + $0xf2] sm:$0xff] }
 0x350   :  { %6332 = vmatprep.subr.bf16.mxu0 %v6331_v47 }
 0x352   :  { %5914 = vmatmul.mubr.msk.f32.gmra.mrb[12].mxu0 %vm2466_vm4, %v7687_v0 }
 0x353   :  { %5916 = vmatprep.mubr.msk.f32.mxu0 %vm2466_vm4, %v7691_v5  ;;  %6334 = vmatpush3.bf16.msra.mxu0 %v6331_v47  ;;  %v3447_v47 = vld [vmem:[#allocation9 + $0x110] sm:$0xff] }
 0x354   :  { %6336 = vmatprep.subr.bf16.mxu0 %v6335_v62  ;;  %v6359_v14 = vpack.c.bf16 %v3448_v54, %v3447_v47  ;;  %v7836_v54 = vld [vmem:[#allocation3 + $0x81] sm:$0xff] }
 0x356   :  { %5917 = vmatmul.mubr.msk.f32.gmra.mrb[14].mxu0 %vm2466_vm4, %v7695_v3 }
 0x357   :  { %5919 = vmatprep.mubr.msk.f32.mxu0 %vm2466_vm4, %v2533_v7  ;;  %6338 = vmatpush3.bf16.msra.mxu0 %v6335_v62  ;;  %v3449_v62 = vld [vmem:[#allocation9 + $0x120] sm:$0xff]  ;;  %v3451_v7 = vld [vmem:[#allocation9 + $0x130] sm:$0xff] }
 0x358   :  { %6340 = vmatprep.subr.bf16.mxu0 %v6339_v12  ;;  %v6363_v4 = vpack.c.bf16 %v3450_v1, %v3449_v62  ;;  %v3917_v62 = vld [vmem:[#allocation9 + $0x198] sm:$0xff] }
 0x35a   :  { %5920 = vmatmul.mubr.msk.f32.gmra.mrb[16].mxu0 %vm2466_vm4, %v7700_v23 }
 0x35b   :  { %5922 = vmatprep.mubr.msk.f32.mxu0 %vm2466_vm4, %v7704_v24 }
 0x35e   :  { %5923 = vmatmul.mubr.msk.f32.gmra.mrb[18].mxu0 %vm2466_vm4, %v7708_v25 }
 0x35f   :  { %5925 = vmatprep.mubr.msk.f32.mxu0 %vm2466_vm4, %v7712_v27 }
 0x362   :  { %5926 = vmatmul.mubr.msk.f32.gmra.mrb[20].mxu0 %vm2466_vm4, %v7716_v41 }
 0x363   :  { %5928 = vmatprep.mubr.msk.f32.mxu0 %vm2466_vm4, %v7720_v48 }
 0x366   :  { %5929 = vmatmul.mubr.msk.f32.gmra.mrb[22].mxu0 %vm2466_vm4, %v7724_v51 }
 0x367   :  { %5947 = vmatprep.mubr.msk.f32.mxu0 %vm2466_vm4, %v2960_v50  ;;  %v3679_v50 = vld [vmem:[#allocation9 + $0x140] sm:$0xff] }
 0x368   :  { %v6371_v53 = vpack.c.bf16 %v3680_v52, %v3679_v50  ;;  %v3921_v50 = vld [vmem:[#allocation9 + $0x1b8] sm:$0xff]  ;;  %v4148_v52 = vld [vmem:[#allocation9 + $0x1c0] sm:$0xff] }
 0x36a   :  { %5948 = vmatmul.mubr.msk.f32.vlgmr.msra.gmra.mrb[8].mxu0 %vm2466_vm4, %v7729_v29 }
 0x36b   :  { %6342 = vmatpush3.bf16.msra.mxu0 %v6339_v12  ;;  %5950 = vmatprep.mubr.msk.f32.mxu0 %vm2466_vm4, %v7733_v35  ;;  %v3452_v12 = vld [vmem:[#allocation9 + $0x138] sm:$0xff] }
 0x36c   :  { %6344 = vmatprep.subr.bf16.mxu0 %v6343_v28 }
 0x36e   :  { %5951 = vmatmul.mubr.msk.f32.gmra.mrb[10].mxu0 %vm2466_vm4, %v7737_v37 }
 0x36f   :  { %5953 = vmatprep.mubr.msk.f32.mxu0 %vm2466_vm4, %v7741_v40  ;;  %6346 = vmatpush3.bf16.msra.mxu0 %v6343_v28  ;;  %v7800_v28 = vld [vmem:[#allocation3 + $0x80] sm:$0xff] }
 0x370   :  { %6348 = vmatprep.subr.bf16.mxu0 %v6347_v36 }
 0x372   :  { %5954 = vmatmul.mubr.msk.f32.gmra.mrb[12].mxu0 %vm2466_vm4, %v7745_v58 }
 0x373   :  { %5956 = vmatprep.mubr.msk.f32.mxu0 %vm2466_vm4, %v7749_v61  ;;  %6350 = vmatpush3.bf16.msra.mxu0 %v6347_v36  ;;  %v6375_v36 = vpack.c.bf16 %v3682_v33, %v3681_v30  ;;  %v7872_v33 = vld [vmem:[#allocation3 + $0x82] sm:$0xff] }
 0x374   :  { %6352 = vmatprep.subr.bf16.mxu0 %v6351_v57 }
 0x376   :  { %5957 = vmatmul.mubr.msk.f32.gmra.mrb[14].mxu0 %vm2466_vm4, %v7753_v10 }
 0x377   :  { %5959 = vmatprep.mubr.msk.f32.mxu0 %vm2466_vm4, %v2968_v63  ;;  %6354 = vmatpush3.bf16.msra.mxu0 %v6351_v57  ;;  %v6379_v57 = vpack.c.bf16 %v3684_v39, %v3683_v38  ;;  %v3914_v63 = vld [vmem:[#allocation9 + $0x180] sm:$0xff]  ;;  %v4151_v38 = vld [vmem:[#allocation9 + $0x1d8] sm:$0xff] }
 0x378   :  { %6356 = vmatprep.subr.bf16.mxu0 %v6355_v8 }
 0x37a   :  { %5960 = vmatmul.mubr.msk.f32.gmra.mrb[16].mxu0 %vm2466_vm4, %v7758_v11 }
 0x37b   :  { %5962 = vmatprep.mubr.msk.f32.mxu0 %vm2466_vm4, %v7762_v18 }
 0x37e   :  { %5963 = vmatmul.mubr.msk.f32.gmra.mrb[18].mxu0 %vm2466_vm4, %v7766_v21 }
 0x37f   :  { %5965 = vmatprep.mubr.msk.f32.mxu0 %vm2466_vm4, %v7770_v22 }
 0x382   :  { %5966 = vmatmul.mubr.msk.f32.gmra.mrb[20].mxu0 %vm2466_vm4, %v7774_v42 }
 0x383   :  { %5968 = vmatprep.mubr.msk.f32.mxu0 %vm2466_vm4, %v7778_v44 }
 0x386   :  { %5969 = vmatmul.mubr.msk.f32.gmra.mrb[22].mxu0 %vm2466_vm4, %v7782_v45 }
 0x387   :  { %5987 = vmatprep.mubr.msk.f32.mxu0 %vm2466_vm4, %v7671_v43  ;;  %v6367_v43 = vpack.c.bf16 %v3452_v12, %v3451_v7  ;;  %v3919_v7 = vld [vmem:[#allocation9 + $0x1a8] sm:$0xff] }
 0x38a   :  { %5988 = vmatmul.mubr.msk.f32.vlgmr.msra.gmra.mrb[8].mxu0 %vm2466_vm4, %v7675_v46 }
 0x38b   :  { %6358 = vmatpush3.bf16.msra.mxu0 %v6355_v8  ;;  %5990 = vmatprep.mubr.msk.f32.mxu0 %vm2466_vm4, %v7679_v49  ;;  %v3915_v8 = vld [vmem:[#allocation9 + $0x188] sm:$0xff] }
 0x38c   :  { %6360 = vmatprep.subr.bf16.mxu0 %v6359_v14  ;;  %v6387_v47 = vpack.c.bf16 %v3915_v8, %v3914_v63  ;;  %v4155_v63 = vld [vmem:[#allocation9 + $0x1f8] sm:$0xff]  ;;  %v4382_v8 = vld [vmem:[#allocation9 + $0x200] sm:$0xff] }
 0x38e   :  { %5991 = vmatmul.mubr.msk.f32.gmra.mrb[10].mxu0 %vm2466_vm4, %v7683_v56 }
 0x38f   :  { %5993 = vmatprep.mubr.msk.f32.mxu0 %vm2466_vm4, %v7687_v0  ;;  %6362 = vmatpush3.bf16.msra.mxu0 %v6359_v14  ;;  %v3916_v14 = vld [vmem:[#allocation9 + $0x190] sm:$0xff] }
 0x390   :  { %6364 = vmatprep.subr.bf16.mxu0 %v6363_v4  ;;  %v6391_v1 = vpack.c.bf16 %v3917_v62, %v3916_v14 }
 0x392   :  { %5994 = vmatmul.mubr.msk.f32.gmra.mrb[12].mxu0 %vm2466_vm4, %v7691_v5 }
 0x393   :  { %5996 = vmatprep.mubr.msk.f32.mxu0 %vm2466_vm4, %v7695_v3  ;;  %6366 = vmatpush3.bf16.msra.mxu0 %v6363_v4  ;;  %v3918_v4 = vld [vmem:[#allocation9 + $0x1a0] sm:$0xff] }
 0x394   :  { %6368 = vmatprep.subr.bf16.mxu0 %v6367_v43  ;;  %v6395_v12 = vpack.c.bf16 %v3919_v7, %v3918_v4 }
 0x396   :  { %5997 = vmatmul.mubr.msk.f32.gmra.mrb[14].mxu0 %vm2466_vm4, %v7800_v28 }
 0x397   :  { %5999 = vmatprep.mubr.msk.f32.mxu0 %vm2466_vm4, %v7700_v23  ;;  %6370 = vmatpush3.bf16.msra.mxu0 %v6367_v43  ;;  %v7818_v23 = vld [vmem:[#allocation3 + $0x120] sm:$0xff]  ;;  %v3920_v43 = vld [vmem:[#allocation9 + $0x1b0] sm:$0xff] }
 0x398   :  { %6372 = vmatprep.subr.bf16.mxu0 %v6371_v53 }
 0x39a   :  { %6000 = vmatmul.mubr.msk.f32.gmra.mrb[16].mxu0 %vm2466_vm4, %v7704_v24 }
 0x39b   :  { %6002 = vmatprep.mubr.msk.f32.mxu0 %vm2466_vm4, %v7708_v25 }
 0x39e   :  { %6003 = vmatmul.mubr.msk.f32.gmra.mrb[18].mxu0 %vm2466_vm4, %v7712_v27 }
 0x39f   :  { %6005 = vmatprep.mubr.msk.f32.mxu0 %vm2466_vm4, %v7716_v41 }
 0x3a2   :  { %6006 = vmatmul.mubr.msk.f32.gmra.mrb[20].mxu0 %vm2466_vm4, %v7720_v48 }
 0x3a3   :  { %6008 = vmatprep.mubr.msk.f32.mxu0 %vm2466_vm4, %v7724_v51 }
 0x3a6   :  { %6009 = vmatmul.mubr.msk.f32.gmra.mrb[22].mxu0 %vm2466_vm4, %v7818_v23 }
 0x3a7   :  { %6027 = vmatprep.mubr.msk.f32.mxu0 %vm2466_vm4, %v7593_v34  ;;  %v6383_v34 = vpack.c.bf16 %v3686_v60, %v3685_v59  ;;  %v4153_v59 = vld [vmem:[#allocation9 + $0x1e8] sm:$0xff] }
 0x3aa   :  { %6028 = vmatmul.mubr.msk.f32.vlgmr.msra.gmra.mrb[8].mxu0 %vm2466_vm4, %v7599_v2 }
 0x3ab   :  { %6374 = vmatpush3.bf16.msra.mxu0 %v6371_v53  ;;  %6030 = vmatprep.mubr.msk.f32.mxu0 %vm2466_vm4, %v7605_v15  ;;  %v4149_v53 = vld [vmem:[#allocation9 + $0x1c8] sm:$0xff] }
 0x3ac   :  { %6376 = vmatprep.subr.bf16.mxu0 %v6375_v36  ;;  %v6403_v30 = vpack.c.bf16 %v4149_v53, %v4148_v52 }
 0x3ae   :  { %6031 = vmatmul.mubr.msk.f32.gmra.mrb[10].mxu0 %vm2466_vm4, %v7611_v32 }
 0x3af   :  { %6033 = vmatprep.mubr.msk.f32.mxu0 %vm2466_vm4, %v7617_v20  ;;  %6378 = vmatpush3.bf16.msra.mxu0 %v6375_v36  ;;  %v4150_v36 = vld [vmem:[#allocation9 + $0x1d0] sm:$0xff] }
 0x3b0   :  { %6380 = vmatprep.subr.bf16.mxu0 %v6379_v57  ;;  %v6407_v39 = vpack.c.bf16 %v4151_v38, %v4150_v36 }
 0x3b2   :  { %6034 = vmatmul.mubr.msk.f32.gmra.mrb[12].mxu0 %vm2466_vm4, %v7623_v31 }
 0x3b3   :  { %6036 = vmatprep.mubr.msk.f32.mxu0 %vm2466_vm4, %v7629_v55  ;;  %6382 = vmatpush3.bf16.msra.mxu0 %v6379_v57  ;;  %v4152_v57 = vld [vmem:[#allocation9 + $0x1e0] sm:$0xff] }
 0x3b4   :  { %6384 = vmatprep.subr.bf16.mxu0 %v6383_v34  ;;  %v6411_v60 = vpack.c.bf16 %v4153_v59, %v4152_v57 }
 0x3b6   :  { %6037 = vmatmul.mubr.msk.f32.gmra.mrb[14].mxu0 %vm2466_vm4, %v7836_v54 }
 0x3b7   :  { %6039 = vmatprep.mubr.msk.f32.mxu0 %vm2466_vm4, %v7638_v6  ;;  %6386 = vmatpush3.bf16.msra.mxu0 %v6383_v34  ;;  %v7854_v6 = vld [vmem:[#allocation3 + $0x121] sm:$0xff]  ;;  %v4154_v34 = vld [vmem:[#allocation9 + $0x1f0] sm:$0xff] }
 0x3b8   :  { %6388 = vmatprep.subr.bf16.mxu0 %v6387_v47 }
 0x3ba   :  { %6040 = vmatmul.mubr.msk.f32.gmra.mrb[16].mxu0 %vm2466_vm4, %v7644_v9 }
 0x3bb   :  { %6042 = vmatprep.mubr.msk.f32.mxu0 %vm2466_vm4, %v7649_v13 }
 0x3be   :  { %6043 = vmatmul.mubr.msk.f32.gmra.mrb[18].mxu0 %vm2466_vm4, %v7654_v26 }
 0x3bf   :  { %6045 = vmatprep.mubr.msk.f32.mxu0 %vm2466_vm4, %v7658_v16 }
 0x3c2   :  { %6046 = vmatmul.mubr.msk.f32.gmra.mrb[20].mxu0 %vm2466_vm4, %v7662_v17 }
 0x3c3   :  { %6048 = vmatprep.mubr.msk.f32.mxu0 %vm2466_vm4, %v7666_v19 }
 0x3c6   :  { %6049 = vmatmul.mubr.msk.f32.gmra.mrb[22].mxu0 %vm2466_vm4, %v7854_v6 }
 0x3c7   :  { %6067 = vmatprep.mubr.msk.f32.mxu0 %vm2466_vm4, %v7729_v29  ;;  %v6399_v29 = vpack.c.bf16 %v3921_v50, %v3920_v43 }
 0x3ca   :  { %6068 = vmatmul.mubr.msk.f32.vlgmr.msra.gmra.mrb[8].mxu0 %vm2466_vm4, %v7733_v35 }
 0x3cb   :  { %6390 = vmatpush3.bf16.msra.mxu0 %v6387_v47  ;;  %6070 = vmatprep.mubr.msk.f32.mxu0 %vm2466_vm4, %v7737_v37  ;;  %v4383_v47 = vld [vmem:[#allocation9 + $0x208] sm:$0xff] }
 0x3cc   :  { %6392 = vmatprep.subr.bf16.mxu0 %v6391_v1 }
 0x3ce   :  { %6071 = vmatmul.mubr.msk.f32.gmra.mrb[10].mxu0 %vm2466_vm4, %v7741_v40 }
 0x3cf   :  { %6073 = vmatprep.mubr.msk.f32.mxu0 %vm2466_vm4, %v7745_v58  ;;  %6394 = vmatpush3.bf16.msra.mxu0 %v6391_v1 }
 0x3d0   :  { %6396 = vmatprep.subr.bf16.mxu0 %v6395_v12 }
 0x3d2   :  { %6074 = vmatmul.mubr.msk.f32.gmra.mrb[12].mxu0 %vm2466_vm4, %v7749_v61 }
 0x3d3   :  { %6076 = vmatprep.mubr.msk.f32.mxu0 %vm2466_vm4, %v7753_v10  ;;  %6398 = vmatpush3.bf16.msra.mxu0 %v6395_v12 }
 0x3d4   :  { %6400 = vmatprep.subr.bf16.mxu0 %v6399_v29 }
 0x3d6   :  { %6077 = vmatmul.mubr.msk.f32.gmra.mrb[14].mxu0 %vm2466_vm4, %v7872_v33 }
 0x3d7   :  { %6079 = vmatprep.mubr.msk.f32.mxu0 %vm2466_vm4, %v7758_v11  ;;  %6402 = vmatpush3.bf16.msra.mxu0 %v6399_v29  ;;  %v7890_v11 = vld [vmem:[#allocation3 + $0x122] sm:$0xff] }
 0x3d8   :  { %6404 = vmatprep.subr.bf16.mxu0 %v6403_v30 }
 0x3da   :  { %6080 = vmatmul.mubr.msk.f32.gmra.mrb[16].mxu0 %vm2466_vm4, %v7762_v18 }
 0x3db   :  { %6082 = vmatprep.mubr.msk.f32.mxu0 %vm2466_vm4, %v7766_v21 }
 0x3de   :  { %6083 = vmatmul.mubr.msk.f32.gmra.mrb[18].mxu0 %vm2466_vm4, %v7770_v22 }
 0x3df   :  { %6085 = vmatprep.mubr.msk.f32.mxu0 %vm2466_vm4, %v7774_v42 }
 0x3e2   :  { %6086 = vmatmul.mubr.msk.f32.gmra.mrb[20].mxu0 %vm2466_vm4, %v7778_v44 }
 0x3e3   :  { %6088 = vmatprep.mubr.msk.f32.mxu0 %vm2466_vm4, %v7782_v45 }
 0x3e6   :  { %6089 = vmatmul.mubr.msk.f32.gmra.mrb[22].mxu0 %vm2466_vm4, %v7890_v11 }
 0x3e7   :  { %6107 = vmatprep.mubr.msk.f32.mxu0 %vm2466_vm4, %v7675_v46  ;;  %v6415_v46 = vpack.c.bf16 %v4155_v63, %v4154_v34 }
 0x3ea   :  { %6108 = vmatmul.mubr.msk.f32.vlgmr.msra.gmra.mrb[8].mxu0 %vm2466_vm4, %v7679_v49  ;;  %v3904_v49 = vld [vmem:[#allocation3 + $0x90] sm:$0xff] }
 0x3eb   :  { %6406 = vmatpush3.bf16.msra.mxu0 %v6403_v30  ;;  %6110 = vmatprep.mubr.msk.f32.mxu0 %vm2466_vm4, %v7683_v56  ;;  %v6419_v56 = vpack.c.bf16 %v4383_v47, %v4382_v8 }
 0x3ec   :  { %6408 = vmatprep.subr.bf16.mxu0 %v6407_v39 }
 0x3ee   :  { %6111 = vmatmul.mubr.msk.f32.gmra.mrb[10].mxu0 %vm2466_vm4, %v7687_v0  ;;  %v3912_v0 = vld [vmem:[#allocation3 + $0x130] sm:$0xff] }
 0x3ef   :  { %6113 = vmatprep.mubr.msk.f32.mxu0 %vm2466_vm4, %v7691_v5  ;;  %6410 = vmatpush3.bf16.msra.mxu0 %v6407_v39  ;;  %v4384_v5 = vld [vmem:[#allocation9 + $0x210] sm:$0xff] }
 0x3f0   :  { %6412 = vmatprep.subr.bf16.mxu0 %v6411_v60 }
 0x3f2   :  { %6114 = vmatmul.mubr.msk.f32.gmra.mrb[12].mxu0 %vm2466_vm4, %v7695_v3  ;;  %v4385_v3 = vld [vmem:[#allocation9 + $0x218] sm:$0xff] }
 0x3f3   :  { %6116 = vmatprep.mubr.msk.f32.mxu0 %vm2466_vm4, %v7800_v28  ;;  %6414 = vmatpush3.bf16.msra.mxu0 %v6411_v60 }
 0x3f4   :  { %6416 = vmatprep.subr.bf16.mxu0 %v6415_v46 }
 0x3f6   :  { %6117 = vmatmul.mubr.msk.f32.gmra.mrb[14].mxu0 %vm2466_vm4, %v3904_v49 }
 0x3f7   :  { %6119 = vmatprep.mubr.msk.f32.mxu0 %vm2466_vm4, %v7704_v24  ;;  %6418 = vmatpush3.bf16.msra.mxu0 %v6415_v46  ;;  %v6423_v24 = vpack.c.bf16 %v4385_v3, %v4384_v5 }
 0x3f8   :  { %6420 = vmatprep.subr.bf16.mxu0 %v6419_v56 }
 0x3fa   :  { %6120 = vmatmul.mubr.msk.f32.gmra.mrb[16].mxu0 %vm2466_vm4, %v7708_v25  ;;  %v4386_v25 = vld [vmem:[#allocation9 + $0x220] sm:$0xff] }
 0x3fb   :  { %6122 = vmatprep.mubr.msk.f32.mxu0 %vm2466_vm4, %v7712_v27  ;;  %v4387_v27 = vld [vmem:[#allocation9 + $0x228] sm:$0xff] }
 0x3fe   :  { %6123 = vmatmul.mubr.msk.f32.gmra.mrb[18].mxu0 %vm2466_vm4, %v7716_v41  ;;  %v6427_v41 = vpack.c.bf16 %v4387_v27, %v4386_v25 }
 0x3ff   :  { %6125 = vmatprep.mubr.msk.f32.mxu0 %vm2466_vm4, %v7720_v48  ;;  %v4388_v48 = vld [vmem:[#allocation9 + $0x230] sm:$0xff] }
 0x402   :  { %6126 = vmatmul.mubr.msk.f32.gmra.mrb[20].mxu0 %vm2466_vm4, %v7724_v51  ;;  %v4389_v51 = vld [vmem:[#allocation9 + $0x238] sm:$0xff] }
 0x403   :  { %6128 = vmatprep.mubr.msk.f32.mxu0 %vm2466_vm4, %v7818_v23 }
 0x406   :  { %6129 = vmatmul.mubr.msk.f32.gmra.mrb[22].mxu0 %vm2466_vm4, %v3912_v0 }
 0x407   :  { %6147 = vmatprep.mubr.msk.f32.mxu0 %vm2466_vm4, %v7599_v2  ;;  %v6431_v2 = vpack.c.bf16 %v4389_v51, %v4388_v48 }
 0x40a   :  { %6148 = vmatmul.mubr.msk.f32.vlgmr.msra.gmra.mrb[8].mxu0 %vm2466_vm4, %v7605_v15  ;;  %v4138_v15 = vld [vmem:[#allocation3 + $0x91] sm:$0xff] }
 0x40b   :  { %6422 = vmatpush3.bf16.msra.mxu0 %v6419_v56  ;;  %6150 = vmatprep.mubr.msk.f32.mxu0 %vm2466_vm4, %v7611_v32  ;;  %v4146_v32 = vld [vmem:[#allocation3 + $0x131] sm:$0xff] }
 0x40c   :  { %6424 = vmatprep.subr.bf16.mxu0 %v6423_v24 }
 0x40e   :  { %6151 = vmatmul.mubr.msk.f32.gmra.mrb[10].mxu0 %vm2466_vm4, %v7617_v20  ;;  %v4372_v20 = vld [vmem:[#allocation3 + $0x92] sm:$0xff] }
 0x40f   :  { %6153 = vmatprep.mubr.msk.f32.mxu0 %vm2466_vm4, %v7623_v31  ;;  %6426 = vmatpush3.bf16.msra.mxu0 %v6423_v24  ;;  %v4380_v31 = vld [vmem:[#allocation3 + $0x132] sm:$0xff] }
 0x410   :  { %6428 = vmatprep.subr.bf16.mxu0 %v6427_v41 }
 0x412   :  { %6154 = vmatmul.mubr.msk.f32.gmra.mrb[12].mxu0 %vm2466_vm4, %v7629_v55  ;;  %v5032_v55 = vld [vmem:[#allocation11] ss:$0 sm:$0xff] }
 0x413   :  { %6156 = vmatprep.mubr.msk.f32.mxu0 %vm2466_vm4, %v7836_v54  ;;  %6430 = vmatpush3.bf16.msra.mxu0 %v6427_v41 }
 0x414   :  { %6432 = vmatprep.subr.bf16.mxu0 %v6431_v2 }
 0x416   :  { %6157 = vmatmul.mubr.msk.f32.gmra.mrb[14].mxu0 %vm2466_vm4, %v4138_v15 }
 0x417   :  { %6159 = vmatprep.mubr.msk.f32.mxu0 %vm2466_vm4, %v7644_v9  ;;  %6434 = vmatpush3.bf16.msra.mxu0 %v6431_v2 }
 0x41a   :  { %6160 = vmatmul.mubr.msk.f32.gmra.mrb[16].mxu0 %vm2466_vm4, %v7649_v13 }
 0x41b   :  { %6162 = vmatprep.mubr.msk.f32.mxu0 %vm2466_vm4, %v7654_v26 }
 0x41e   :  { %6163 = vmatmul.mubr.msk.f32.gmra.mrb[18].mxu0 %vm2466_vm4, %v7658_v16 }
 0x41f   :  { %6165 = vmatprep.mubr.msk.f32.mxu0 %vm2466_vm4, %v7662_v17 }
 0x422   :  { %6166 = vmatmul.mubr.msk.f32.gmra.mrb[20].mxu0 %vm2466_vm4, %v7666_v19 }
 0x423   :  { %6168 = vmatprep.mubr.msk.f32.mxu0 %vm2466_vm4, %v7854_v6 }
 0x426   :  { %6169 = vmatmul.mubr.msk.f32.gmra.mrb[22].mxu0 %vm2466_vm4, %v4146_v32 }
 0x427   :  { %6187 = vmatprep.mubr.msk.f32.mxu0 %vm2466_vm4, %v7733_v35 }
 0x42a   :  { %6188 = vmatmul.mubr.msk.f32.vlgmr.msra.gmra.mrb[8].mxu0 %vm2466_vm4, %v7737_v37 }
 0x42b   :  { %6190 = vmatprep.mubr.msk.f32.mxu0 %vm2466_vm4, %v7741_v40 }
 0x42e   :  { %6191 = vmatmul.mubr.msk.f32.gmra.mrb[10].mxu0 %vm2466_vm4, %v7745_v58 }
 0x42f   :  { %6193 = vmatprep.mubr.msk.f32.mxu0 %vm2466_vm4, %v7749_v61 }
 0x432   :  { %6194 = vmatmul.mubr.msk.f32.gmra.mrb[12].mxu0 %vm2466_vm4, %v7753_v10 }
 0x433   :  { %6196 = vmatprep.mubr.msk.f32.mxu0 %vm2466_vm4, %v7872_v33 }
 0x436   :  { %6197 = vmatmul.mubr.msk.f32.gmra.mrb[14].mxu0 %vm2466_vm4, %v4372_v20 }
 0x437   :  { %6199 = vmatprep.mubr.msk.f32.mxu0 %vm2466_vm4, %v7762_v18 }
 0x43a   :  { %6200 = vmatmul.mubr.msk.f32.gmra.mrb[16].mxu0 %vm2466_vm4, %v7766_v21 }
 0x43b   :  { %6202 = vmatprep.mubr.msk.f32.mxu0 %vm2466_vm4, %v7770_v22 }
 0x43e   :  { %6203 = vmatmul.mubr.msk.f32.gmra.mrb[18].mxu0 %vm2466_vm4, %v7774_v42 }
 0x43f   :  { %6205 = vmatprep.mubr.msk.f32.mxu0 %vm2466_vm4, %v7778_v44 }
 0x442   :  { %6206 = vmatmul.mubr.msk.f32.gmra.mrb[20].mxu0 %vm2466_vm4, %v7782_v45 }
 0x443   :  { %6208 = vmatprep.mubr.msk.f32.mxu0 %vm2466_vm4, %v7890_v11 }
 0x446   :  { %6209 = vmatmul.mubr.msk.f32.gmra.mrb[22].mxu0 %vm2466_vm4, %v4380_v31 }
 0x4fd   :  { %v6189_v9 = vpop.f32.mrb[8].mxu0 }
 0x4fe   :  { %v4607_v13 = vadd.f32 %v6189_v9, %v5032_v55  ;;  %v4504_v26 = vpop.f32.mrb[9].mxu0 }
 0x4ff   :  { %v4606_v16 = vadd.f32 %v5032_v55, %v4504_v26 }
 0x500   :  { %v4623_v17 = vmax.f32 %v4607_v13, 0.0 }
 0x501   :  { %v4622_v19 = vmax.f32 %v4606_v16, 0.0  ;;  %v6192_v35 = vpop.f32.mrb[10].mxu0 }
 0x502   :  { %v4609_v37 = vadd.f32 %v6192_v35, %v5032_v55  ;;  %v4514_v40 = vpop.f32.mrb[11].mxu0 }
 0x503   :  { %v5068_v58 = vpack.c.bf16 %v4623_v17, %v4622_v19  ;;  %v4608_v61 = vadd.f32 %v5032_v55, %v4514_v40 }
 0x504   :  { %v4625_v10 = vmax.f32 %v4609_v37, 0.0 }
 0x505   :  { %5069 = vst [vmem:[%s8015_s7] sm:$0xff] %v5068_v58   ;;  %v4624_v18 = vmax.f32 %v4608_v61, 0.0  ;;  %v6195_v21 = vpop.f32.mrb[12].mxu0 }
 0x506   :  { %v4611_v22 = vadd.f32 %v6195_v21, %v5032_v55  ;;  %v4524_v42 = vpop.f32.mrb[13].mxu0 }
 0x507   :  { %v5073_v44 = vpack.c.bf16 %v4625_v10, %v4624_v18  ;;  %v4610_v45 = vadd.f32 %v5032_v55, %v4524_v42 }
 0x508   :  { %v4627_v28 = vmax.f32 %v4611_v22, 0.0 }
 0x509   :  { %5105 = vst [vmem:[%s8015_s7 + $0x8] sm:$0xff] %v5073_v44   ;;  %v4626_v23 = vmax.f32 %v4610_v45, 0.0  ;;  %v6198_v54 = vpop.f32.mrb[14].mxu0 }
 0x50a   :  { %v4613_v6 = vadd.f32 %v6198_v54, %v5032_v55  ;;  %v4534_v14 = vpop.f32.mrb[15].mxu0 }
 0x50b   :  { %v5078_v62 = vpack.c.bf16 %v4627_v28, %v4626_v23  ;;  %v4612_v1 = vadd.f32 %v5032_v55, %v4534_v14 }
 0x50c   :  { %v4629_v4 = vmax.f32 %v4613_v6, 0.0 }
 0x50d   :  { %5106 = vst [vmem:[%s8015_s7 + $0x10] sm:$0xff] %v5078_v62   ;;  %v4628_v7 = vmax.f32 %v4612_v1, 0.0  ;;  %v6201_v12 = vpop.f32.mrb[16].mxu0 }
 0x50e   :  { %v4615_v43 = vadd.f32 %v6201_v12, %v5032_v55  ;;  %v4544_v50 = vpop.f32.mrb[17].mxu0 }
 0x50f   :  { %v5083_v29 = vpack.c.bf16 %v4629_v4, %v4628_v7  ;;  %v4614_v52 = vadd.f32 %v5032_v55, %v4544_v50 }
 0x510   :  { %v4631_v53 = vmax.f32 %v4615_v43, 0.0 }
 0x511   :  { %5107 = vst [vmem:[%s8015_s7 + $0x18] sm:$0xff] %v5083_v29   ;;  %v4630_v30 = vmax.f32 %v4614_v52, 0.0  ;;  %v6204_v33 = vpop.f32.mrb[18].mxu0 }
 0x512   :  { %v4617_v11 = vadd.f32 %v6204_v33, %v5032_v55  ;;  %v4554_v36 = vpop.f32.mrb[19].mxu0 }
 0x513   :  { %v5088_v38 = vpack.c.bf16 %v4631_v53, %v4630_v30  ;;  %v4616_v39 = vadd.f32 %v5032_v55, %v4554_v36 }
 0x514   :  { %v4633_v57 = vmax.f32 %v4617_v11, 0.0 }
 0x515   :  { %5108 = vst [vmem:[%s8015_s7 + $0x20] sm:$0xff] %v5088_v38   ;;  %v4632_v59 = vmax.f32 %v4616_v39, 0.0  ;;  %v6207_v60 = vpop.f32.mrb[20].mxu0 }
 0x516   :  { %v4619_v34 = vadd.f32 %v6207_v60, %v5032_v55  ;;  %v4564_v63 = vpop.f32.mrb[21].mxu0 }
 0x517   :  { %v5093_v46 = vpack.c.bf16 %v4633_v57, %v4632_v59  ;;  %v4618_v8 = vadd.f32 %v5032_v55, %v4564_v63 }
 0x518   :  { %v4635_v47 = vmax.f32 %v4619_v34, 0.0 }
 0x519   :  { %5109 = vst [vmem:[%s8015_s7 + $0x28] sm:$0xff] %v5093_v46   ;;  %v4634_v49 = vmax.f32 %v4618_v8, 0.0  ;;  %v6210_v56 = vpop.f32.mrb[22].mxu0 }
 0x51a   :  { %v4621_v0 = vadd.f32 %v6210_v56, %v5032_v55  ;;  %v4574_v5 = vpop.f32.mrb[23].mxu0 }
 0x51b   :  { %v5098_v3 = vpack.c.bf16 %v4635_v47, %v4634_v49  ;;  %v4620_v24 = vadd.f32 %v5032_v55, %v4574_v5 }
 0x51c   :  { %v4637_v25 = vmax.f32 %v4621_v0, 0.0 }
 0x51d   :  { %5110 = vst [vmem:[%s8015_s7 + $0x30] sm:$0xff] %v5098_v3   ;;  %v4636_v27 = vmax.f32 %v4620_v24, 0.0 }
 0x51f   :  { %v5103_v41 = vpack.c.bf16 %v4637_v25, %v4636_v27 }
 0x521   :  { %5111 = vst [vmem:[%s8015_s7 + $0x38] sm:$0xff] %v5103_v41  }
 0x522   :  { %4722 = vsyncpa [#allocation5], 1 }
 0x523   :  { %4723 = vsyncpa [#allocation7], 1 }
 0x524   :  { %4724 = vsyncpa [#allocation10], 1 }

// kernel: dqn_forward.3
= control target key start
LH: loop header
LB: loop body
LE: loop exit
PB: predicated region body
PF: predicated region fallthrough
CT: control target
= control target key end

     0   :  { %12 = vsyncpa [#allocation4], 0  ;;  %s7932_s0 = inlined_call_operand.vmem [shape: bf16[2,8192], index: 0, kind: input, shape index: {}]   ;;  %s7933_s1 = inlined_call_operand.hbm [shape: bf16[8192,512], index: 1, kind: input, shape index: {}]   ;;  %s7934_s2 = inlined_call_operand.hbm [shape: f32[1,512], index: 2, kind: input, shape index: {}]   ;;  %s7935_s3 = inlined_call_operand.hbm [shape: bf16[512,256], index: 3, kind: input, shape index: {}]   ;;  %s7936_s4 = inlined_call_operand.hbm [shape: f32[1,256], index: 4, kind: input, shape index: {}]   ;;  %s7937_s5 = inlined_call_operand.vmem [shape: bf16[256,64], index: 5, kind: input, shape index: {}]   ;;  %s7938_s6 = inlined_call_operand.hbm [shape: f32[1,64], index: 6, kind: input, shape index: {}]   ;;  %s7939_s7 = inlined_call_operand.hbm [shape: f32[2,64], index: 7, kind: output, shape index: {}]  }
   0x1   :  { %14 = vsyncpa [#allocation4 + $0x1], 0 }
   0x2   :  { %15 = vsyncpa [#allocation7], 0 }
   0x3   :  { %16 = vsyncpa [#allocation10], 0 }
   0x4   :  { %17 = vsyncpa [#allocation5], 0  ;;  %s7013_s24 = smov 0   ;;  %s7015_s25 = smov 0  }
   0x5   :  { %s7017_s26 = smov 0   ;;  %s7019_s27 = smov 0  }
   0x6 LB: > { %s7032_s28 = sadd.s32 4294967295, %s6958_s27   ;;  %p69_p0 = scmp.ne.s32.totalorder %s6950_s25, %s6946_s24  ;;  %s6958_s27 = sphi %s7019_s27, %s7958_s27   ;;  %s6954_s26 = sphi %s7017_s26, %s7957_s26   ;;  %s6950_s25 = sphi %s7015_s25, %s7956_s25   ;;  %s6946_s24 = sphi %s7013_s24, %s7955_s24  }
   0x7   : > { %p7940_p1 = scmp.eq.s32.totalorder %s7032_s28, 0  ;;  %p5068_p2 = scmp.ge.s32.totalorder %s6958_s27, 1 }
   0x8   : > { %p206_p3 = scmp.lt.s32.totalorder %s6958_s27, 5  ;;  %s6960_s8 = smov [#allocation6]  }
   0x9   : > { %p7041_p5 = por %p7940_p1, %p69_p0  ;;  %s219_s9 = sshll.u32 %s6960_s8, 4  ;;  %s220_s9 = int_to_ptr.vmem [resolvable:$true] %s219_s9 }
   0xa   : > { %p7045_p6 = pnand %p5068_p2, %p206_p3  ;;  %s6961_s10 = smov [#allocation9]  }
   0xb   : > { %s7943_s29 = scalar_select %p7041_p5, 1, 0 }
   0xc   : > { %s7944_s30 = scalar_select %p7045_p6, 1, 0 }
   0xd   : > { %p5790_p7 = pneg %p7045_p6  ;;  %s243_s11 = sshll.u32 %s6961_s10, 4  ;;  %s7057_s11 = int_to_ptr.vmem [resolvable:$true] %s243_s11 }
   0xe   : > { %s6962_s13 = smov [#allocation8]   ;;  %s6744_s17 = scalar_lea.hbm %s7934_s2, 64 }
   0xf   : > { %p7053_p8 = pnand %p5790_p7, %p7940_p1  ;;  %s229_s14 = sshll.u32 %s6962_s13, 4  ;;  %s7059_s14 = int_to_ptr.vmem [resolvable:$true] %s229_s14 }
  0x10   : > { %p6745_p9 = scmp.ne.s32.totalorder %s7934_s2, %s6744_s17  ;;  %p6751_p13 = scmp.lt.u32.totalorder %s6744_s17, %s7934_s2 }
  0x11   : > { %p7069_p10 = pneg %p7053_p8 }
  0x13   : > { %p6747_p11 = pnand %p7069_p10, %p6745_p9 }
  0x15   : > { %p6748_p12 = pneg %p6747_p11 }
  0x17   : > { %p6753_p0 = pnand %p6751_p13, %p6748_p12 }
  0x19   : > { %6756 = shalt.err (!%p6753_p0)
}
  0x1a   : > { %s6757_s23 = scalar_lea.vmem %s220_s9, 64  ;;  %p6765_p4 = scmp.lt.s32.totalorder %s220_s9, %s220_s9 }
  0x1b   : > { %p6758_p2 = scmp.ne.s32.totalorder %s220_s9, %s6757_s23  ;;  %p6766_p1 = scmp.lt.s32.totalorder %s6757_s23, %s6757_s23 }
  0x1d   : > { %p6760_p3 = pnand %p6758_p2, %p7069_p10  ;;  %p6767_p5 = por %p6766_p1, %p6765_p4 }
  0x1f   : > { %p6761_p7 = pneg %p6760_p3 }
  0x21   : > { %p6768_p6 = pnand %p6767_p5, %p6761_p7 }
  0x23   : > { %6771 = shalt.err (!%p6768_p6)
}
  0x24   : > { %5793 = dma.hbm_to_vmem [thread:$0]  (!%p7053_p8), %s7934_s2, 64, %s220_s9, [#allocation7]  }
  0x25   : > { %s6772_s15 = scalar_lea.hbm %s7936_s4, 32 }
  0x26   : > { %p6773_p9 = scmp.ne.s32.totalorder %s7936_s4, %s6772_s15  ;;  %p6779_p4 = scmp.lt.u32.totalorder %s6772_s15, %s7936_s4 }
  0x28   : > { %p6775_p11 = pnand %p6773_p9, %p7069_p10 }
  0x2a   : > { %p6776_p1 = pneg %p6775_p11 }
  0x2c   : > { %p6781_p5 = pnand %p6779_p4, %p6776_p1 }
  0x2e   : > { %6784 = shalt.err (!%p6781_p5)
}
  0x2f   : > { %s6785_s9 = scalar_lea.vmem %s7057_s11, 32  ;;  %p6793_p0 = scmp.lt.s32.totalorder %s7057_s11, %s7057_s11 }
  0x30   : > { %p6786_p6 = scmp.ne.s32.totalorder %s7057_s11, %s6785_s9  ;;  %p6794_p2 = scmp.lt.s32.totalorder %s6785_s9, %s6785_s9 }
  0x32   : > { %p6788_p12 = pnand %p6786_p6, %p7069_p10  ;;  %p6795_p3 = por %p6794_p2, %p6793_p0 }
  0x34   : > { %p6789_p13 = pneg %p6788_p12 }
  0x36   : > { %p6796_p7 = pnand %p6795_p3, %p6789_p13 }
  0x38   : > { %6799 = shalt.err (!%p6796_p7)
}
  0x39   : > { %5799 = dma.hbm_to_vmem [thread:$0]  (!%p7053_p8), %s7936_s4, 32, %s7057_s11, [#allocation10]  }
  0x3a   : > { %s6800_s8 = scalar_lea.hbm %s7935_s3, 8192 }
  0x3b   : > { %p6801_p9 = scmp.ne.s32.totalorder %s7935_s3, %s6800_s8  ;;  %p6807_p4 = scmp.lt.u32.totalorder %s6800_s8, %s7935_s3 }
  0x3d   : > { %p6803_p11 = pnand %p6801_p9, %p7069_p10 }
  0x3f   : > { %p6804_p1 = pneg %p6803_p11 }
  0x41   : > { %p6809_p5 = pnand %p6807_p4, %p6804_p1 }
  0x43   : > { %6812 = shalt.err (!%p6809_p5)
}
  0x44   : > { %s6813_s11 = scalar_lea.vmem %s7059_s14, 8192  ;;  %p6821_p0 = scmp.lt.s32.totalorder %s7059_s14, %s7059_s14 }
  0x45   : > { %p6814_p6 = scmp.ne.s32.totalorder %s7059_s14, %s6813_s11  ;;  %p6822_p2 = scmp.lt.s32.totalorder %s6813_s11, %s6813_s11 }
  0x47   : > { %p6816_p12 = pnand %p6814_p6, %p7069_p10  ;;  %p6823_p3 = por %p6822_p2, %p6821_p0 }
  0x49   : > { %p6817_p13 = pneg %p6816_p12 }
  0x4b   : > { %p6824_p7 = pnand %p6823_p3, %p6817_p13 }
  0x4d   : > { %6827 = shalt.err (!%p6824_p7)
}
  0x4e   : > { %s6963_s17 = smov 128   ;;  %s6964_s18 = smov 8  }
  0x4f   : > { %5796 = dma.hbm_to_vmem [thread:$0]  (!%p7053_p8), %s7935_s3, 8192, %s7059_s14, [#allocation7], %s6963_s17, %s6963_s17, %s6964_s18  }
  0x50   : > { %s6965_s21 = smov [#allocation11]   ;;  %s6828_s8 = scalar_lea.hbm %s7938_s6, 16 }
  0x51   : > { %s257_s22 = sshll.u32 %s6965_s21, 4  ;;  %p6829_p9 = scmp.ne.s32.totalorder %s7938_s6, %s6828_s8  ;;  %s258_s22 = int_to_ptr.vmem [resolvable:$true] %s257_s22 }
  0x52   : > { %p6835_p4 = scmp.lt.u32.totalorder %s6828_s8, %s7938_s6 }
  0x53   : > { %p6831_p11 = pnand %p6829_p9, %p7069_p10 }
  0x55   : > { %p6832_p1 = pneg %p6831_p11 }
  0x57   : > { %p6837_p5 = pnand %p6835_p4, %p6832_p1 }
  0x59   : > { %6840 = shalt.err (!%p6837_p5)
}
  0x5a   : > { %s6841_s14 = scalar_lea.vmem %s258_s22, 16  ;;  %s6848_s11 = scalar_lea.vmem %s258_s22, 32 }
  0x5b   : > { %p6842_p6 = scmp.ne.s32.totalorder %s258_s22, %s6841_s14  ;;  %p6849_p0 = scmp.lt.s32.totalorder %s258_s22, %s258_s22 }
  0x5c   : > { %p6850_p2 = scmp.lt.s32.totalorder %s6848_s11, %s6841_s14 }
  0x5d   : > { %p6844_p12 = pnand %p6842_p6, %p7069_p10 }
  0x5e   : > { %p6851_p3 = por %p6850_p2, %p6849_p0 }
  0x5f   : > { %p6845_p13 = pneg %p6844_p12 }
  0x61   : > { %p6852_p7 = pnand %p6851_p3, %p6845_p13 }
  0x63   : > { %6855 = shalt.err (!%p6852_p7)
}
  0x64   : > { %5802 = dma.hbm_to_vmem [thread:$0]  (!%p7053_p8), %s7938_s6, 16, %s258_s22, [#allocation10]  }
  0x65   : > { %s7150_s20 = sadd.s32 1, %s6958_s27   ;;  %s56_s19 = sadd.s32 1, %s6954_s26 }
  0x66   : > { %s53_s9 = ssub.s32 %s6958_s27, %s7150_s20  ;;  %p63_p10 = scmp.ne.s32.totalorder %s6954_s26, %s6950_s25 }
  0x67   : > { %p54_p9 = scmp.eq.s32.totalorder %s53_s9, 0  ;;  %p64_p11 = scmp.eq.s32.totalorder %s6958_s27, 0 }
  0x68   : > { %p5811_p1 = scmp.lt.s32.totalorder %s6958_s27, 4  ;;  %s276_s12 = sand.u32 1, %s6954_s26  }
  0x69   : > { %s7161_s21 = scalar_select %p54_p9, %s6954_s26, %s56_s19  }
  0x6a   : > { %p65_p4 = por %p64_p11, %p63_p10  ;;  %s5074_s23 = sshll.u32 %s276_s12, 12 }
  0x6b   : > { %s5685_s24 = sshll.u32 %s6958_s27, 16  ;;  %s280_s22 = scalar_lea.vmem [#allocation3], %s5074_s23 }
  0x6c   : > { %s7167_s13 = scalar_lea.hbm %s7933_s1, %s5685_s24  ;;  %s288_s15 = sshll.u32 %s280_s22, 4  ;;  %s7173_s15 = int_to_ptr.vmem [resolvable:$true] %s288_s15 }
  0x6d   : > { %p7169_p8 = pnand %p5811_p1, %p65_p4  ;;  %s7175_s27 = scalar_lea.sflag [#allocation4], %s276_s12 }
  0x6e   : > { %s6856_s14 = scalar_lea.hbm %s7167_s13, 65536  ;;  %s6861_s18 = scalar_lea.hbm %s7933_s1, 262144 }
  0x6f   : > { %p6857_p5 = scmp.ne.s32.totalorder %s7167_s13, %s6856_s14  ;;  %p6858_p6 = pneg %p7169_p8 }
  0x70   : > { %p6862_p0 = scmp.lt.u32.totalorder %s7167_s13, %s7933_s1  ;;  %p6863_p2 = scmp.lt.u32.totalorder %s6861_s18, %s6856_s14 }
  0x71   : > { %p6859_p12 = pnand %p6858_p6, %p6857_p5  ;;  %p6865_p7 = scmp.lt.u32.totalorder %s6856_s14, %s7167_s13 }
  0x72   : > { %p6864_p3 = por %p6863_p2, %p6862_p0 }
  0x73   : > { %p6860_p13 = pneg %p6859_p12 }
  0x74   : > { %p6866_p10 = por %p6865_p7, %p6864_p3 }
  0x76   : > { %p6867_p9 = pnand %p6866_p10, %p6860_p13 }
  0x78   : > { %6870 = shalt.err (!%p6867_p9)
}
  0x79   : > { %s6871_s12 = scalar_lea.vmem %s7173_s15, 65536  ;;  %s6966_s23 = smov [#allocation3]  }
  0x7a   : > { %p6872_p11 = scmp.ne.s32.totalorder %s7173_s15, %s6871_s12  ;;  %s6876_s24 = sshll.u32 %s6966_s23, 4  ;;  %s6877_s24 = int_to_ptr.vmem [resolvable:$false] %s6876_s24 }
  0x7b   : > { %s6878_s8 = scalar_lea.vmem %s6877_s24, 131072  ;;  %p6879_p5 = scmp.lt.s32.totalorder %s7173_s15, %s6877_s24 }
  0x7c   : > { %p6874_p1 = pnand %p6872_p11, %p6858_p6  ;;  %p6880_p12 = scmp.lt.s32.totalorder %s6878_s8, %s6871_s12 }
  0x7e   : > { %p6875_p4 = pneg %p6874_p1  ;;  %p6881_p0 = por %p6880_p12, %p6879_p5 }
  0x80   : > { %p6882_p2 = pnand %p6881_p0, %p6875_p4 }
  0x82   : > { %6885 = shalt.err (!%p6882_p2)
}
  0x83   : > { %s6967_s10 = smov 256   ;;  %s6968_s22 = smov 16  }
  0x84   : > { %5806 = dma.hbm_to_vmem [thread:$0]  (!%p7169_p8), %s7167_s13, 65536, %s7173_s15, %s7175_s27, %s6967_s10, %s6967_s10, %s6968_s22  }
  0x85   : > { %p7948_p6 = scmp.ne.s32.totalorder %s7944_s30, 0 }
  0x86   : > { %s302_s14 = sand.u32 (!%p7948_p6), 1, %s6950_s25   ;;  %p7949_p13 = scmp.ne.s32.totalorder (!%p7948_p6), %s7943_s29, 0 }
  0x87   : > { %300 = sbr.rel (%p7948_p6) target bundleno = 1376 (0x560), region = 48  ;;  %s5079_s11 = sshll.u32 (!%p7948_p6), %s302_s14, 12 }
  0x88   : > { %s303_s17 = scalar_lea.sflag (!%p7948_p6), [#allocation4], %s302_s14  ;;  %s7206_s18 = scalar_lea.vmem (!%p7948_p6), [#allocation3], %s5079_s11 }
  0x8e   : > { %6929 = dma.done.wait (%p7949_p13), %s303_s17, 65536  }
  0x8f   : > { %6931 = vsyncadd (%p7949_p13), %s303_s17, 4294901760  ;;  %p7950_p3 = scmp.eq.s32.totalorder %s7032_s28, 0 }
  0x91   : > { %6933 = dma.done.wait (%p7950_p3), [#allocation7], 8256   ;;  %p7951_p8 = pmov %p7950_p3 }
  0x92   : > { %p7952_p7 = pmov %p7950_p3 }
  0x93   : > { %6935 = vsyncadd (%p7951_p8), [#allocation7], 4294959040 }
  0x94   : > { %6937 = dma.done.wait (%p7952_p7), [#allocation10], 48   ;;  %p7953_p10 = pmov %p7950_p3 }
  0x95   : > { %s5084_s30 = sshll.u32 %s7032_s28, 4  ;;  %p7954_p11 = scmp.ne.s32.totalorder %s7032_s28, 0 }
  0x96   : > { %6939 = vsyncadd (%p7953_p10), [#allocation10], 4294967248  ;;  %p353_p9 = scmp.lt.s32.totalorder %s5084_s30, 63  ;;  %v6969_v0 = vmov (!%p7954_p11), 0.0  }
  0x97   : > { %362 = sbr.rel (%p7954_p11) target bundleno = 158 (0x9e), region = 72  ;;  %363 = vst [vmem:[#allocation2] sm:$0xff] (!%p7954_p11), %v6969_v0 }
  0x98   : > { %s7960_s30 = smov (!%p353_p9, %s5084_s30), 63 }
  0x99   : > { %s7224_s29 = scalar_lea.vmem %s7932_s0, %s7960_s30 }
  0x9e PF: > { %v5862_v1 = vld [vmem:[%s7206_s18 + $0x4] ss:$16 sps:$4 sm:$0xff]   ;;  %v5864_v2 = vld [vmem:[%s7206_s18 + $0xc] ss:$16 sps:$4 sm:$0xff]   ;;  %v5866_v3 = vld [vmem:[%s7206_s18] ss:$16 sps:$4 sm:$0xff]   ;;  %v885_v39 = vlaneseq }
  0x9f   : > { %3555 = vmatprep.subr.bf16.mxu0 %v5862_v1  ;;  %v5867_v4 = vld [vmem:[%s7206_s18 + $0x8] ss:$16 sps:$4 sm:$0xff]   ;;  %3883 = vmatprep.subr.bf16.mxu1 %v5864_v2  ;;  %v5868_v5 = vld [vmem:[%s7206_s18 + $0x24] ss:$16 sps:$4 sm:$0xff]   ;;  %v5870_v6 = vld [vmem:[%s7206_s18 + $0x2c] ss:$16 sps:$4 sm:$0xff]  }
  0xa0   : > { %3556 = vmatpush1.bf16.msra.mxu0 %v5866_v3  ;;  %3884 = vmatpush1.bf16.msra.mxu1 %v5867_v4  ;;  %v5872_v7 = vld [vmem:[%s7206_s18 + $0x20] ss:$16 sps:$4 sm:$0xff]   ;;  %v5873_v8 = vld [vmem:[%s7206_s18 + $0x28] ss:$16 sps:$4 sm:$0xff]   ;;  %v5874_v9 = vld [vmem:[%s7206_s18 + $0x44] ss:$16 sps:$4 sm:$0xff]  }
  0xa1   : > { %3557 = vmatprep.subr.bf16.mxu0 %v5868_v5  ;;  %3885 = vmatprep.subr.bf16.mxu1 %v5870_v6  ;;  %v5876_v10 = vld [vmem:[%s7206_s18 + $0x4c] ss:$16 sps:$4 sm:$0xff]   ;;  %v5878_v11 = vld [vmem:[%s7206_s18 + $0x40] ss:$16 sps:$4 sm:$0xff]   ;;  %v5879_v12 = vld [vmem:[%s7206_s18 + $0x48] ss:$16 sps:$4 sm:$0xff]  }
  0xa2   : > { %v5880_v13 = vld [vmem:[%s7206_s18 + $0x64] ss:$16 sps:$4 sm:$0xff]   ;;  %v5882_v14 = vld [vmem:[%s7206_s18 + $0x6c] ss:$16 sps:$4 sm:$0xff]   ;;  %v5884_v15 = vld [vmem:[%s7206_s18 + $0x60] ss:$16 sps:$4 sm:$0xff]  }
  0xa3   : > { %v5885_v16 = vld [vmem:[%s7206_s18 + $0x68] ss:$16 sps:$4 sm:$0xff]   ;;  %v5886_v17 = vld [vmem:[%s7206_s18 + $0x84] ss:$16 sps:$4 sm:$0xff]   ;;  %v5888_v18 = vld [vmem:[%s7206_s18 + $0x8c] ss:$16 sps:$4 sm:$0xff]  }
  0xa4   : > { %3558 = vmatpush1.bf16.msra.mxu0 %v5872_v7  ;;  %3886 = vmatpush1.bf16.msra.mxu1 %v5873_v8  ;;  %v5890_v19 = vld [vmem:[%s7206_s18 + $0x80] ss:$16 sps:$4 sm:$0xff]   ;;  %v5891_v20 = vld [vmem:[%s7206_s18 + $0x88] ss:$16 sps:$4 sm:$0xff]   ;;  %v5892_v21 = vld [vmem:[%s7206_s18 + $0xa4] ss:$16 sps:$4 sm:$0xff]  }
  0xa5   : > { %3559 = vmatprep.subr.bf16.mxu0 %v5874_v9  ;;  %3887 = vmatprep.subr.bf16.mxu1 %v5876_v10  ;;  %v5894_v22 = vld [vmem:[%s7206_s18 + $0xac] ss:$16 sps:$4 sm:$0xff]   ;;  %v5896_v23 = vld [vmem:[%s7206_s18 + $0xa0] ss:$16 sps:$4 sm:$0xff]   ;;  %v5897_v24 = vld [vmem:[%s7206_s18 + $0xa8] ss:$16 sps:$4 sm:$0xff]  }
  0xa6   : > { %v5898_v25 = vld [vmem:[%s7206_s18 + $0xc4] ss:$16 sps:$4 sm:$0xff]   ;;  %v5900_v26 = vld [vmem:[%s7206_s18 + $0xcc] ss:$16 sps:$4 sm:$0xff]   ;;  %v5902_v27 = vld [vmem:[%s7206_s18 + $0xc0] ss:$16 sps:$4 sm:$0xff]  }
  0xa7   : > { %v5903_v28 = vld [vmem:[%s7206_s18 + $0xc8] ss:$16 sps:$4 sm:$0xff]   ;;  %v5904_v29 = vld [vmem:[%s7206_s18 + $0xe4] ss:$16 sps:$4 sm:$0xff]   ;;  %v5906_v30 = vld [vmem:[%s7206_s18 + $0xec] ss:$16 sps:$4 sm:$0xff]  }
  0xa8   : > { %3560 = vmatpush1.bf16.msra.mxu0 %v5878_v11  ;;  %3888 = vmatpush1.bf16.msra.mxu1 %v5879_v12  ;;  %v5908_v31 = vld [vmem:[%s7206_s18 + $0xe0] ss:$16 sps:$4 sm:$0xff]   ;;  %v5909_v32 = vld [vmem:[%s7206_s18 + $0xe8] ss:$16 sps:$4 sm:$0xff]   ;;  %v5910_v33 = vld [vmem:[%s7206_s18 + $0x104] ss:$16 sps:$4 sm:$0xff]  }
  0xa9   : > { %3561 = vmatprep.subr.bf16.mxu0 %v5880_v13  ;;  %3889 = vmatprep.subr.bf16.mxu1 %v5882_v14  ;;  %v5912_v34 = vld [vmem:[%s7206_s18 + $0x10c] ss:$16 sps:$4 sm:$0xff]   ;;  %v5914_v35 = vld [vmem:[%s7206_s18 + $0x100] ss:$16 sps:$4 sm:$0xff]   ;;  %v5915_v36 = vld [vmem:[%s7206_s18 + $0x108] ss:$16 sps:$4 sm:$0xff]  }
  0xaa   : > { %v6970_v37 = vmov 1966171168   ;;  %v5916_v40 = vld [vmem:[%s7206_s18 + $0x124] ss:$16 sps:$4 sm:$0xff]   ;;  %v5918_v41 = vld [vmem:[%s7206_s18 + $0x12c] ss:$16 sps:$4 sm:$0xff]  }
  0xab   : > { %v883_v38 = vunpack.c.l.s4 %v6970_v37  ;;  %v5920_v42 = vld [vmem:[%s7206_s18 + $0x120] ss:$16 sps:$4 sm:$0xff]   ;;  %v7267_v44 = vshrl.u32 %v885_v39, 7  ;;  %v5921_v45 = vld [vmem:[%s7206_s18 + $0x128] ss:$16 sps:$4 sm:$0xff]   ;;  %p5598_p1 = scmp.ne.s32.totalorder %s7032_s28, 3 }
  0xac   : > { %3562 = vmatpush1.bf16.msra.mxu0 %v5884_v15  ;;  %3890 = vmatpush1.bf16.msra.mxu1 %v5885_v16  ;;  %v5922_v46 = vld [vmem:[%s7206_s18 + $0x144] ss:$16 sps:$4 sm:$0xff]   ;;  %v5924_v47 = vld [vmem:[%s7206_s18 + $0x14c] ss:$16 sps:$4 sm:$0xff]   ;;  %v5926_v48 = vld [vmem:[%s7206_s18 + $0x140] ss:$16 sps:$4 sm:$0xff]  }
  0xad   : > { %3563 = vmatprep.subr.bf16.mxu0 %v5886_v17  ;;  %3891 = vmatprep.subr.bf16.mxu1 %v5888_v18  ;;  %v884_v43 = vunpack.c.0.s8 %v883_v38  ;;  %v5927_v49 = vld [vmem:[%s7206_s18 + $0x148] ss:$16 sps:$4 sm:$0xff]   ;;  %v5928_v51 = vld [vmem:[%s7206_s18 + $0x164] ss:$16 sps:$4 sm:$0xff]   ;;  %v5930_v52 = vld [vmem:[%s7206_s18 + $0x16c] ss:$16 sps:$4 sm:$0xff]  }
  0xae   : > { %v7280_v53 = vld [vmem:[%s7224_s29] sm:$0xff]  ;;  %v5932_v54 = vld [vmem:[%s7206_s18 + $0x160] ss:$16 sps:$4 sm:$0xff]   ;;  %v5934_v57 = vld [vmem:[%s7206_s18 + $0x184] ss:$16 sps:$4 sm:$0xff]   ;;  %vm4961_vm0 = vcmask (!%p5598_p1), 517120  }
  0xaf   : > { %v7275_v50 = vsub.s32 %v884_v43, %v7267_v44  ;;  %v5933_v56 = vld [vmem:[%s7206_s18 + $0x168] ss:$16 sps:$4 sm:$0xff]   ;;  %v5936_v58 = vld [vmem:[%s7206_s18 + $0x18c] ss:$16 sps:$4 sm:$0xff]   ;;  %v5938_v60 = vld [vmem:[%s7206_s18 + $0x180] ss:$16 sps:$4 sm:$0xff]  }
  0xb0   : > { %3564 = vmatpush1.bf16.msra.mxu0 %v5890_v19  ;;  %3892 = vmatpush1.bf16.msra.mxu1 %v5891_v20  ;;  %v5939_v62 = vld [vmem:[%s7206_s18 + $0x188] ss:$16 sps:$4 sm:$0xff]   ;;  %v5940_v63 = vld [vmem:[%s7206_s18 + $0x1a4] ss:$16 sps:$4 sm:$0xff]   ;;  %v5942_v0 = vld [vmem:[%s7206_s18 + $0x1ac] ss:$16 sps:$4 sm:$0xff]  }
  0xb1   : > { %3565 = vmatprep.subr.bf16.mxu0 %v5892_v21  ;;  %3893 = vmatprep.subr.bf16.mxu1 %v5894_v22  ;;  %v888_v55 = vrot.slane %v7280_v53, %v7275_v50  ;;  %v5944_v1 = vld [vmem:[%s7206_s18 + $0x1a0] ss:$16 sps:$4 sm:$0xff]   ;;  %v5945_v2 = vld [vmem:[%s7206_s18 + $0x1a8] ss:$16 sps:$4 sm:$0xff]   ;;  %v5946_v3 = vld [vmem:[%s7206_s18 + $0x1c4] ss:$16 sps:$4 sm:$0xff]  }
  0xb2   : > { %v5948_v4 = vld [vmem:[%s7206_s18 + $0x1cc] ss:$16 sps:$4 sm:$0xff]   ;;  %v5950_v5 = vld [vmem:[%s7206_s18 + $0x1c0] ss:$16 sps:$4 sm:$0xff]   ;;  %v5951_v6 = vld [vmem:[%s7206_s18 + $0x1c8] ss:$16 sps:$4 sm:$0xff]  }
  0xb3   : > { %v896_v59 = vcombine.high %v888_v55, %v888_v55  ;;  %v5952_v7 = vld [vmem:[%s7206_s18 + $0x1e4] ss:$16 sps:$4 sm:$0xff]   ;;  %v5954_v8 = vld [vmem:[%s7206_s18 + $0x1ec] ss:$16 sps:$4 sm:$0xff]   ;;  %v5956_v9 = vld [vmem:[%s7206_s18 + $0x1e0] ss:$16 sps:$4 sm:$0xff]   ;;  %v7307_v14 = vrot.slane %v888_v55, %v7275_v50 }
  0xb4   : > { %3566 = vmatpush1.bf16.msra.mxu0 %v5896_v23  ;;  %3894 = vmatpush1.bf16.msra.mxu1 %v5897_v24  ;;  %v5957_v10 = vld [vmem:[%s7206_s18 + $0x1e8] ss:$16 sps:$4 sm:$0xff]   ;;  %v5960_v11 = vld [vmem:[%s7206_s18 + $0x204] ss:$16 sps:$4 sm:$0xff]   ;;  %v5963_v12 = vld [vmem:[%s7206_s18 + $0x20c] ss:$16 sps:$4 sm:$0xff]  }
  0xb5   : > { %3567 = vmatprep.subr.bf16.mxu0 %v5898_v25  ;;  %3895 = vmatprep.subr.bf16.mxu1 %v5900_v26  ;;  %v918_v61 = vrot.slane %v896_v59, %v7275_v50  ;;  %v5958_v13 = vld [vmem:[%s7206_s18 + $0x200] ss:$16 sps:$4 sm:$0xff]   ;;  %v5961_v15 = vld [vmem:[%s7206_s18 + $0x208] ss:$16 sps:$4 sm:$0xff]   ;;  %v5966_v16 = vld [vmem:[%s7206_s18 + $0x224] ss:$16 sps:$4 sm:$0xff]  }
  0xb6   : > { %v5969_v17 = vld [vmem:[%s7206_s18 + $0x22c] ss:$16 sps:$4 sm:$0xff]   ;;  %v5964_v19 = vld [vmem:[%s7206_s18 + $0x220] ss:$16 sps:$4 sm:$0xff]   ;;  %v5967_v20 = vld [vmem:[%s7206_s18 + $0x228] ss:$16 sps:$4 sm:$0xff]  }
  0xb7   : > { %3587 = vmatprep.mubr.bf16.mxu0 %v918_v61  ;;  %3915 = vmatprep.mubr.bf16.mxu1 %v918_v61  ;;  %v928_v18 = vcombine.high %v918_v61, %v918_v61  ;;  %v5972_v21 = vld [vmem:[%s7206_s18 + $0x244] ss:$16 sps:$4 sm:$0xff]   ;;  %v5975_v22 = vld [vmem:[%s7206_s18 + $0x24c] ss:$16 sps:$4 sm:$0xff]   ;;  %v5970_v23 = vld [vmem:[%s7206_s18 + $0x240] ss:$16 sps:$4 sm:$0xff]  }
  0xb8   : > { %3568 = vmatpush1.bf16.msra.mxu0 %v5902_v27  ;;  %3896 = vmatpush1.bf16.msra.mxu1 %v5903_v28  ;;  %v5973_v24 = vld [vmem:[%s7206_s18 + $0x248] ss:$16 sps:$4 sm:$0xff]   ;;  %v5978_v25 = vld [vmem:[%s7206_s18 + $0x264] ss:$16 sps:$4 sm:$0xff]   ;;  %v5981_v26 = vld [vmem:[%s7206_s18 + $0x26c] ss:$16 sps:$4 sm:$0xff]  }
  0xb9   : > { %3569 = vmatprep.subr.bf16.mxu0 %v5904_v29  ;;  %3897 = vmatprep.subr.bf16.mxu1 %v5906_v30  ;;  %v5976_v27 = vld [vmem:[%s7206_s18 + $0x260] ss:$16 sps:$4 sm:$0xff]   ;;  %v5979_v28 = vld [vmem:[%s7206_s18 + $0x268] ss:$16 sps:$4 sm:$0xff]   ;;  %v5984_v29 = vld [vmem:[%s7206_s18 + $0x284] ss:$16 sps:$4 sm:$0xff]  }
  0xba   : > { %v5987_v30 = vld [vmem:[%s7206_s18 + $0x28c] ss:$16 sps:$4 sm:$0xff]   ;;  %v5996_v37 = vld [vmem:[%s7206_s18 + $0x2c4] ss:$16 sps:$4 sm:$0xff]   ;;  %v5994_v39 = vld [vmem:[%s7206_s18 + $0x2c0] ss:$16 sps:$4 sm:$0xff]  }
  0xbb   : > { %v5999_v38 = vld [vmem:[%s7206_s18 + $0x2cc] ss:$16 sps:$4 sm:$0xff]   ;;  %v6000_v43 = vld [vmem:[%s7206_s18 + $0x2e0] ss:$16 sps:$4 sm:$0xff]   ;;  %v6015_v55 = vld [vmem:[%s7206_s18 + $0x328] ss:$16 sps:$4 sm:$0xff]  }
  0xbc   : > { %3570 = vmatpush1.bf16.msra.mxu0 %v5908_v31  ;;  %3898 = vmatpush1.bf16.msra.mxu1 %v5909_v32  ;;  %v5982_v31 = vld [vmem:[%s7206_s18 + $0x280] ss:$16 sps:$4 sm:$0xff]   ;;  %v5985_v32 = vld [vmem:[%s7206_s18 + $0x288] ss:$16 sps:$4 sm:$0xff]   ;;  %v6029_v61 = vld [vmem:[%s7206_s18 + $0x36c] ss:$16 sps:$4 sm:$0xff]  }
  0xbd   : > { %3571 = vmatprep.subr.bf16.mxu0 %v5910_v33  ;;  %3899 = vmatprep.subr.bf16.mxu1 %v5912_v34  ;;  %v5990_v33 = vld [vmem:[%s7206_s18 + $0x2a4] ss:$16 sps:$4 sm:$0xff]   ;;  %v5993_v34 = vld [vmem:[%s7206_s18 + $0x2ac] ss:$16 sps:$4 sm:$0xff]   ;;  %v6021_v59 = vld [vmem:[%s7206_s18 + $0x348] ss:$16 sps:$4 sm:$0xff]  }
  0xc0   : > { %3572 = vmatpush1.bf16.msra.mxu0 %v5914_v35  ;;  %3900 = vmatpush1.bf16.msra.mxu1 %v5915_v36  ;;  %v5988_v35 = vld [vmem:[%s7206_s18 + $0x2a0] ss:$16 sps:$4 sm:$0xff]   ;;  %v5991_v36 = vld [vmem:[%s7206_s18 + $0x2a8] ss:$16 sps:$4 sm:$0xff]  }
  0xc1   : > { %3573 = vmatprep.subr.bf16.mxu0 %v5916_v40  ;;  %3901 = vmatprep.subr.bf16.mxu1 %v5918_v41  ;;  %v5997_v40 = vld [vmem:[%s7206_s18 + $0x2c8] ss:$16 sps:$4 sm:$0xff]   ;;  %v6002_v41 = vld [vmem:[%s7206_s18 + $0x2e4] ss:$16 sps:$4 sm:$0xff]  }
  0xc4   : > { %3574 = vmatpush1.bf16.msra.mxu0 %v5920_v42  ;;  %3902 = vmatpush1.bf16.msra.mxu1 %v5921_v45  ;;  %v6005_v42 = vld [vmem:[%s7206_s18 + $0x2ec] ss:$16 sps:$4 sm:$0xff]   ;;  %v6003_v45 = vld [vmem:[%s7206_s18 + $0x2e8] ss:$16 sps:$4 sm:$0xff]  }
  0xc5   : > { %3575 = vmatprep.subr.bf16.mxu0 %v5922_v46  ;;  %3903 = vmatprep.subr.bf16.mxu1 %v5924_v47  ;;  %v6008_v46 = vld [vmem:[%s7206_s18 + $0x304] ss:$16 sps:$4 sm:$0xff]   ;;  %v6011_v47 = vld [vmem:[%s7206_s18 + $0x30c] ss:$16 sps:$4 sm:$0xff]  }
  0xc8   : > { %3576 = vmatpush1.bf16.msra.mxu0 %v5926_v48  ;;  %3904 = vmatpush1.bf16.msra.mxu1 %v5927_v49  ;;  %v6006_v48 = vld [vmem:[%s7206_s18 + $0x300] ss:$16 sps:$4 sm:$0xff]   ;;  %v6009_v49 = vld [vmem:[%s7206_s18 + $0x308] ss:$16 sps:$4 sm:$0xff]  }
  0xc9   : > { %3577 = vmatprep.subr.bf16.mxu0 %v5928_v51  ;;  %3905 = vmatprep.subr.bf16.mxu1 %v5930_v52  ;;  %v6014_v51 = vld [vmem:[%s7206_s18 + $0x324] ss:$16 sps:$4 sm:$0xff]   ;;  %v6017_v52 = vld [vmem:[%s7206_s18 + $0x32c] ss:$16 sps:$4 sm:$0xff]  }
  0xcc   : > { %3578 = vmatpush1.bf16.msra.mxu0 %v5932_v54  ;;  %3906 = vmatpush1.bf16.msra.mxu1 %v5933_v56  ;;  %v6012_v54 = vld [vmem:[%s7206_s18 + $0x320] ss:$16 sps:$4 sm:$0xff]   ;;  %v6020_v56 = vld [vmem:[%s7206_s18 + $0x344] ss:$16 sps:$4 sm:$0xff]  }
  0xcd   : > { %3579 = vmatprep.subr.bf16.mxu0 %v5934_v57  ;;  %3907 = vmatprep.subr.bf16.mxu1 %v5936_v58  ;;  %v6023_v57 = vld [vmem:[%s7206_s18 + $0x34c] ss:$16 sps:$4 sm:$0xff]   ;;  %v6018_v58 = vld [vmem:[%s7206_s18 + $0x340] ss:$16 sps:$4 sm:$0xff]  }
  0xd0   : > { %3580 = vmatpush1.bf16.msra.mxu0 %v5938_v60  ;;  %3908 = vmatpush1.bf16.msra.mxu1 %v5939_v62  ;;  %v6026_v60 = vld [vmem:[%s7206_s18 + $0x364] ss:$16 sps:$4 sm:$0xff]   ;;  %v6024_v62 = vld [vmem:[%s7206_s18 + $0x360] ss:$16 sps:$4 sm:$0xff]  }
  0xd1   : > { %3581 = vmatprep.subr.bf16.mxu0 %v5940_v63  ;;  %3909 = vmatprep.subr.bf16.mxu1 %v5942_v0  ;;  %v6027_v63 = vld [vmem:[%s7206_s18 + $0x368] ss:$16 sps:$4 sm:$0xff]   ;;  %v6032_v0 = vld [vmem:[%s7206_s18 + $0x384] ss:$16 sps:$4 sm:$0xff]  }
  0xd4   : > { %3582 = vmatpush1.bf16.msra.mxu0 %v5944_v1  ;;  %3910 = vmatpush1.bf16.msra.mxu1 %v5945_v2  ;;  %v6035_v1 = vld [vmem:[%s7206_s18 + $0x38c] ss:$16 sps:$4 sm:$0xff]   ;;  %v6030_v2 = vld [vmem:[%s7206_s18 + $0x380] ss:$16 sps:$4 sm:$0xff]  }
  0xd5   : > { %3583 = vmatprep.subr.bf16.mxu0 %v5946_v3  ;;  %3911 = vmatprep.subr.bf16.mxu1 %v5948_v4  ;;  %v6033_v3 = vld [vmem:[%s7206_s18 + $0x388] ss:$16 sps:$4 sm:$0xff]   ;;  %v6038_v4 = vld [vmem:[%s7206_s18 + $0x3a4] ss:$16 sps:$4 sm:$0xff]  }
  0xd8   : > { %3584 = vmatpush1.bf16.msra.mxu0 %v5950_v5  ;;  %3912 = vmatpush1.bf16.msra.mxu1 %v5951_v6  ;;  %v6041_v5 = vld [vmem:[%s7206_s18 + $0x3ac] ss:$16 sps:$4 sm:$0xff]   ;;  %v6036_v6 = vld [vmem:[%s7206_s18 + $0x3a0] ss:$16 sps:$4 sm:$0xff]  }
  0xd9   : > { %3585 = vmatprep.subr.bf16.mxu0 %v5952_v7  ;;  %3913 = vmatprep.subr.bf16.mxu1 %v5954_v8  ;;  %v6039_v7 = vld [vmem:[%s7206_s18 + $0x3a8] ss:$16 sps:$4 sm:$0xff]   ;;  %v6044_v8 = vld [vmem:[%s7206_s18 + $0x3c4] ss:$16 sps:$4 sm:$0xff]  }
  0xdc   : > { %3586 = vmatpush1.bf16.msra.mxu0 %v5956_v9  ;;  %3914 = vmatpush1.bf16.msra.mxu1 %v5957_v10  ;;  %v6047_v9 = vld [vmem:[%s7206_s18 + $0x3cc] ss:$16 sps:$4 sm:$0xff]   ;;  %v881_v10 = vcombine.high %v7280_v53, %v7280_v53  ;;  %v6051_v53 = vld [vmem:[%s7206_s18 + $0x3e8] ss:$16 sps:$4 sm:$0xff]  }
  0xdd   : > { %3596 = vmatprep.subr.bf16.mxu0 %v5960_v11  ;;  %3924 = vmatprep.subr.bf16.mxu1 %v5963_v12  ;;  %v6042_v11 = vld [vmem:[%s7206_s18 + $0x3c0] ss:$16 sps:$4 sm:$0xff]   ;;  %v6045_v12 = vld [vmem:[%s7206_s18 + $0x3c8] ss:$16 sps:$4 sm:$0xff]  }
  0xdf   : > { %3588 = vmatmul.mubr.bf16.vlgmr.msra.gmra.mrb[0].mxu0 %v7307_v14  ;;  %3916 = vmatmul.mubr.bf16.vlgmr.msra.gmra.mrb[0].mxu1 %v7307_v14 }
  0xe0   : > { %3597 = vmatpush1.bf16.msra.mxu0 %v5958_v13  ;;  %3925 = vmatpush1.bf16.msra.mxu1 %v5961_v15  ;;  %v6050_v13 = vld [vmem:[%s7206_s18 + $0x3e4] ss:$16 sps:$4 sm:$0xff]   ;;  %v6053_v15 = vld [vmem:[%s7206_s18 + $0x3ec] ss:$16 sps:$4 sm:$0xff]  }
  0xe1   : > { %3598 = vmatprep.subr.bf16.mxu0 %v5966_v16  ;;  %3926 = vmatprep.subr.bf16.mxu1 %v5969_v17  ;;  %v7373_v16 = vrot.slane %v881_v10, %v7275_v50  ;;  %v6048_v17 = vld [vmem:[%s7206_s18 + $0x3e0] ss:$16 sps:$4 sm:$0xff]   ;;  %v6129_v10 = vld [vmem:[%s7206_s18 + $0x588] ss:$16 sps:$4 sm:$0xff]  }
  0xe2   : > { %3628 = vmatprep.mubr.bf16.mxu0 %v928_v18  ;;  %3956 = vmatprep.mubr.bf16.mxu1 %v928_v18  ;;  %v6056_v18 = vld [vmem:[%s7206_s18 + $0x404] ss:$16 sps:$4 sm:$0xff]  }
  0xe4   : > { %3599 = vmatpush1.bf16.msra.mxu0 %v5964_v19  ;;  %3927 = vmatpush1.bf16.msra.mxu1 %v5967_v20  ;;  %v6059_v19 = vld [vmem:[%s7206_s18 + $0x40c] ss:$16 sps:$4 sm:$0xff]   ;;  %v897_v20 = vcombine.high %v7373_v16, %v7373_v16 }
  0xe5   : > { %3600 = vmatprep.subr.bf16.mxu0 %v5972_v21  ;;  %3928 = vmatprep.subr.bf16.mxu1 %v5975_v22  ;;  %v6054_v21 = vld [vmem:[%s7206_s18 + $0x400] ss:$16 sps:$4 sm:$0xff]   ;;  %v926_v22 = vcombine.high %v7307_v14, %v7307_v14  ;;  %v6063_v14 = vld [vmem:[%s7206_s18 + $0x428] ss:$16 sps:$4 sm:$0xff]  }
  0xe8   : > { %3601 = vmatpush1.bf16.msra.mxu0 %v5970_v23  ;;  %3929 = vmatpush1.bf16.msra.mxu1 %v5973_v24  ;;  %v6057_v23 = vld [vmem:[%s7206_s18 + $0x408] ss:$16 sps:$4 sm:$0xff]   ;;  %v6062_v24 = vld [vmem:[%s7206_s18 + $0x424] ss:$16 sps:$4 sm:$0xff]  }
  0xe9   : > { %3602 = vmatprep.subr.bf16.mxu0 %v5978_v25  ;;  %3930 = vmatprep.subr.bf16.mxu1 %v5981_v26  ;;  %v6065_v25 = vld [vmem:[%s7206_s18 + $0x42c] ss:$16 sps:$4 sm:$0xff]   ;;  %v7388_v26 = vrot.slane %v897_v20, %v7275_v50  ;;  %v6146_v20 = vld [vmem:[%s7206_s18 + $0x5e4] ss:$16 sps:$4 sm:$0xff]  }
  0xec   : > { %3603 = vmatpush1.bf16.msra.mxu0 %v5976_v27  ;;  %3931 = vmatpush1.bf16.msra.mxu1 %v5979_v28  ;;  %v6060_v27 = vld [vmem:[%s7206_s18 + $0x420] ss:$16 sps:$4 sm:$0xff]   ;;  %v6068_v28 = vld [vmem:[%s7206_s18 + $0x444] ss:$16 sps:$4 sm:$0xff]  }
  0xed   : > { %3604 = vmatprep.subr.bf16.mxu0 %v5984_v29  ;;  %3932 = vmatprep.subr.bf16.mxu1 %v5987_v30  ;;  %v6071_v29 = vld [vmem:[%s7206_s18 + $0x44c] ss:$16 sps:$4 sm:$0xff]   ;;  %v6066_v30 = vld [vmem:[%s7206_s18 + $0x440] ss:$16 sps:$4 sm:$0xff]  }
  0xf0   : > { %3605 = vmatpush1.bf16.msra.mxu0 %v5982_v31  ;;  %3933 = vmatpush1.bf16.msra.mxu1 %v5985_v32  ;;  %v6069_v31 = vld [vmem:[%s7206_s18 + $0x448] ss:$16 sps:$4 sm:$0xff]   ;;  %v6074_v32 = vld [vmem:[%s7206_s18 + $0x464] ss:$16 sps:$4 sm:$0xff]  }
  0xf1   : > { %3606 = vmatprep.subr.bf16.mxu0 %v5990_v33  ;;  %3934 = vmatprep.subr.bf16.mxu1 %v5993_v34  ;;  %v6077_v33 = vld [vmem:[%s7206_s18 + $0x46c] ss:$16 sps:$4 sm:$0xff]   ;;  %v6072_v34 = vld [vmem:[%s7206_s18 + $0x460] ss:$16 sps:$4 sm:$0xff]  }
  0xf4   : > { %3607 = vmatpush1.bf16.msra.mxu0 %v5988_v35  ;;  %3935 = vmatpush1.bf16.msra.mxu1 %v5991_v36  ;;  %v6075_v35 = vld [vmem:[%s7206_s18 + $0x468] ss:$16 sps:$4 sm:$0xff]   ;;  %v6080_v36 = vld [vmem:[%s7206_s18 + $0x484] ss:$16 sps:$4 sm:$0xff]  }
  0xf5   : > { %3608 = vmatprep.subr.bf16.mxu0 %v5996_v37  ;;  %3936 = vmatprep.subr.bf16.mxu1 %v5999_v38  ;;  %v6083_v37 = vld [vmem:[%s7206_s18 + $0x48c] ss:$16 sps:$4 sm:$0xff]   ;;  %v6078_v38 = vld [vmem:[%s7206_s18 + $0x480] ss:$16 sps:$4 sm:$0xff]  }
  0xf8   : > { %3609 = vmatpush1.bf16.msra.mxu0 %v5994_v39  ;;  %3937 = vmatpush1.bf16.msra.mxu1 %v5997_v40  ;;  %v6081_v39 = vld [vmem:[%s7206_s18 + $0x488] ss:$16 sps:$4 sm:$0xff]   ;;  %v6086_v40 = vld [vmem:[%s7206_s18 + $0x4a4] ss:$16 sps:$4 sm:$0xff]  }
  0xf9   : > { %3610 = vmatprep.subr.bf16.mxu0 %v6002_v41  ;;  %3938 = vmatprep.subr.bf16.mxu1 %v6005_v42  ;;  %v6089_v41 = vld [vmem:[%s7206_s18 + $0x4ac] ss:$16 sps:$4 sm:$0xff]   ;;  %v6084_v42 = vld [vmem:[%s7206_s18 + $0x4a0] ss:$16 sps:$4 sm:$0xff]  }
  0xfc   : > { %3611 = vmatpush1.bf16.msra.mxu0 %v6000_v43  ;;  %3939 = vmatpush1.bf16.msra.mxu1 %v6003_v45  ;;  %v6087_v43 = vld [vmem:[%s7206_s18 + $0x4a8] ss:$16 sps:$4 sm:$0xff]   ;;  %v6092_v45 = vld [vmem:[%s7206_s18 + $0x4c4] ss:$16 sps:$4 sm:$0xff]  }
  0xfd   : > { %3612 = vmatprep.subr.bf16.mxu0 %v6008_v46  ;;  %3940 = vmatprep.subr.bf16.mxu1 %v6011_v47  ;;  %v6095_v46 = vld [vmem:[%s7206_s18 + $0x4cc] ss:$16 sps:$4 sm:$0xff]   ;;  %v6090_v47 = vld [vmem:[%s7206_s18 + $0x4c0] ss:$16 sps:$4 sm:$0xff]  }
 0x100   : > { %3613 = vmatpush1.bf16.msra.mxu0 %v6006_v48  ;;  %3941 = vmatpush1.bf16.msra.mxu1 %v6009_v49  ;;  %v6093_v48 = vld [vmem:[%s7206_s18 + $0x4c8] ss:$16 sps:$4 sm:$0xff]   ;;  %v6098_v49 = vld [vmem:[%s7206_s18 + $0x4e4] ss:$16 sps:$4 sm:$0xff]  }
 0x101   : > { %3614 = vmatprep.subr.bf16.mxu0 %v6014_v51  ;;  %3942 = vmatprep.subr.bf16.mxu1 %v6017_v52  ;;  %v6101_v51 = vld [vmem:[%s7206_s18 + $0x4ec] ss:$16 sps:$4 sm:$0xff]   ;;  %v6096_v52 = vld [vmem:[%s7206_s18 + $0x4e0] ss:$16 sps:$4 sm:$0xff]  }
 0x104   : > { %3615 = vmatpush1.bf16.msra.mxu0 %v6012_v54  ;;  %3943 = vmatpush1.bf16.msra.mxu1 %v6015_v55  ;;  %v6099_v54 = vld [vmem:[%s7206_s18 + $0x4e8] ss:$16 sps:$4 sm:$0xff]   ;;  %v6104_v55 = vld [vmem:[%s7206_s18 + $0x504] ss:$16 sps:$4 sm:$0xff]  }
 0x105   : > { %3616 = vmatprep.subr.bf16.mxu0 %v6020_v56  ;;  %3944 = vmatprep.subr.bf16.mxu1 %v6023_v57  ;;  %v6107_v56 = vld [vmem:[%s7206_s18 + $0x50c] ss:$16 sps:$4 sm:$0xff]   ;;  %v6102_v57 = vld [vmem:[%s7206_s18 + $0x500] ss:$16 sps:$4 sm:$0xff]  }
 0x108   : > { %3617 = vmatpush1.bf16.msra.mxu0 %v6018_v58  ;;  %3945 = vmatpush1.bf16.msra.mxu1 %v6021_v59  ;;  %v6105_v58 = vld [vmem:[%s7206_s18 + $0x508] ss:$16 sps:$4 sm:$0xff]   ;;  %v6110_v59 = vld [vmem:[%s7206_s18 + $0x524] ss:$16 sps:$4 sm:$0xff]  }
 0x109   : > { %3618 = vmatprep.subr.bf16.mxu0 %v6026_v60  ;;  %3946 = vmatprep.subr.bf16.mxu1 %v6029_v61  ;;  %v6113_v60 = vld [vmem:[%s7206_s18 + $0x52c] ss:$16 sps:$4 sm:$0xff]   ;;  %v6108_v61 = vld [vmem:[%s7206_s18 + $0x520] ss:$16 sps:$4 sm:$0xff]  }
 0x10c   : > { %3619 = vmatpush1.bf16.msra.mxu0 %v6024_v62  ;;  %3947 = vmatpush1.bf16.msra.mxu1 %v6027_v63  ;;  %v6111_v62 = vld [vmem:[%s7206_s18 + $0x528] ss:$16 sps:$4 sm:$0xff]   ;;  %v6116_v63 = vld [vmem:[%s7206_s18 + $0x544] ss:$16 sps:$4 sm:$0xff]  }
 0x10d   : > { %3620 = vmatprep.subr.bf16.mxu0 %v6032_v0  ;;  %3948 = vmatprep.subr.bf16.mxu1 %v6035_v1  ;;  %v6119_v0 = vld [vmem:[%s7206_s18 + $0x54c] ss:$16 sps:$4 sm:$0xff]   ;;  %v6114_v1 = vld [vmem:[%s7206_s18 + $0x540] ss:$16 sps:$4 sm:$0xff]  }
 0x110   : > { %3621 = vmatpush1.bf16.msra.mxu0 %v6030_v2  ;;  %3949 = vmatpush1.bf16.msra.mxu1 %v6033_v3  ;;  %v6117_v2 = vld [vmem:[%s7206_s18 + $0x548] ss:$16 sps:$4 sm:$0xff]   ;;  %v6122_v3 = vld [vmem:[%s7206_s18 + $0x564] ss:$16 sps:$4 sm:$0xff]  }
 0x111   : > { %3622 = vmatprep.subr.bf16.mxu0 %v6038_v4  ;;  %3950 = vmatprep.subr.bf16.mxu1 %v6041_v5  ;;  %v6125_v4 = vld [vmem:[%s7206_s18 + $0x56c] ss:$16 sps:$4 sm:$0xff]   ;;  %v6120_v5 = vld [vmem:[%s7206_s18 + $0x560] ss:$16 sps:$4 sm:$0xff]  }
 0x114   : > { %3623 = vmatpush1.bf16.msra.mxu0 %v6036_v6  ;;  %3951 = vmatpush1.bf16.msra.mxu1 %v6039_v7  ;;  %v6123_v6 = vld [vmem:[%s7206_s18 + $0x568] ss:$16 sps:$4 sm:$0xff]   ;;  %v6128_v7 = vld [vmem:[%s7206_s18 + $0x584] ss:$16 sps:$4 sm:$0xff]  }
 0x115   : > { %3624 = vmatprep.subr.bf16.mxu0 %v6044_v8  ;;  %3952 = vmatprep.subr.bf16.mxu1 %v6047_v9  ;;  %v6131_v8 = vld [vmem:[%s7206_s18 + $0x58c] ss:$16 sps:$4 sm:$0xff]   ;;  %v6126_v9 = vld [vmem:[%s7206_s18 + $0x580] ss:$16 sps:$4 sm:$0xff]  }
 0x118   : > { %3625 = vmatpush1.bf16.msra.mxu0 %v6042_v11  ;;  %3953 = vmatpush1.bf16.msra.mxu1 %v6045_v12  ;;  %v6134_v11 = vld [vmem:[%s7206_s18 + $0x5a4] ss:$16 sps:$4 sm:$0xff]   ;;  %v6137_v12 = vld [vmem:[%s7206_s18 + $0x5ac] ss:$16 sps:$4 sm:$0xff]  }
 0x119   : > { %3626 = vmatprep.subr.bf16.mxu0 %v6050_v13  ;;  %3954 = vmatprep.subr.bf16.mxu1 %v6053_v15  ;;  %v6132_v13 = vld [vmem:[%s7206_s18 + $0x5a0] ss:$16 sps:$4 sm:$0xff]   ;;  %v6135_v15 = vld [vmem:[%s7206_s18 + $0x5a8] ss:$16 sps:$4 sm:$0xff]  }
 0x11c   : > { %3627 = vmatpush1.bf16.msra.mxu0 %v6048_v17  ;;  %3955 = vmatpush1.bf16.msra.mxu1 %v6051_v53  ;;  %v6140_v17 = vld [vmem:[%s7206_s18 + $0x5c4] ss:$16 sps:$4 sm:$0xff]   ;;  %v6143_v53 = vld [vmem:[%s7206_s18 + $0x5cc] ss:$16 sps:$4 sm:$0xff]  }
 0x11d   : > { %3637 = vmatprep.subr.bf16.mxu0 %v6056_v18  ;;  %3965 = vmatprep.subr.bf16.mxu1 %v6059_v19  ;;  %v6138_v18 = vld [vmem:[%s7206_s18 + $0x5c0] ss:$16 sps:$4 sm:$0xff]   ;;  %v6141_v19 = vld [vmem:[%s7206_s18 + $0x5c8] ss:$16 sps:$4 sm:$0xff]  }
 0x11f   : > { %3629 = vmatmul.mubr.bf16.vlgmr.msra.gmra.mrb[0].mxu0 %v926_v22  ;;  %3957 = vmatmul.mubr.bf16.vlgmr.msra.gmra.mrb[0].mxu1 %v926_v22  ;;  %v6144_v22 = vld [vmem:[%s7206_s18 + $0x5e0] ss:$16 sps:$4 sm:$0xff]  }
 0x120   : > { %3638 = vmatpush1.bf16.msra.mxu0 %v6054_v21  ;;  %3966 = vmatpush1.bf16.msra.mxu1 %v6057_v23  ;;  %v6149_v21 = vld [vmem:[%s7206_s18 + $0x5ec] ss:$16 sps:$4 sm:$0xff]   ;;  %v6147_v23 = vld [vmem:[%s7206_s18 + $0x5e8] ss:$16 sps:$4 sm:$0xff]  }
 0x121   : > { %3639 = vmatprep.subr.bf16.mxu0 %v6062_v24  ;;  %3967 = vmatprep.subr.bf16.mxu1 %v6065_v25  ;;  %v6153_v24 = vld [vmem:[%s7206_s18 + $0x604] ss:$16 sps:$4 sm:$0xff]   ;;  %v6156_v25 = vld [vmem:[%s7206_s18 + $0x60c] ss:$16 sps:$4 sm:$0xff]  }
 0x122   : > { %3669 = vmatprep.mubr.bf16.mxu0 %v7388_v26  ;;  %3997 = vmatprep.mubr.bf16.mxu1 %v7388_v26 }
 0x124   : > { %3640 = vmatpush1.bf16.msra.mxu0 %v6060_v27  ;;  %3968 = vmatpush1.bf16.msra.mxu1 %v6063_v14  ;;  %v6151_v27 = vld [vmem:[%s7206_s18 + $0x600] ss:$16 sps:$4 sm:$0xff]   ;;  %v7455_v14 = vrot.slane %v7373_v16, %v7275_v50 }
 0x125   : > { %3641 = vmatprep.subr.bf16.mxu0 %v6068_v28  ;;  %3969 = vmatprep.subr.bf16.mxu1 %v6071_v29  ;;  %v6154_v28 = vld [vmem:[%s7206_s18 + $0x608] ss:$16 sps:$4 sm:$0xff]   ;;  %v6159_v29 = vld [vmem:[%s7206_s18 + $0x624] ss:$16 sps:$4 sm:$0xff]   ;;  %v6157_v16 = vld [vmem:[%s7206_s18 + $0x620] ss:$16 sps:$4 sm:$0xff]  }
 0x128   : > { %3642 = vmatpush1.bf16.msra.mxu0 %v6066_v30  ;;  %3970 = vmatpush1.bf16.msra.mxu1 %v6069_v31  ;;  %v6162_v30 = vld [vmem:[%s7206_s18 + $0x62c] ss:$16 sps:$4 sm:$0xff]   ;;  %v929_v31 = vcombine.high %v7388_v26, %v7388_v26  ;;  %v6163_v26 = vld [vmem:[%s7206_s18 + $0x640] ss:$16 sps:$4 sm:$0xff]  }
 0x129   : > { %3643 = vmatprep.subr.bf16.mxu0 %v6074_v32  ;;  %3971 = vmatprep.subr.bf16.mxu1 %v6077_v33  ;;  %v6160_v32 = vld [vmem:[%s7206_s18 + $0x628] ss:$16 sps:$4 sm:$0xff]   ;;  %v6165_v33 = vld [vmem:[%s7206_s18 + $0x644] ss:$16 sps:$4 sm:$0xff]  }
 0x12c   : > { %3644 = vmatpush1.bf16.msra.mxu0 %v6072_v34  ;;  %3972 = vmatpush1.bf16.msra.mxu1 %v6075_v35  ;;  %v6168_v34 = vld [vmem:[%s7206_s18 + $0x64c] ss:$16 sps:$4 sm:$0xff]   ;;  %v6166_v35 = vld [vmem:[%s7206_s18 + $0x648] ss:$16 sps:$4 sm:$0xff]  }
 0x12d   : > { %3645 = vmatprep.subr.bf16.mxu0 %v6080_v36  ;;  %3973 = vmatprep.subr.bf16.mxu1 %v6083_v37  ;;  %v6171_v36 = vld [vmem:[%s7206_s18 + $0x664] ss:$16 sps:$4 sm:$0xff]   ;;  %v6174_v37 = vld [vmem:[%s7206_s18 + $0x66c] ss:$16 sps:$4 sm:$0xff]  }
 0x130   : > { %3646 = vmatpush1.bf16.msra.mxu0 %v6078_v38  ;;  %3974 = vmatpush1.bf16.msra.mxu1 %v6081_v39  ;;  %v6169_v38 = vld [vmem:[%s7206_s18 + $0x660] ss:$16 sps:$4 sm:$0xff]   ;;  %v6172_v39 = vld [vmem:[%s7206_s18 + $0x668] ss:$16 sps:$4 sm:$0xff]  }
 0x131   : > { %3647 = vmatprep.subr.bf16.mxu0 %v6086_v40  ;;  %3975 = vmatprep.subr.bf16.mxu1 %v6089_v41  ;;  %v6177_v40 = vld [vmem:[%s7206_s18 + $0x684] ss:$16 sps:$4 sm:$0xff]   ;;  %v6180_v41 = vld [vmem:[%s7206_s18 + $0x68c] ss:$16 sps:$4 sm:$0xff]  }
 0x134   : > { %3648 = vmatpush1.bf16.msra.mxu0 %v6084_v42  ;;  %3976 = vmatpush1.bf16.msra.mxu1 %v6087_v43  ;;  %v6175_v42 = vld [vmem:[%s7206_s18 + $0x680] ss:$16 sps:$4 sm:$0xff]   ;;  %v6178_v43 = vld [vmem:[%s7206_s18 + $0x688] ss:$16 sps:$4 sm:$0xff]  }
 0x135   : > { %3649 = vmatprep.subr.bf16.mxu0 %v6092_v45  ;;  %3977 = vmatprep.subr.bf16.mxu1 %v6095_v46  ;;  %v6183_v45 = vld [vmem:[%s7206_s18 + $0x6a4] ss:$16 sps:$4 sm:$0xff]   ;;  %v6186_v46 = vld [vmem:[%s7206_s18 + $0x6ac] ss:$16 sps:$4 sm:$0xff]  }
 0x138   : > { %3650 = vmatpush1.bf16.msra.mxu0 %v6090_v47  ;;  %3978 = vmatpush1.bf16.msra.mxu1 %v6093_v48  ;;  %v6181_v47 = vld [vmem:[%s7206_s18 + $0x6a0] ss:$16 sps:$4 sm:$0xff]   ;;  %v6184_v48 = vld [vmem:[%s7206_s18 + $0x6a8] ss:$16 sps:$4 sm:$0xff]  }
 0x139   : > { %3651 = vmatprep.subr.bf16.mxu0 %v6098_v49  ;;  %3979 = vmatprep.subr.bf16.mxu1 %v6101_v51  ;;  %v6189_v49 = vld [vmem:[%s7206_s18 + $0x6c4] ss:$16 sps:$4 sm:$0xff]   ;;  %v6192_v51 = vld [vmem:[%s7206_s18 + $0x6cc] ss:$16 sps:$4 sm:$0xff]  }
 0x13c   : > { %3652 = vmatpush1.bf16.msra.mxu0 %v6096_v52  ;;  %3980 = vmatpush1.bf16.msra.mxu1 %v6099_v54  ;;  %v6187_v52 = vld [vmem:[%s7206_s18 + $0x6c0] ss:$16 sps:$4 sm:$0xff]   ;;  %v6190_v54 = vld [vmem:[%s7206_s18 + $0x6c8] ss:$16 sps:$4 sm:$0xff]  }
 0x13d   : > { %3653 = vmatprep.subr.bf16.mxu0 %v6104_v55  ;;  %3981 = vmatprep.subr.bf16.mxu1 %v6107_v56  ;;  %v6195_v55 = vld [vmem:[%s7206_s18 + $0x6e4] ss:$16 sps:$4 sm:$0xff]   ;;  %v6198_v56 = vld [vmem:[%s7206_s18 + $0x6ec] ss:$16 sps:$4 sm:$0xff]  }
 0x140   : > { %3654 = vmatpush1.bf16.msra.mxu0 %v6102_v57  ;;  %3982 = vmatpush1.bf16.msra.mxu1 %v6105_v58  ;;  %v6193_v57 = vld [vmem:[%s7206_s18 + $0x6e0] ss:$16 sps:$4 sm:$0xff]   ;;  %v6196_v58 = vld [vmem:[%s7206_s18 + $0x6e8] ss:$16 sps:$4 sm:$0xff]  }
 0x141   : > { %3655 = vmatprep.subr.bf16.mxu0 %v6110_v59  ;;  %3983 = vmatprep.subr.bf16.mxu1 %v6113_v60  ;;  %v6201_v59 = vld [vmem:[%s7206_s18 + $0x704] ss:$16 sps:$4 sm:$0xff]   ;;  %v6204_v60 = vld [vmem:[%s7206_s18 + $0x70c] ss:$16 sps:$4 sm:$0xff]  }
 0x144   : > { %3656 = vmatpush1.bf16.msra.mxu0 %v6108_v61  ;;  %3984 = vmatpush1.bf16.msra.mxu1 %v6111_v62  ;;  %v6199_v61 = vld [vmem:[%s7206_s18 + $0x700] ss:$16 sps:$4 sm:$0xff]   ;;  %v6202_v62 = vld [vmem:[%s7206_s18 + $0x708] ss:$16 sps:$4 sm:$0xff]  }
 0x145   : > { %3657 = vmatprep.subr.bf16.mxu0 %v6116_v63  ;;  %3985 = vmatprep.subr.bf16.mxu1 %v6119_v0  ;;  %v6207_v63 = vld [vmem:[%s7206_s18 + $0x724] ss:$16 sps:$4 sm:$0xff]   ;;  %v6210_v0 = vld [vmem:[%s7206_s18 + $0x72c] ss:$16 sps:$4 sm:$0xff]  }
 0x148   : > { %3658 = vmatpush1.bf16.msra.mxu0 %v6114_v1  ;;  %3986 = vmatpush1.bf16.msra.mxu1 %v6117_v2  ;;  %v6205_v1 = vld [vmem:[%s7206_s18 + $0x720] ss:$16 sps:$4 sm:$0xff]   ;;  %v6208_v2 = vld [vmem:[%s7206_s18 + $0x728] ss:$16 sps:$4 sm:$0xff]  }
 0x149   : > { %3659 = vmatprep.subr.bf16.mxu0 %v6122_v3  ;;  %3987 = vmatprep.subr.bf16.mxu1 %v6125_v4  ;;  %v6213_v3 = vld [vmem:[%s7206_s18 + $0x744] ss:$16 sps:$4 sm:$0xff]   ;;  %v6216_v4 = vld [vmem:[%s7206_s18 + $0x74c] ss:$16 sps:$4 sm:$0xff]  }
 0x14c   : > { %3660 = vmatpush1.bf16.msra.mxu0 %v6120_v5  ;;  %3988 = vmatpush1.bf16.msra.mxu1 %v6123_v6  ;;  %v6211_v5 = vld [vmem:[%s7206_s18 + $0x740] ss:$16 sps:$4 sm:$0xff]   ;;  %v6214_v6 = vld [vmem:[%s7206_s18 + $0x748] ss:$16 sps:$4 sm:$0xff]  }
 0x14d   : > { %3661 = vmatprep.subr.bf16.mxu0 %v6128_v7  ;;  %3989 = vmatprep.subr.bf16.mxu1 %v6131_v8  ;;  %v6219_v7 = vld [vmem:[%s7206_s18 + $0x764] ss:$16 sps:$4 sm:$0xff]   ;;  %v6222_v8 = vld [vmem:[%s7206_s18 + $0x76c] ss:$16 sps:$4 sm:$0xff]  }
 0x150   : > { %3662 = vmatpush1.bf16.msra.mxu0 %v6126_v9  ;;  %3990 = vmatpush1.bf16.msra.mxu1 %v6129_v10  ;;  %v6217_v9 = vld [vmem:[%s7206_s18 + $0x760] ss:$16 sps:$4 sm:$0xff]   ;;  %v6220_v10 = vld [vmem:[%s7206_s18 + $0x768] ss:$16 sps:$4 sm:$0xff]  }
 0x151   : > { %3663 = vmatprep.subr.bf16.mxu0 %v6134_v11  ;;  %3991 = vmatprep.subr.bf16.mxu1 %v6137_v12  ;;  %v6225_v11 = vld [vmem:[%s7206_s18 + $0x784] ss:$16 sps:$4 sm:$0xff]   ;;  %v6228_v12 = vld [vmem:[%s7206_s18 + $0x78c] ss:$16 sps:$4 sm:$0xff]  }
 0x154   : > { %3664 = vmatpush1.bf16.msra.mxu0 %v6132_v13  ;;  %3992 = vmatpush1.bf16.msra.mxu1 %v6135_v15  ;;  %v6223_v13 = vld [vmem:[%s7206_s18 + $0x780] ss:$16 sps:$4 sm:$0xff]   ;;  %v6226_v15 = vld [vmem:[%s7206_s18 + $0x788] ss:$16 sps:$4 sm:$0xff]  }
 0x155   : > { %3665 = vmatprep.subr.bf16.mxu0 %v6140_v17  ;;  %3993 = vmatprep.subr.bf16.mxu1 %v6143_v53  ;;  %v6231_v17 = vld [vmem:[%s7206_s18 + $0x7a4] ss:$16 sps:$4 sm:$0xff]   ;;  %v6234_v53 = vld [vmem:[%s7206_s18 + $0x7ac] ss:$16 sps:$4 sm:$0xff]  }
 0x158   : > { %3666 = vmatpush1.bf16.msra.mxu0 %v6138_v18  ;;  %3994 = vmatpush1.bf16.msra.mxu1 %v6141_v19  ;;  %v6229_v18 = vld [vmem:[%s7206_s18 + $0x7a0] ss:$16 sps:$4 sm:$0xff]   ;;  %v6232_v19 = vld [vmem:[%s7206_s18 + $0x7a8] ss:$16 sps:$4 sm:$0xff]  }
 0x159   : > { %3667 = vmatprep.subr.bf16.mxu0 %v6146_v20  ;;  %3995 = vmatprep.subr.bf16.mxu1 %v6149_v21  ;;  %v6237_v20 = vld [vmem:[%s7206_s18 + $0x7c4] ss:$16 sps:$4 sm:$0xff]   ;;  %v6240_v21 = vld [vmem:[%s7206_s18 + $0x7cc] ss:$16 sps:$4 sm:$0xff]  }
 0x15c   : > { %3668 = vmatpush1.bf16.msra.mxu0 %v6144_v22  ;;  %3996 = vmatpush1.bf16.msra.mxu1 %v6147_v23  ;;  %v7517_v22 = vld [vmem:[%s7224_s29 + $0x8] sm:$0xff] }
 0x15d   : > { %3678 = vmatprep.subr.bf16.mxu0 %v6153_v24  ;;  %4006 = vmatprep.subr.bf16.mxu1 %v6156_v25  ;;  %v6235_v23 = vld [vmem:[%s7206_s18 + $0x7c0] ss:$16 sps:$4 sm:$0xff]   ;;  %v6238_v24 = vld [vmem:[%s7206_s18 + $0x7c8] ss:$16 sps:$4 sm:$0xff]   ;;  %v6243_v25 = vld [vmem:[%s7206_s18 + $0x7e4] ss:$16 sps:$4 sm:$0xff]  }
 0x15f   : > { %3670 = vmatmul.mubr.bf16.vlgmr.msra.gmra.mrb[0].mxu0 %v7455_v14  ;;  %3998 = vmatmul.mubr.bf16.vlgmr.msra.gmra.mrb[0].mxu1 %v7455_v14 }
 0x160   : > { %3679 = vmatpush1.bf16.msra.mxu0 %v6151_v27  ;;  %4007 = vmatpush1.bf16.msra.mxu1 %v6154_v28  ;;  %v6246_v27 = vld [vmem:[%s7206_s18 + $0x7ec] ss:$16 sps:$4 sm:$0xff]   ;;  %v7525_v28 = vrot.slane %v7517_v22, %v7275_v50 }
 0x161   : > { %3680 = vmatprep.subr.bf16.mxu0 %v6159_v29  ;;  %4008 = vmatprep.subr.bf16.mxu1 %v6162_v30  ;;  %v6241_v29 = vld [vmem:[%s7206_s18 + $0x7e0] ss:$16 sps:$4 sm:$0xff]   ;;  %v6244_v30 = vld [vmem:[%s7206_s18 + $0x7e8] ss:$16 sps:$4 sm:$0xff]  }
 0x162   : > { %3710 = vmatprep.mubr.bf16.mxu0 %v929_v31  ;;  %4038 = vmatprep.mubr.bf16.mxu1 %v929_v31  ;;  %v6249_v31 = vld [vmem:[%s7206_s18 + $0x804] ss:$16 sps:$4 sm:$0xff]  }
 0x164   : > { %3681 = vmatpush1.bf16.msra.mxu0 %v6157_v16  ;;  %4009 = vmatpush1.bf16.msra.mxu1 %v6160_v32  ;;  %v6252_v16 = vld [vmem:[%s7206_s18 + $0x80c] ss:$16 sps:$4 sm:$0xff]   ;;  %v945_v32 = vcombine.high %v7525_v28, %v7525_v28 }
 0x165   : > { %3682 = vmatprep.subr.bf16.mxu0 %v6165_v33  ;;  %4010 = vmatprep.subr.bf16.mxu1 %v6168_v34  ;;  %v927_v33 = vcombine.high %v7455_v14, %v7455_v14  ;;  %v6247_v34 = vld [vmem:[%s7206_s18 + $0x800] ss:$16 sps:$4 sm:$0xff]  }
 0x166   : > { %v6253_v14 = vld [vmem:[%s7206_s18 + $0x820] ss:$16 sps:$4 sm:$0xff]  }
 0x168   : > { %3683 = vmatpush1.bf16.msra.mxu0 %v6163_v26  ;;  %4011 = vmatpush1.bf16.msra.mxu1 %v6166_v35  ;;  %v6250_v26 = vld [vmem:[%s7206_s18 + $0x808] ss:$16 sps:$4 sm:$0xff]   ;;  %v6255_v35 = vld [vmem:[%s7206_s18 + $0x824] ss:$16 sps:$4 sm:$0xff]  }
 0x169   : > { %3684 = vmatprep.subr.bf16.mxu0 %v6171_v36  ;;  %4012 = vmatprep.subr.bf16.mxu1 %v6174_v37  ;;  %v6258_v36 = vld [vmem:[%s7206_s18 + $0x82c] ss:$16 sps:$4 sm:$0xff]   ;;  %v7540_v37 = vrot.slane %v945_v32, %v7275_v50  ;;  %v6334_v32 = vld [vmem:[%s7206_s18 + $0x9c8] ss:$16 sps:$4 sm:$0xff]  }
 0x16c   : > { %3685 = vmatpush1.bf16.msra.mxu0 %v6169_v38  ;;  %4013 = vmatpush1.bf16.msra.mxu1 %v6172_v39  ;;  %v6256_v38 = vld [vmem:[%s7206_s18 + $0x828] ss:$16 sps:$4 sm:$0xff]   ;;  %v6261_v39 = vld [vmem:[%s7206_s18 + $0x844] ss:$16 sps:$4 sm:$0xff]  }
 0x16d   : > { %3686 = vmatprep.subr.bf16.mxu0 %v6177_v40  ;;  %4014 = vmatprep.subr.bf16.mxu1 %v6180_v41  ;;  %v6264_v40 = vld [vmem:[%s7206_s18 + $0x84c] ss:$16 sps:$4 sm:$0xff]   ;;  %v6259_v41 = vld [vmem:[%s7206_s18 + $0x840] ss:$16 sps:$4 sm:$0xff]  }
 0x170   : > { %3687 = vmatpush1.bf16.msra.mxu0 %v6175_v42  ;;  %4015 = vmatpush1.bf16.msra.mxu1 %v6178_v43  ;;  %v6262_v42 = vld [vmem:[%s7206_s18 + $0x848] ss:$16 sps:$4 sm:$0xff]   ;;  %v6267_v43 = vld [vmem:[%s7206_s18 + $0x864] ss:$16 sps:$4 sm:$0xff]  }
 0x171   : > { %3688 = vmatprep.subr.bf16.mxu0 %v6183_v45  ;;  %4016 = vmatprep.subr.bf16.mxu1 %v6186_v46  ;;  %v6270_v45 = vld [vmem:[%s7206_s18 + $0x86c] ss:$16 sps:$4 sm:$0xff]   ;;  %v6265_v46 = vld [vmem:[%s7206_s18 + $0x860] ss:$16 sps:$4 sm:$0xff]  }
 0x174   : > { %3689 = vmatpush1.bf16.msra.mxu0 %v6181_v47  ;;  %4017 = vmatpush1.bf16.msra.mxu1 %v6184_v48  ;;  %v6268_v47 = vld [vmem:[%s7206_s18 + $0x868] ss:$16 sps:$4 sm:$0xff]   ;;  %v6273_v48 = vld [vmem:[%s7206_s18 + $0x884] ss:$16 sps:$4 sm:$0xff]  }
 0x175   : > { %3690 = vmatprep.subr.bf16.mxu0 %v6189_v49  ;;  %4018 = vmatprep.subr.bf16.mxu1 %v6192_v51  ;;  %v6276_v49 = vld [vmem:[%s7206_s18 + $0x88c] ss:$16 sps:$4 sm:$0xff]   ;;  %v6271_v51 = vld [vmem:[%s7206_s18 + $0x880] ss:$16 sps:$4 sm:$0xff]  }
 0x178   : > { %3691 = vmatpush1.bf16.msra.mxu0 %v6187_v52  ;;  %4019 = vmatpush1.bf16.msra.mxu1 %v6190_v54  ;;  %v6274_v52 = vld [vmem:[%s7206_s18 + $0x888] ss:$16 sps:$4 sm:$0xff]   ;;  %v6279_v54 = vld [vmem:[%s7206_s18 + $0x8a4] ss:$16 sps:$4 sm:$0xff]  }
 0x179   : > { %3692 = vmatprep.subr.bf16.mxu0 %v6195_v55  ;;  %4020 = vmatprep.subr.bf16.mxu1 %v6198_v56  ;;  %v6282_v55 = vld [vmem:[%s7206_s18 + $0x8ac] ss:$16 sps:$4 sm:$0xff]   ;;  %v6277_v56 = vld [vmem:[%s7206_s18 + $0x8a0] ss:$16 sps:$4 sm:$0xff]  }
 0x17c   : > { %3693 = vmatpush1.bf16.msra.mxu0 %v6193_v57  ;;  %4021 = vmatpush1.bf16.msra.mxu1 %v6196_v58  ;;  %v6280_v57 = vld [vmem:[%s7206_s18 + $0x8a8] ss:$16 sps:$4 sm:$0xff]   ;;  %v6285_v58 = vld [vmem:[%s7206_s18 + $0x8c4] ss:$16 sps:$4 sm:$0xff]  }
 0x17d   : > { %3694 = vmatprep.subr.bf16.mxu0 %v6201_v59  ;;  %4022 = vmatprep.subr.bf16.mxu1 %v6204_v60  ;;  %v6288_v59 = vld [vmem:[%s7206_s18 + $0x8cc] ss:$16 sps:$4 sm:$0xff]   ;;  %v6283_v60 = vld [vmem:[%s7206_s18 + $0x8c0] ss:$16 sps:$4 sm:$0xff]  }
 0x180   : > { %3695 = vmatpush1.bf16.msra.mxu0 %v6199_v61  ;;  %4023 = vmatpush1.bf16.msra.mxu1 %v6202_v62  ;;  %v6286_v61 = vld [vmem:[%s7206_s18 + $0x8c8] ss:$16 sps:$4 sm:$0xff]   ;;  %v6291_v62 = vld [vmem:[%s7206_s18 + $0x8e4] ss:$16 sps:$4 sm:$0xff]  }
 0x181   : > { %3696 = vmatprep.subr.bf16.mxu0 %v6207_v63  ;;  %4024 = vmatprep.subr.bf16.mxu1 %v6210_v0  ;;  %v6294_v63 = vld [vmem:[%s7206_s18 + $0x8ec] ss:$16 sps:$4 sm:$0xff]   ;;  %v6289_v0 = vld [vmem:[%s7206_s18 + $0x8e0] ss:$16 sps:$4 sm:$0xff]  }
 0x184   : > { %3697 = vmatpush1.bf16.msra.mxu0 %v6205_v1  ;;  %4025 = vmatpush1.bf16.msra.mxu1 %v6208_v2  ;;  %v6292_v1 = vld [vmem:[%s7206_s18 + $0x8e8] ss:$16 sps:$4 sm:$0xff]   ;;  %v6297_v2 = vld [vmem:[%s7206_s18 + $0x904] ss:$16 sps:$4 sm:$0xff]  }
 0x185   : > { %3698 = vmatprep.subr.bf16.mxu0 %v6213_v3  ;;  %4026 = vmatprep.subr.bf16.mxu1 %v6216_v4  ;;  %v6300_v3 = vld [vmem:[%s7206_s18 + $0x90c] ss:$16 sps:$4 sm:$0xff]   ;;  %v6295_v4 = vld [vmem:[%s7206_s18 + $0x900] ss:$16 sps:$4 sm:$0xff]  }
 0x188   : > { %3699 = vmatpush1.bf16.msra.mxu0 %v6211_v5  ;;  %4027 = vmatpush1.bf16.msra.mxu1 %v6214_v6  ;;  %v6298_v5 = vld [vmem:[%s7206_s18 + $0x908] ss:$16 sps:$4 sm:$0xff]   ;;  %v6303_v6 = vld [vmem:[%s7206_s18 + $0x924] ss:$16 sps:$4 sm:$0xff]  }
 0x189   : > { %3700 = vmatprep.subr.bf16.mxu0 %v6219_v7  ;;  %4028 = vmatprep.subr.bf16.mxu1 %v6222_v8  ;;  %v6306_v7 = vld [vmem:[%s7206_s18 + $0x92c] ss:$16 sps:$4 sm:$0xff]   ;;  %v6301_v8 = vld [vmem:[%s7206_s18 + $0x920] ss:$16 sps:$4 sm:$0xff]  }
 0x18c   : > { %3701 = vmatpush1.bf16.msra.mxu0 %v6217_v9  ;;  %4029 = vmatpush1.bf16.msra.mxu1 %v6220_v10  ;;  %v6304_v9 = vld [vmem:[%s7206_s18 + $0x928] ss:$16 sps:$4 sm:$0xff]   ;;  %v6309_v10 = vld [vmem:[%s7206_s18 + $0x944] ss:$16 sps:$4 sm:$0xff]  }
 0x18d   : > { %3702 = vmatprep.subr.bf16.mxu0 %v6225_v11  ;;  %4030 = vmatprep.subr.bf16.mxu1 %v6228_v12  ;;  %v6312_v11 = vld [vmem:[%s7206_s18 + $0x94c] ss:$16 sps:$4 sm:$0xff]   ;;  %v6307_v12 = vld [vmem:[%s7206_s18 + $0x940] ss:$16 sps:$4 sm:$0xff]  }
 0x190   : > { %3703 = vmatpush1.bf16.msra.mxu0 %v6223_v13  ;;  %4031 = vmatpush1.bf16.msra.mxu1 %v6226_v15  ;;  %v6310_v13 = vld [vmem:[%s7206_s18 + $0x948] ss:$16 sps:$4 sm:$0xff]   ;;  %v6315_v15 = vld [vmem:[%s7206_s18 + $0x964] ss:$16 sps:$4 sm:$0xff]  }
 0x191   : > { %3704 = vmatprep.subr.bf16.mxu0 %v6231_v17  ;;  %4032 = vmatprep.subr.bf16.mxu1 %v6234_v53  ;;  %v6318_v17 = vld [vmem:[%s7206_s18 + $0x96c] ss:$16 sps:$4 sm:$0xff]   ;;  %v6313_v53 = vld [vmem:[%s7206_s18 + $0x960] ss:$16 sps:$4 sm:$0xff]  }
 0x194   : > { %3705 = vmatpush1.bf16.msra.mxu0 %v6229_v18  ;;  %4033 = vmatpush1.bf16.msra.mxu1 %v6232_v19  ;;  %v6316_v18 = vld [vmem:[%s7206_s18 + $0x968] ss:$16 sps:$4 sm:$0xff]   ;;  %v6321_v19 = vld [vmem:[%s7206_s18 + $0x984] ss:$16 sps:$4 sm:$0xff]  }
 0x195   : > { %3706 = vmatprep.subr.bf16.mxu0 %v6237_v20  ;;  %4034 = vmatprep.subr.bf16.mxu1 %v6240_v21  ;;  %v6324_v20 = vld [vmem:[%s7206_s18 + $0x98c] ss:$16 sps:$4 sm:$0xff]   ;;  %v6319_v21 = vld [vmem:[%s7206_s18 + $0x980] ss:$16 sps:$4 sm:$0xff]  }
 0x198   : > { %3707 = vmatpush1.bf16.msra.mxu0 %v6235_v23  ;;  %4035 = vmatpush1.bf16.msra.mxu1 %v6238_v24  ;;  %v6322_v23 = vld [vmem:[%s7206_s18 + $0x988] ss:$16 sps:$4 sm:$0xff]   ;;  %v6327_v24 = vld [vmem:[%s7206_s18 + $0x9a4] ss:$16 sps:$4 sm:$0xff]  }
 0x199   : > { %3708 = vmatprep.subr.bf16.mxu0 %v6243_v25  ;;  %4036 = vmatprep.subr.bf16.mxu1 %v6246_v27  ;;  %v6330_v25 = vld [vmem:[%s7206_s18 + $0x9ac] ss:$16 sps:$4 sm:$0xff]   ;;  %v6325_v27 = vld [vmem:[%s7206_s18 + $0x9a0] ss:$16 sps:$4 sm:$0xff]  }
 0x19c   : > { %3709 = vmatpush1.bf16.msra.mxu0 %v6241_v29  ;;  %4037 = vmatpush1.bf16.msra.mxu1 %v6244_v30  ;;  %v6328_v29 = vld [vmem:[%s7206_s18 + $0x9a8] ss:$16 sps:$4 sm:$0xff]   ;;  %v6333_v30 = vld [vmem:[%s7206_s18 + $0x9c4] ss:$16 sps:$4 sm:$0xff]  }
 0x19d   : > { %3719 = vmatprep.subr.bf16.mxu0 %v6249_v31  ;;  %4047 = vmatprep.subr.bf16.mxu1 %v6252_v16  ;;  %v6336_v31 = vld [vmem:[%s7206_s18 + $0x9cc] ss:$16 sps:$4 sm:$0xff]   ;;  %v6331_v16 = vld [vmem:[%s7206_s18 + $0x9c0] ss:$16 sps:$4 sm:$0xff]  }
 0x19f   : > { %3711 = vmatmul.mubr.bf16.vlgmr.msra.gmra.mrb[0].mxu0 %v927_v33  ;;  %4039 = vmatmul.mubr.bf16.vlgmr.msra.gmra.mrb[0].mxu1 %v927_v33  ;;  %v6339_v33 = vld [vmem:[%s7206_s18 + $0x9e4] ss:$16 sps:$4 sm:$0xff]  }
 0x1a0   : > { %3720 = vmatpush1.bf16.msra.mxu0 %v6247_v34  ;;  %4048 = vmatpush1.bf16.msra.mxu1 %v6250_v26  ;;  %v6342_v34 = vld [vmem:[%s7206_s18 + $0x9ec] ss:$16 sps:$4 sm:$0xff]   ;;  %v6337_v26 = vld [vmem:[%s7206_s18 + $0x9e0] ss:$16 sps:$4 sm:$0xff]  }
 0x1a1   : > { %3721 = vmatprep.subr.bf16.mxu0 %v6255_v35  ;;  %4049 = vmatprep.subr.bf16.mxu1 %v6258_v36  ;;  %v6340_v35 = vld [vmem:[%s7206_s18 + $0x9e8] ss:$16 sps:$4 sm:$0xff]   ;;  %v6345_v36 = vld [vmem:[%s7206_s18 + $0xa04] ss:$16 sps:$4 sm:$0xff]  }
 0x1a2   : > { %3751 = vmatprep.mubr.bf16.mxu0 %v7540_v37  ;;  %4079 = vmatprep.mubr.bf16.mxu1 %v7540_v37 }
 0x1a4   : > { %3722 = vmatpush1.bf16.msra.mxu0 %v6253_v14  ;;  %4050 = vmatpush1.bf16.msra.mxu1 %v6256_v38  ;;  %v6348_v14 = vld [vmem:[%s7206_s18 + $0xa0c] ss:$16 sps:$4 sm:$0xff]   ;;  %v7606_v38 = vrot.slane %v7525_v28, %v7275_v50  ;;  %v6349_v28 = vld [vmem:[%s7206_s18 + $0xa20] ss:$16 sps:$4 sm:$0xff]  }
 0x1a5   : > { %3723 = vmatprep.subr.bf16.mxu0 %v6261_v39  ;;  %4051 = vmatprep.subr.bf16.mxu1 %v6264_v40  ;;  %v6343_v39 = vld [vmem:[%s7206_s18 + $0xa00] ss:$16 sps:$4 sm:$0xff]   ;;  %v6346_v40 = vld [vmem:[%s7206_s18 + $0xa08] ss:$16 sps:$4 sm:$0xff]  }
 0x1a8   : > { %3724 = vmatpush1.bf16.msra.mxu0 %v6259_v41  ;;  %4052 = vmatpush1.bf16.msra.mxu1 %v6262_v42  ;;  %v6351_v41 = vld [vmem:[%s7206_s18 + $0xa24] ss:$16 sps:$4 sm:$0xff]   ;;  %v6354_v42 = vld [vmem:[%s7206_s18 + $0xa2c] ss:$16 sps:$4 sm:$0xff]  }
 0x1a9   : > { %3725 = vmatprep.subr.bf16.mxu0 %v6267_v43  ;;  %4053 = vmatprep.subr.bf16.mxu1 %v6270_v45  ;;  %v977_v43 = vcombine.high %v7540_v37, %v7540_v37  ;;  %v6352_v45 = vld [vmem:[%s7206_s18 + $0xa28] ss:$16 sps:$4 sm:$0xff]   ;;  %v6355_v37 = vld [vmem:[%s7206_s18 + $0xa40] ss:$16 sps:$4 sm:$0xff]  }
 0x1ac   : > { %3726 = vmatpush1.bf16.msra.mxu0 %v6265_v46  ;;  %4054 = vmatpush1.bf16.msra.mxu1 %v6268_v47  ;;  %v6357_v46 = vld [vmem:[%s7206_s18 + $0xa44] ss:$16 sps:$4 sm:$0xff]   ;;  %v6360_v47 = vld [vmem:[%s7206_s18 + $0xa4c] ss:$16 sps:$4 sm:$0xff]  }
 0x1ad   : > { %3727 = vmatprep.subr.bf16.mxu0 %v6273_v48  ;;  %4055 = vmatprep.subr.bf16.mxu1 %v6276_v49  ;;  %v6358_v48 = vld [vmem:[%s7206_s18 + $0xa48] ss:$16 sps:$4 sm:$0xff]   ;;  %v6363_v49 = vld [vmem:[%s7206_s18 + $0xa64] ss:$16 sps:$4 sm:$0xff]  }
 0x1b0   : > { %3728 = vmatpush1.bf16.msra.mxu0 %v6271_v51  ;;  %4056 = vmatpush1.bf16.msra.mxu1 %v6274_v52  ;;  %v6366_v51 = vld [vmem:[%s7206_s18 + $0xa6c] ss:$16 sps:$4 sm:$0xff]   ;;  %v6361_v52 = vld [vmem:[%s7206_s18 + $0xa60] ss:$16 sps:$4 sm:$0xff]  }
 0x1b1   : > { %3729 = vmatprep.subr.bf16.mxu0 %v6279_v54  ;;  %4057 = vmatprep.subr.bf16.mxu1 %v6282_v55  ;;  %v6364_v54 = vld [vmem:[%s7206_s18 + $0xa68] ss:$16 sps:$4 sm:$0xff]   ;;  %v6369_v55 = vld [vmem:[%s7206_s18 + $0xa84] ss:$16 sps:$4 sm:$0xff]  }
 0x1b4   : > { %3730 = vmatpush1.bf16.msra.mxu0 %v6277_v56  ;;  %4058 = vmatpush1.bf16.msra.mxu1 %v6280_v57  ;;  %v6372_v56 = vld [vmem:[%s7206_s18 + $0xa8c] ss:$16 sps:$4 sm:$0xff]   ;;  %v6367_v57 = vld [vmem:[%s7206_s18 + $0xa80] ss:$16 sps:$4 sm:$0xff]  }
 0x1b5   : > { %3731 = vmatprep.subr.bf16.mxu0 %v6285_v58  ;;  %4059 = vmatprep.subr.bf16.mxu1 %v6288_v59  ;;  %v6370_v58 = vld [vmem:[%s7206_s18 + $0xa88] ss:$16 sps:$4 sm:$0xff]   ;;  %v6375_v59 = vld [vmem:[%s7206_s18 + $0xaa4] ss:$16 sps:$4 sm:$0xff]  }
 0x1b8   : > { %3732 = vmatpush1.bf16.msra.mxu0 %v6283_v60  ;;  %4060 = vmatpush1.bf16.msra.mxu1 %v6286_v61  ;;  %v6378_v60 = vld [vmem:[%s7206_s18 + $0xaac] ss:$16 sps:$4 sm:$0xff]   ;;  %v6373_v61 = vld [vmem:[%s7206_s18 + $0xaa0] ss:$16 sps:$4 sm:$0xff]  }
 0x1b9   : > { %3733 = vmatprep.subr.bf16.mxu0 %v6291_v62  ;;  %4061 = vmatprep.subr.bf16.mxu1 %v6294_v63  ;;  %v6376_v62 = vld [vmem:[%s7206_s18 + $0xaa8] ss:$16 sps:$4 sm:$0xff]   ;;  %v6381_v63 = vld [vmem:[%s7206_s18 + $0xac4] ss:$16 sps:$4 sm:$0xff]  }
 0x1bc   : > { %3734 = vmatpush1.bf16.msra.mxu0 %v6289_v0  ;;  %4062 = vmatpush1.bf16.msra.mxu1 %v6292_v1  ;;  %v6384_v0 = vld [vmem:[%s7206_s18 + $0xacc] ss:$16 sps:$4 sm:$0xff]   ;;  %v6379_v1 = vld [vmem:[%s7206_s18 + $0xac0] ss:$16 sps:$4 sm:$0xff]  }
 0x1bd   : > { %3735 = vmatprep.subr.bf16.mxu0 %v6297_v2  ;;  %4063 = vmatprep.subr.bf16.mxu1 %v6300_v3  ;;  %v6382_v2 = vld [vmem:[%s7206_s18 + $0xac8] ss:$16 sps:$4 sm:$0xff]   ;;  %v6387_v3 = vld [vmem:[%s7206_s18 + $0xae4] ss:$16 sps:$4 sm:$0xff]  }
 0x1c0   : > { %3736 = vmatpush1.bf16.msra.mxu0 %v6295_v4  ;;  %4064 = vmatpush1.bf16.msra.mxu1 %v6298_v5  ;;  %v6390_v4 = vld [vmem:[%s7206_s18 + $0xaec] ss:$16 sps:$4 sm:$0xff]   ;;  %v6385_v5 = vld [vmem:[%s7206_s18 + $0xae0] ss:$16 sps:$4 sm:$0xff]  }
 0x1c1   : > { %3737 = vmatprep.subr.bf16.mxu0 %v6303_v6  ;;  %4065 = vmatprep.subr.bf16.mxu1 %v6306_v7  ;;  %v6388_v6 = vld [vmem:[%s7206_s18 + $0xae8] ss:$16 sps:$4 sm:$0xff]   ;;  %v6393_v7 = vld [vmem:[%s7206_s18 + $0xb04] ss:$16 sps:$4 sm:$0xff]  }
 0x1c4   : > { %3738 = vmatpush1.bf16.msra.mxu0 %v6301_v8  ;;  %4066 = vmatpush1.bf16.msra.mxu1 %v6304_v9  ;;  %v6396_v8 = vld [vmem:[%s7206_s18 + $0xb0c] ss:$16 sps:$4 sm:$0xff]   ;;  %v6391_v9 = vld [vmem:[%s7206_s18 + $0xb00] ss:$16 sps:$4 sm:$0xff]  }
 0x1c5   : > { %3739 = vmatprep.subr.bf16.mxu0 %v6309_v10  ;;  %4067 = vmatprep.subr.bf16.mxu1 %v6312_v11  ;;  %v6394_v10 = vld [vmem:[%s7206_s18 + $0xb08] ss:$16 sps:$4 sm:$0xff]   ;;  %v6399_v11 = vld [vmem:[%s7206_s18 + $0xb24] ss:$16 sps:$4 sm:$0xff]  }
 0x1c8   : > { %3740 = vmatpush1.bf16.msra.mxu0 %v6307_v12  ;;  %4068 = vmatpush1.bf16.msra.mxu1 %v6310_v13  ;;  %v6402_v12 = vld [vmem:[%s7206_s18 + $0xb2c] ss:$16 sps:$4 sm:$0xff]   ;;  %v6397_v13 = vld [vmem:[%s7206_s18 + $0xb20] ss:$16 sps:$4 sm:$0xff]  }
 0x1c9   : > { %3741 = vmatprep.subr.bf16.mxu0 %v6315_v15  ;;  %4069 = vmatprep.subr.bf16.mxu1 %v6318_v17  ;;  %v6400_v15 = vld [vmem:[%s7206_s18 + $0xb28] ss:$16 sps:$4 sm:$0xff]   ;;  %v6405_v17 = vld [vmem:[%s7206_s18 + $0xb44] ss:$16 sps:$4 sm:$0xff]  }
 0x1cc   : > { %3742 = vmatpush1.bf16.msra.mxu0 %v6313_v53  ;;  %4070 = vmatpush1.bf16.msra.mxu1 %v6316_v18  ;;  %v6408_v53 = vld [vmem:[%s7206_s18 + $0xb4c] ss:$16 sps:$4 sm:$0xff]   ;;  %v6403_v18 = vld [vmem:[%s7206_s18 + $0xb40] ss:$16 sps:$4 sm:$0xff]  }
 0x1cd   : > { %3743 = vmatprep.subr.bf16.mxu0 %v6321_v19  ;;  %4071 = vmatprep.subr.bf16.mxu1 %v6324_v20  ;;  %v6406_v19 = vld [vmem:[%s7206_s18 + $0xb48] ss:$16 sps:$4 sm:$0xff]   ;;  %v6411_v20 = vld [vmem:[%s7206_s18 + $0xb64] ss:$16 sps:$4 sm:$0xff]  }
 0x1d0   : > { %3744 = vmatpush1.bf16.msra.mxu0 %v6319_v21  ;;  %4072 = vmatpush1.bf16.msra.mxu1 %v6322_v23  ;;  %v6414_v21 = vld [vmem:[%s7206_s18 + $0xb6c] ss:$16 sps:$4 sm:$0xff]   ;;  %v6409_v23 = vld [vmem:[%s7206_s18 + $0xb60] ss:$16 sps:$4 sm:$0xff]  }
 0x1d1   : > { %3745 = vmatprep.subr.bf16.mxu0 %v6327_v24  ;;  %4073 = vmatprep.subr.bf16.mxu1 %v6330_v25  ;;  %v6412_v24 = vld [vmem:[%s7206_s18 + $0xb68] ss:$16 sps:$4 sm:$0xff]   ;;  %v6417_v25 = vld [vmem:[%s7206_s18 + $0xb84] ss:$16 sps:$4 sm:$0xff]  }
 0x1d4   : > { %3746 = vmatpush1.bf16.msra.mxu0 %v6325_v27  ;;  %4074 = vmatpush1.bf16.msra.mxu1 %v6328_v29  ;;  %v6420_v27 = vld [vmem:[%s7206_s18 + $0xb8c] ss:$16 sps:$4 sm:$0xff]   ;;  %v6415_v29 = vld [vmem:[%s7206_s18 + $0xb80] ss:$16 sps:$4 sm:$0xff]  }
 0x1d5   : > { %3747 = vmatprep.subr.bf16.mxu0 %v6333_v30  ;;  %4075 = vmatprep.subr.bf16.mxu1 %v6336_v31  ;;  %v6418_v30 = vld [vmem:[%s7206_s18 + $0xb88] ss:$16 sps:$4 sm:$0xff]   ;;  %v6423_v31 = vld [vmem:[%s7206_s18 + $0xba4] ss:$16 sps:$4 sm:$0xff]  }
 0x1d8   : > { %3748 = vmatpush1.bf16.msra.mxu0 %v6331_v16  ;;  %4076 = vmatpush1.bf16.msra.mxu1 %v6334_v32  ;;  %v6426_v16 = vld [vmem:[%s7206_s18 + $0xbac] ss:$16 sps:$4 sm:$0xff]   ;;  %v6421_v32 = vld [vmem:[%s7206_s18 + $0xba0] ss:$16 sps:$4 sm:$0xff]  }
 0x1d9   : > { %3749 = vmatprep.subr.bf16.mxu0 %v6339_v33  ;;  %4077 = vmatprep.subr.bf16.mxu1 %v6342_v34  ;;  %v6424_v33 = vld [vmem:[%s7206_s18 + $0xba8] ss:$16 sps:$4 sm:$0xff]   ;;  %v6429_v34 = vld [vmem:[%s7206_s18 + $0xbc4] ss:$16 sps:$4 sm:$0xff]  }
 0x1dc   : > { %3750 = vmatpush1.bf16.msra.mxu0 %v6337_v26  ;;  %4078 = vmatpush1.bf16.msra.mxu1 %v6340_v35  ;;  %v6432_v26 = vld [vmem:[%s7206_s18 + $0xbcc] ss:$16 sps:$4 sm:$0xff]   ;;  %v930_v35 = vcombine.high %v7517_v22, %v7517_v22  ;;  %v6433_v22 = vld [vmem:[%s7206_s18 + $0xbe0] ss:$16 sps:$4 sm:$0xff]  }
 0x1dd   : > { %3760 = vmatprep.subr.bf16.mxu0 %v6345_v36  ;;  %4088 = vmatprep.subr.bf16.mxu1 %v6348_v14  ;;  %v6427_v36 = vld [vmem:[%s7206_s18 + $0xbc0] ss:$16 sps:$4 sm:$0xff]   ;;  %v6430_v14 = vld [vmem:[%s7206_s18 + $0xbc8] ss:$16 sps:$4 sm:$0xff]  }
 0x1df   : > { %3752 = vmatmul.mubr.bf16.vlgmr.msra.gmra.mrb[0].mxu0 %v7606_v38  ;;  %4080 = vmatmul.mubr.bf16.vlgmr.msra.gmra.mrb[0].mxu1 %v7606_v38 }
 0x1e0   : > { %3761 = vmatpush1.bf16.msra.mxu0 %v6343_v39  ;;  %4089 = vmatpush1.bf16.msra.mxu1 %v6346_v40  ;;  %v6435_v39 = vld [vmem:[%s7206_s18 + $0xbe4] ss:$16 sps:$4 sm:$0xff]   ;;  %v6438_v40 = vld [vmem:[%s7206_s18 + $0xbec] ss:$16 sps:$4 sm:$0xff]  }
 0x1e1   : > { %3762 = vmatprep.subr.bf16.mxu0 %v6351_v41  ;;  %4090 = vmatprep.subr.bf16.mxu1 %v6354_v42  ;;  %v7675_v41 = vrot.slane %v930_v35, %v7275_v50  ;;  %v6436_v42 = vld [vmem:[%s7206_s18 + $0xbe8] ss:$16 sps:$4 sm:$0xff]  }
 0x1e2   : > { %3792 = vmatprep.mubr.bf16.mxu0 %v977_v43  ;;  %4120 = vmatprep.mubr.bf16.mxu1 %v977_v43  ;;  %v6441_v43 = vld [vmem:[%s7206_s18 + $0xc04] ss:$16 sps:$4 sm:$0xff]   ;;  %v6514_v35 = vld [vmem:[%s7206_s18 + $0xd88] ss:$16 sps:$4 sm:$0xff]  }
 0x1e4   : > { %3763 = vmatpush1.bf16.msra.mxu0 %v6349_v28  ;;  %4091 = vmatpush1.bf16.msra.mxu1 %v6352_v45  ;;  %v6444_v28 = vld [vmem:[%s7206_s18 + $0xc0c] ss:$16 sps:$4 sm:$0xff]   ;;  %v946_v45 = vcombine.high %v7675_v41, %v7675_v41 }
 0x1e5   : > { %3764 = vmatprep.subr.bf16.mxu0 %v6357_v46  ;;  %4092 = vmatprep.subr.bf16.mxu1 %v6360_v47  ;;  %v975_v46 = vcombine.high %v7606_v38, %v7606_v38  ;;  %v6439_v47 = vld [vmem:[%s7206_s18 + $0xc00] ss:$16 sps:$4 sm:$0xff]  }
 0x1e6   : > { %v6445_v38 = vld [vmem:[%s7206_s18 + $0xc20] ss:$16 sps:$4 sm:$0xff]  }
 0x1e8   : > { %3765 = vmatpush1.bf16.msra.mxu0 %v6355_v37  ;;  %4093 = vmatpush1.bf16.msra.mxu1 %v6358_v48  ;;  %v6442_v37 = vld [vmem:[%s7206_s18 + $0xc08] ss:$16 sps:$4 sm:$0xff]   ;;  %v6447_v48 = vld [vmem:[%s7206_s18 + $0xc24] ss:$16 sps:$4 sm:$0xff]  }
 0x1e9   : > { %3766 = vmatprep.subr.bf16.mxu0 %v6363_v49  ;;  %4094 = vmatprep.subr.bf16.mxu1 %v6366_v51  ;;  %v6450_v49 = vld [vmem:[%s7206_s18 + $0xc2c] ss:$16 sps:$4 sm:$0xff]   ;;  %v7690_v51 = vrot.slane %v946_v45, %v7275_v50  ;;  %v6531_v45 = vld [vmem:[%s7206_s18 + $0xde4] ss:$16 sps:$4 sm:$0xff]  }
 0x1ec   : > { %3767 = vmatpush1.bf16.msra.mxu0 %v6361_v52  ;;  %4095 = vmatpush1.bf16.msra.mxu1 %v6364_v54  ;;  %v6448_v52 = vld [vmem:[%s7206_s18 + $0xc28] ss:$16 sps:$4 sm:$0xff]   ;;  %v6453_v54 = vld [vmem:[%s7206_s18 + $0xc44] ss:$16 sps:$4 sm:$0xff]  }
 0x1ed   : > { %3768 = vmatprep.subr.bf16.mxu0 %v6369_v55  ;;  %4096 = vmatprep.subr.bf16.mxu1 %v6372_v56  ;;  %v6456_v55 = vld [vmem:[%s7206_s18 + $0xc4c] ss:$16 sps:$4 sm:$0xff]   ;;  %v6451_v56 = vld [vmem:[%s7206_s18 + $0xc40] ss:$16 sps:$4 sm:$0xff]  }
 0x1f0   : > { %3769 = vmatpush1.bf16.msra.mxu0 %v6367_v57  ;;  %4097 = vmatpush1.bf16.msra.mxu1 %v6370_v58  ;;  %v6454_v57 = vld [vmem:[%s7206_s18 + $0xc48] ss:$16 sps:$4 sm:$0xff]   ;;  %v6459_v58 = vld [vmem:[%s7206_s18 + $0xc64] ss:$16 sps:$4 sm:$0xff]  }
 0x1f1   : > { %3770 = vmatprep.subr.bf16.mxu0 %v6375_v59  ;;  %4098 = vmatprep.subr.bf16.mxu1 %v6378_v60  ;;  %v6462_v59 = vld [vmem:[%s7206_s18 + $0xc6c] ss:$16 sps:$4 sm:$0xff]   ;;  %v6457_v60 = vld [vmem:[%s7206_s18 + $0xc60] ss:$16 sps:$4 sm:$0xff]  }
 0x1f4   : > { %3771 = vmatpush1.bf16.msra.mxu0 %v6373_v61  ;;  %4099 = vmatpush1.bf16.msra.mxu1 %v6376_v62  ;;  %v6460_v61 = vld [vmem:[%s7206_s18 + $0xc68] ss:$16 sps:$4 sm:$0xff]   ;;  %v6465_v62 = vld [vmem:[%s7206_s18 + $0xc84] ss:$16 sps:$4 sm:$0xff]  }
 0x1f5   : > { %3772 = vmatprep.subr.bf16.mxu0 %v6381_v63  ;;  %4100 = vmatprep.subr.bf16.mxu1 %v6384_v0  ;;  %v6468_v63 = vld [vmem:[%s7206_s18 + $0xc8c] ss:$16 sps:$4 sm:$0xff]   ;;  %v6463_v0 = vld [vmem:[%s7206_s18 + $0xc80] ss:$16 sps:$4 sm:$0xff]  }
 0x1f8   : > { %3773 = vmatpush1.bf16.msra.mxu0 %v6379_v1  ;;  %4101 = vmatpush1.bf16.msra.mxu1 %v6382_v2  ;;  %v6466_v1 = vld [vmem:[%s7206_s18 + $0xc88] ss:$16 sps:$4 sm:$0xff]   ;;  %v6471_v2 = vld [vmem:[%s7206_s18 + $0xca4] ss:$16 sps:$4 sm:$0xff]  }
 0x1f9   : > { %3774 = vmatprep.subr.bf16.mxu0 %v6387_v3  ;;  %4102 = vmatprep.subr.bf16.mxu1 %v6390_v4  ;;  %v6474_v3 = vld [vmem:[%s7206_s18 + $0xcac] ss:$16 sps:$4 sm:$0xff]   ;;  %v6469_v4 = vld [vmem:[%s7206_s18 + $0xca0] ss:$16 sps:$4 sm:$0xff]  }
 0x1fc   : > { %3775 = vmatpush1.bf16.msra.mxu0 %v6385_v5  ;;  %4103 = vmatpush1.bf16.msra.mxu1 %v6388_v6  ;;  %v6472_v5 = vld [vmem:[%s7206_s18 + $0xca8] ss:$16 sps:$4 sm:$0xff]   ;;  %v6477_v6 = vld [vmem:[%s7206_s18 + $0xcc4] ss:$16 sps:$4 sm:$0xff]  }
 0x1fd   : > { %3776 = vmatprep.subr.bf16.mxu0 %v6393_v7  ;;  %4104 = vmatprep.subr.bf16.mxu1 %v6396_v8  ;;  %v6480_v7 = vld [vmem:[%s7206_s18 + $0xccc] ss:$16 sps:$4 sm:$0xff]   ;;  %v6475_v8 = vld [vmem:[%s7206_s18 + $0xcc0] ss:$16 sps:$4 sm:$0xff]  }
 0x200   : > { %3777 = vmatpush1.bf16.msra.mxu0 %v6391_v9  ;;  %4105 = vmatpush1.bf16.msra.mxu1 %v6394_v10  ;;  %v6478_v9 = vld [vmem:[%s7206_s18 + $0xcc8] ss:$16 sps:$4 sm:$0xff]   ;;  %v6483_v10 = vld [vmem:[%s7206_s18 + $0xce4] ss:$16 sps:$4 sm:$0xff]  }
 0x201   : > { %3778 = vmatprep.subr.bf16.mxu0 %v6399_v11  ;;  %4106 = vmatprep.subr.bf16.mxu1 %v6402_v12  ;;  %v6486_v11 = vld [vmem:[%s7206_s18 + $0xcec] ss:$16 sps:$4 sm:$0xff]   ;;  %v6481_v12 = vld [vmem:[%s7206_s18 + $0xce0] ss:$16 sps:$4 sm:$0xff]  }
 0x204   : > { %3779 = vmatpush1.bf16.msra.mxu0 %v6397_v13  ;;  %4107 = vmatpush1.bf16.msra.mxu1 %v6400_v15  ;;  %v6484_v13 = vld [vmem:[%s7206_s18 + $0xce8] ss:$16 sps:$4 sm:$0xff]   ;;  %v6489_v15 = vld [vmem:[%s7206_s18 + $0xd04] ss:$16 sps:$4 sm:$0xff]  }
 0x205   : > { %3780 = vmatprep.subr.bf16.mxu0 %v6405_v17  ;;  %4108 = vmatprep.subr.bf16.mxu1 %v6408_v53  ;;  %v6492_v17 = vld [vmem:[%s7206_s18 + $0xd0c] ss:$16 sps:$4 sm:$0xff]   ;;  %v6487_v53 = vld [vmem:[%s7206_s18 + $0xd00] ss:$16 sps:$4 sm:$0xff]  }
 0x208   : > { %3781 = vmatpush1.bf16.msra.mxu0 %v6403_v18  ;;  %4109 = vmatpush1.bf16.msra.mxu1 %v6406_v19  ;;  %v6490_v18 = vld [vmem:[%s7206_s18 + $0xd08] ss:$16 sps:$4 sm:$0xff]   ;;  %v6495_v19 = vld [vmem:[%s7206_s18 + $0xd24] ss:$16 sps:$4 sm:$0xff]  }
 0x209   : > { %3782 = vmatprep.subr.bf16.mxu0 %v6411_v20  ;;  %4110 = vmatprep.subr.bf16.mxu1 %v6414_v21  ;;  %v6498_v20 = vld [vmem:[%s7206_s18 + $0xd2c] ss:$16 sps:$4 sm:$0xff]   ;;  %v6493_v21 = vld [vmem:[%s7206_s18 + $0xd20] ss:$16 sps:$4 sm:$0xff]  }
 0x20c   : > { %3783 = vmatpush1.bf16.msra.mxu0 %v6409_v23  ;;  %4111 = vmatpush1.bf16.msra.mxu1 %v6412_v24  ;;  %v6496_v23 = vld [vmem:[%s7206_s18 + $0xd28] ss:$16 sps:$4 sm:$0xff]   ;;  %v6501_v24 = vld [vmem:[%s7206_s18 + $0xd44] ss:$16 sps:$4 sm:$0xff]  }
 0x20d   : > { %3784 = vmatprep.subr.bf16.mxu0 %v6417_v25  ;;  %4112 = vmatprep.subr.bf16.mxu1 %v6420_v27  ;;  %v6504_v25 = vld [vmem:[%s7206_s18 + $0xd4c] ss:$16 sps:$4 sm:$0xff]   ;;  %v6499_v27 = vld [vmem:[%s7206_s18 + $0xd40] ss:$16 sps:$4 sm:$0xff]  }
 0x210   : > { %3785 = vmatpush1.bf16.msra.mxu0 %v6415_v29  ;;  %4113 = vmatpush1.bf16.msra.mxu1 %v6418_v30  ;;  %v6502_v29 = vld [vmem:[%s7206_s18 + $0xd48] ss:$16 sps:$4 sm:$0xff]   ;;  %v6507_v30 = vld [vmem:[%s7206_s18 + $0xd64] ss:$16 sps:$4 sm:$0xff]  }
 0x211   : > { %3786 = vmatprep.subr.bf16.mxu0 %v6423_v31  ;;  %4114 = vmatprep.subr.bf16.mxu1 %v6426_v16  ;;  %v6510_v31 = vld [vmem:[%s7206_s18 + $0xd6c] ss:$16 sps:$4 sm:$0xff]   ;;  %v6505_v16 = vld [vmem:[%s7206_s18 + $0xd60] ss:$16 sps:$4 sm:$0xff]  }
 0x214   : > { %3787 = vmatpush1.bf16.msra.mxu0 %v6421_v32  ;;  %4115 = vmatpush1.bf16.msra.mxu1 %v6424_v33  ;;  %v6508_v32 = vld [vmem:[%s7206_s18 + $0xd68] ss:$16 sps:$4 sm:$0xff]   ;;  %v6513_v33 = vld [vmem:[%s7206_s18 + $0xd84] ss:$16 sps:$4 sm:$0xff]  }
 0x215   : > { %3788 = vmatprep.subr.bf16.mxu0 %v6429_v34  ;;  %4116 = vmatprep.subr.bf16.mxu1 %v6432_v26  ;;  %v6516_v34 = vld [vmem:[%s7206_s18 + $0xd8c] ss:$16 sps:$4 sm:$0xff]   ;;  %v6511_v26 = vld [vmem:[%s7206_s18 + $0xd80] ss:$16 sps:$4 sm:$0xff]  }
 0x218   : > { %3789 = vmatpush1.bf16.msra.mxu0 %v6427_v36  ;;  %4117 = vmatpush1.bf16.msra.mxu1 %v6430_v14  ;;  %v6519_v36 = vld [vmem:[%s7206_s18 + $0xda4] ss:$16 sps:$4 sm:$0xff]   ;;  %v6522_v14 = vld [vmem:[%s7206_s18 + $0xdac] ss:$16 sps:$4 sm:$0xff]  }
 0x219   : > { %3790 = vmatprep.subr.bf16.mxu0 %v6435_v39  ;;  %4118 = vmatprep.subr.bf16.mxu1 %v6438_v40  ;;  %v6517_v39 = vld [vmem:[%s7206_s18 + $0xda0] ss:$16 sps:$4 sm:$0xff]   ;;  %v6520_v40 = vld [vmem:[%s7206_s18 + $0xda8] ss:$16 sps:$4 sm:$0xff]  }
 0x21c   : > { %3791 = vmatpush1.bf16.msra.mxu0 %v6433_v22  ;;  %4119 = vmatpush1.bf16.msra.mxu1 %v6436_v42  ;;  %v6525_v22 = vld [vmem:[%s7206_s18 + $0xdc4] ss:$16 sps:$4 sm:$0xff]   ;;  %v6528_v42 = vld [vmem:[%s7206_s18 + $0xdcc] ss:$16 sps:$4 sm:$0xff]  }
 0x21d   : > { %3801 = vmatprep.subr.bf16.mxu0 %v6441_v43  ;;  %4129 = vmatprep.subr.bf16.mxu1 %v6444_v28  ;;  %v6523_v43 = vld [vmem:[%s7206_s18 + $0xdc0] ss:$16 sps:$4 sm:$0xff]   ;;  %v6526_v28 = vld [vmem:[%s7206_s18 + $0xdc8] ss:$16 sps:$4 sm:$0xff]  }
 0x21f   : > { %3793 = vmatmul.mubr.bf16.vlgmr.msra.gmra.mrb[0].mxu0 %v975_v46  ;;  %4121 = vmatmul.mubr.bf16.vlgmr.msra.gmra.mrb[0].mxu1 %v975_v46  ;;  %v6534_v46 = vld [vmem:[%s7206_s18 + $0xdec] ss:$16 sps:$4 sm:$0xff]  }
 0x220   : > { %3802 = vmatpush1.bf16.msra.mxu0 %v6439_v47  ;;  %4130 = vmatpush1.bf16.msra.mxu1 %v6442_v37  ;;  %v6529_v47 = vld [vmem:[%s7206_s18 + $0xde0] ss:$16 sps:$4 sm:$0xff]   ;;  %v6532_v37 = vld [vmem:[%s7206_s18 + $0xde8] ss:$16 sps:$4 sm:$0xff]  }
 0x221   : > { %3803 = vmatprep.subr.bf16.mxu0 %v6447_v48  ;;  %4131 = vmatprep.subr.bf16.mxu1 %v6450_v49  ;;  %v6538_v48 = vld [vmem:[%s7206_s18 + $0xe04] ss:$16 sps:$4 sm:$0xff]   ;;  %v6541_v49 = vld [vmem:[%s7206_s18 + $0xe0c] ss:$16 sps:$4 sm:$0xff]  }
 0x222   : > { %3833 = vmatprep.mubr.bf16.mxu0 %v7690_v51  ;;  %4161 = vmatprep.mubr.bf16.mxu1 %v7690_v51 }
 0x224   : > { %3804 = vmatpush1.bf16.msra.mxu0 %v6445_v38  ;;  %4132 = vmatpush1.bf16.msra.mxu1 %v6448_v52  ;;  %v7756_v38 = vrot.slane %v7675_v41, %v7275_v50  ;;  %v6536_v52 = vld [vmem:[%s7206_s18 + $0xe00] ss:$16 sps:$4 sm:$0xff]   ;;  %v6545_v41 = vld [vmem:[%s7206_s18 + $0xe28] ss:$16 sps:$4 sm:$0xff]  }
 0x225   : > { %3805 = vmatprep.subr.bf16.mxu0 %v6453_v54  ;;  %4133 = vmatprep.subr.bf16.mxu1 %v6456_v55  ;;  %v6539_v54 = vld [vmem:[%s7206_s18 + $0xe08] ss:$16 sps:$4 sm:$0xff]   ;;  %v6544_v55 = vld [vmem:[%s7206_s18 + $0xe24] ss:$16 sps:$4 sm:$0xff]   ;;  %v6542_v50 = vld [vmem:[%s7206_s18 + $0xe20] ss:$16 sps:$4 sm:$0xff]  }
 0x228   : > { %3806 = vmatpush1.bf16.msra.mxu0 %v6451_v56  ;;  %4134 = vmatpush1.bf16.msra.mxu1 %v6454_v57  ;;  %v6547_v56 = vld [vmem:[%s7206_s18 + $0xe2c] ss:$16 sps:$4 sm:$0xff]   ;;  %v978_v57 = vcombine.high %v7690_v51, %v7690_v51  ;;  %v6548_v51 = vld [vmem:[%s7206_s18 + $0xe40] ss:$16 sps:$4 sm:$0xff]  }
 0x229   : > { %3807 = vmatprep.subr.bf16.mxu0 %v6459_v58  ;;  %4135 = vmatprep.subr.bf16.mxu1 %v6462_v59  ;;  %v6550_v58 = vld [vmem:[%s7206_s18 + $0xe44] ss:$16 sps:$4 sm:$0xff]   ;;  %v6553_v59 = vld [vmem:[%s7206_s18 + $0xe4c] ss:$16 sps:$4 sm:$0xff]  }
 0x22c   : > { %3808 = vmatpush1.bf16.msra.mxu0 %v6457_v60  ;;  %4136 = vmatpush1.bf16.msra.mxu1 %v6460_v61  ;;  %v6551_v60 = vld [vmem:[%s7206_s18 + $0xe48] ss:$16 sps:$4 sm:$0xff]   ;;  %v6556_v61 = vld [vmem:[%s7206_s18 + $0xe64] ss:$16 sps:$4 sm:$0xff]  }
 0x22d   : > { %3809 = vmatprep.subr.bf16.mxu0 %v6465_v62  ;;  %4137 = vmatprep.subr.bf16.mxu1 %v6468_v63  ;;  %v6559_v62 = vld [vmem:[%s7206_s18 + $0xe6c] ss:$16 sps:$4 sm:$0xff]   ;;  %v6554_v63 = vld [vmem:[%s7206_s18 + $0xe60] ss:$16 sps:$4 sm:$0xff]  }
 0x230   : > { %3810 = vmatpush1.bf16.msra.mxu0 %v6463_v0  ;;  %4138 = vmatpush1.bf16.msra.mxu1 %v6466_v1  ;;  %v6557_v0 = vld [vmem:[%s7206_s18 + $0xe68] ss:$16 sps:$4 sm:$0xff]   ;;  %v6562_v1 = vld [vmem:[%s7206_s18 + $0xe84] ss:$16 sps:$4 sm:$0xff]  }
 0x231   : > { %3811 = vmatprep.subr.bf16.mxu0 %v6471_v2  ;;  %4139 = vmatprep.subr.bf16.mxu1 %v6474_v3  ;;  %v6565_v2 = vld [vmem:[%s7206_s18 + $0xe8c] ss:$16 sps:$4 sm:$0xff]   ;;  %v6560_v3 = vld [vmem:[%s7206_s18 + $0xe80] ss:$16 sps:$4 sm:$0xff]  }
 0x234   : > { %3812 = vmatpush1.bf16.msra.mxu0 %v6469_v4  ;;  %4140 = vmatpush1.bf16.msra.mxu1 %v6472_v5  ;;  %v6563_v4 = vld [vmem:[%s7206_s18 + $0xe88] ss:$16 sps:$4 sm:$0xff]   ;;  %v6568_v5 = vld [vmem:[%s7206_s18 + $0xea4] ss:$16 sps:$4 sm:$0xff]  }
 0x235   : > { %3813 = vmatprep.subr.bf16.mxu0 %v6477_v6  ;;  %4141 = vmatprep.subr.bf16.mxu1 %v6480_v7  ;;  %v6571_v6 = vld [vmem:[%s7206_s18 + $0xeac] ss:$16 sps:$4 sm:$0xff]   ;;  %v6566_v7 = vld [vmem:[%s7206_s18 + $0xea0] ss:$16 sps:$4 sm:$0xff]  }
 0x238   : > { %3814 = vmatpush1.bf16.msra.mxu0 %v6475_v8  ;;  %4142 = vmatpush1.bf16.msra.mxu1 %v6478_v9  ;;  %v6569_v8 = vld [vmem:[%s7206_s18 + $0xea8] ss:$16 sps:$4 sm:$0xff]   ;;  %v6574_v9 = vld [vmem:[%s7206_s18 + $0xec4] ss:$16 sps:$4 sm:$0xff]  }
 0x239   : > { %3815 = vmatprep.subr.bf16.mxu0 %v6483_v10  ;;  %4143 = vmatprep.subr.bf16.mxu1 %v6486_v11  ;;  %v6577_v10 = vld [vmem:[%s7206_s18 + $0xecc] ss:$16 sps:$4 sm:$0xff]   ;;  %v6572_v11 = vld [vmem:[%s7206_s18 + $0xec0] ss:$16 sps:$4 sm:$0xff]  }
 0x23c   : > { %3816 = vmatpush1.bf16.msra.mxu0 %v6481_v12  ;;  %4144 = vmatpush1.bf16.msra.mxu1 %v6484_v13  ;;  %v6575_v12 = vld [vmem:[%s7206_s18 + $0xec8] ss:$16 sps:$4 sm:$0xff]   ;;  %v6580_v13 = vld [vmem:[%s7206_s18 + $0xee4] ss:$16 sps:$4 sm:$0xff]  }
 0x23d   : > { %3817 = vmatprep.subr.bf16.mxu0 %v6489_v15  ;;  %4145 = vmatprep.subr.bf16.mxu1 %v6492_v17  ;;  %v6583_v15 = vld [vmem:[%s7206_s18 + $0xeec] ss:$16 sps:$4 sm:$0xff]   ;;  %v6578_v17 = vld [vmem:[%s7206_s18 + $0xee0] ss:$16 sps:$4 sm:$0xff]  }
 0x240   : > { %3818 = vmatpush1.bf16.msra.mxu0 %v6487_v53  ;;  %4146 = vmatpush1.bf16.msra.mxu1 %v6490_v18  ;;  %v6581_v53 = vld [vmem:[%s7206_s18 + $0xee8] ss:$16 sps:$4 sm:$0xff]   ;;  %v6586_v18 = vld [vmem:[%s7206_s18 + $0xf04] ss:$16 sps:$4 sm:$0xff]  }
 0x241   : > { %3819 = vmatprep.subr.bf16.mxu0 %v6495_v19  ;;  %4147 = vmatprep.subr.bf16.mxu1 %v6498_v20  ;;  %v6589_v19 = vld [vmem:[%s7206_s18 + $0xf0c] ss:$16 sps:$4 sm:$0xff]   ;;  %v6584_v20 = vld [vmem:[%s7206_s18 + $0xf00] ss:$16 sps:$4 sm:$0xff]  }
 0x244   : > { %3820 = vmatpush1.bf16.msra.mxu0 %v6493_v21  ;;  %4148 = vmatpush1.bf16.msra.mxu1 %v6496_v23  ;;  %v6587_v21 = vld [vmem:[%s7206_s18 + $0xf08] ss:$16 sps:$4 sm:$0xff]   ;;  %v6592_v23 = vld [vmem:[%s7206_s18 + $0xf24] ss:$16 sps:$4 sm:$0xff]  }
 0x245   : > { %3821 = vmatprep.subr.bf16.mxu0 %v6501_v24  ;;  %4149 = vmatprep.subr.bf16.mxu1 %v6504_v25  ;;  %v6595_v24 = vld [vmem:[%s7206_s18 + $0xf2c] ss:$16 sps:$4 sm:$0xff]   ;;  %v6590_v25 = vld [vmem:[%s7206_s18 + $0xf20] ss:$16 sps:$4 sm:$0xff]  }
 0x248   : > { %3822 = vmatpush1.bf16.msra.mxu0 %v6499_v27  ;;  %4150 = vmatpush1.bf16.msra.mxu1 %v6502_v29  ;;  %v6593_v27 = vld [vmem:[%s7206_s18 + $0xf28] ss:$16 sps:$4 sm:$0xff]   ;;  %v6598_v29 = vld [vmem:[%s7206_s18 + $0xf44] ss:$16 sps:$4 sm:$0xff]  }
 0x249   : > { %3823 = vmatprep.subr.bf16.mxu0 %v6507_v30  ;;  %4151 = vmatprep.subr.bf16.mxu1 %v6510_v31  ;;  %v6601_v30 = vld [vmem:[%s7206_s18 + $0xf4c] ss:$16 sps:$4 sm:$0xff]   ;;  %v6596_v31 = vld [vmem:[%s7206_s18 + $0xf40] ss:$16 sps:$4 sm:$0xff]  }
 0x24c   : > { %3824 = vmatpush1.bf16.msra.mxu0 %v6505_v16  ;;  %4152 = vmatpush1.bf16.msra.mxu1 %v6508_v32  ;;  %v6599_v16 = vld [vmem:[%s7206_s18 + $0xf48] ss:$16 sps:$4 sm:$0xff]   ;;  %v6604_v32 = vld [vmem:[%s7206_s18 + $0xf64] ss:$16 sps:$4 sm:$0xff]  }
 0x24d   : > { %3825 = vmatprep.subr.bf16.mxu0 %v6513_v33  ;;  %4153 = vmatprep.subr.bf16.mxu1 %v6516_v34  ;;  %v6607_v33 = vld [vmem:[%s7206_s18 + $0xf6c] ss:$16 sps:$4 sm:$0xff]   ;;  %v6602_v34 = vld [vmem:[%s7206_s18 + $0xf60] ss:$16 sps:$4 sm:$0xff]  }
 0x250   : > { %3826 = vmatpush1.bf16.msra.mxu0 %v6511_v26  ;;  %4154 = vmatpush1.bf16.msra.mxu1 %v6514_v35  ;;  %v6605_v26 = vld [vmem:[%s7206_s18 + $0xf68] ss:$16 sps:$4 sm:$0xff]   ;;  %v6610_v35 = vld [vmem:[%s7206_s18 + $0xf84] ss:$16 sps:$4 sm:$0xff]  }
 0x251   : > { %3827 = vmatprep.subr.bf16.mxu0 %v6519_v36  ;;  %4155 = vmatprep.subr.bf16.mxu1 %v6522_v14  ;;  %v6613_v36 = vld [vmem:[%s7206_s18 + $0xf8c] ss:$16 sps:$4 sm:$0xff]   ;;  %v6608_v14 = vld [vmem:[%s7206_s18 + $0xf80] ss:$16 sps:$4 sm:$0xff]  }
 0x254   : > { %3828 = vmatpush1.bf16.msra.mxu0 %v6517_v39  ;;  %4156 = vmatpush1.bf16.msra.mxu1 %v6520_v40  ;;  %v6611_v39 = vld [vmem:[%s7206_s18 + $0xf88] ss:$16 sps:$4 sm:$0xff]   ;;  %v6616_v40 = vld [vmem:[%s7206_s18 + $0xfa4] ss:$16 sps:$4 sm:$0xff]  }
 0x255   : > { %3829 = vmatprep.subr.bf16.mxu0 %v6525_v22  ;;  %4157 = vmatprep.subr.bf16.mxu1 %v6528_v42  ;;  %v6619_v22 = vld [vmem:[%s7206_s18 + $0xfac] ss:$16 sps:$4 sm:$0xff]   ;;  %v6614_v42 = vld [vmem:[%s7206_s18 + $0xfa0] ss:$16 sps:$4 sm:$0xff]  }
 0x258   : > { %3830 = vmatpush1.bf16.msra.mxu0 %v6523_v43  ;;  %4158 = vmatpush1.bf16.msra.mxu1 %v6526_v28  ;;  %v6617_v43 = vld [vmem:[%s7206_s18 + $0xfa8] ss:$16 sps:$4 sm:$0xff]   ;;  %v6622_v28 = vld [vmem:[%s7206_s18 + $0xfc4] ss:$16 sps:$4 sm:$0xff]  }
 0x259   : > { %3831 = vmatprep.subr.bf16.mxu0 %v6531_v45  ;;  %4159 = vmatprep.subr.bf16.mxu1 %v6534_v46  ;;  %v6625_v45 = vld [vmem:[%s7206_s18 + $0xfcc] ss:$16 sps:$4 sm:$0xff]   ;;  %v6620_v46 = vld [vmem:[%s7206_s18 + $0xfc0] ss:$16 sps:$4 sm:$0xff]  }
 0x25c   : > { %3832 = vmatpush1.bf16.msra.mxu0 %v6529_v47  ;;  %4160 = vmatpush1.bf16.msra.mxu1 %v6532_v37  ;;  %v6623_v47 = vld [vmem:[%s7206_s18 + $0xfc8] ss:$16 sps:$4 sm:$0xff]   ;;  %v6628_v37 = vld [vmem:[%s7206_s18 + $0xfe4] ss:$16 sps:$4 sm:$0xff]  }
 0x25d   : > { %3842 = vmatprep.subr.bf16.mxu0 %v6538_v48  ;;  %4170 = vmatprep.subr.bf16.mxu1 %v6541_v49  ;;  %v6631_v48 = vld [vmem:[%s7206_s18 + $0xfec] ss:$16 sps:$4 sm:$0xff]   ;;  %v6626_v49 = vld [vmem:[%s7206_s18 + $0xfe0] ss:$16 sps:$4 sm:$0xff]  }
 0x25f   : > { %3834 = vmatmul.mubr.bf16.vlgmr.msra.gmra.mrb[0].mxu0 %v7756_v38  ;;  %4162 = vmatmul.mubr.bf16.vlgmr.msra.gmra.mrb[0].mxu1 %v7756_v38 }
 0x260   : > { %3843 = vmatpush1.bf16.msra.mxu0 %v6536_v52  ;;  %4171 = vmatpush1.bf16.msra.mxu1 %v6539_v54  ;;  %v6629_v52 = vld [vmem:[%s7206_s18 + $0xfe8] ss:$16 sps:$4 sm:$0xff]   ;;  %v976_v54 = vcombine.high %v7756_v38, %v7756_v38 }
 0x261   : > { %3844 = vmatprep.subr.bf16.mxu0 %v6544_v55  ;;  %4172 = vmatprep.subr.bf16.mxu1 %v6547_v56  ;;  %v6971_v55 = vmov 1983009808  }
 0x262   : > { %3874 = vmatprep.mubr.bf16.mxu0 %v978_v57  ;;  %4202 = vmatprep.mubr.bf16.mxu1 %v978_v57  ;;  %v4218_v56 = vunpack.c.l.s4 %v6971_v55  ;;  %v4244_v55 = vsub.s32 (!%p5598_p1), 0, %v7267_v44 }
 0x264   : > { %3845 = vmatpush1.bf16.msra.mxu0 %v6542_v50  ;;  %4173 = vmatpush1.bf16.msra.mxu1 %v6545_v41  ;;  %v4219_v57 = vunpack.c.0.s8 %v4218_v56  ;;  %v6698_v56 = vld [vmem:[#allocation8 + $0xb4] ss:$8 sps:$4 sm:$0xff] (!%p5598_p1)  }
 0x265   : > { %3846 = vmatprep.subr.bf16.mxu0 %v6550_v58  ;;  %4174 = vmatprep.subr.bf16.mxu1 %v6553_v59 }
 0x266   : > { %v7827_v58 = vsub.s32 %v4219_v57, %v7267_v44  ;;  %v4248_v57 = vsub.s32 (!%p5598_p1), 1, %v7267_v44 }
 0x268   : > { %3847 = vmatpush1.bf16.msra.mxu0 %v6548_v51  ;;  %4175 = vmatpush1.bf16.msra.mxu1 %v6551_v60 }
 0x269   : > { %3848 = vmatprep.subr.bf16.mxu0 %v6556_v61  ;;  %4176 = vmatprep.subr.bf16.mxu1 %v6559_v62 }
 0x26c   : > { %3849 = vmatpush1.bf16.msra.mxu0 %v6554_v63  ;;  %4177 = vmatpush1.bf16.msra.mxu1 %v6557_v0 }
 0x26d   : > { %3850 = vmatprep.subr.bf16.mxu0 %v6562_v1  ;;  %4178 = vmatprep.subr.bf16.mxu1 %v6565_v2 }
 0x270   : > { %3851 = vmatpush1.bf16.msra.mxu0 %v6560_v3  ;;  %4179 = vmatpush1.bf16.msra.mxu1 %v6563_v4  ;;  %v364_v3 = vld [vmem:[#allocation2] sm:$0xff] }
 0x271   : > { %3852 = vmatprep.subr.bf16.mxu0 %v6568_v5  ;;  %4180 = vmatprep.subr.bf16.mxu1 %v6571_v6  ;;  %v6632_v6 = vld [vmem:[#allocation8 + $0x4] ss:$8 sps:$4 sm:$0xff] (!%p5598_p1)  }
 0x274   : > { %3853 = vmatpush1.bf16.msra.mxu0 %v6566_v7  ;;  %4181 = vmatpush1.bf16.msra.mxu1 %v6569_v8  ;;  %v6634_v7 = vld [vmem:[#allocation8 + $0x104] ss:$8 sps:$4 sm:$0xff] (!%p5598_p1)   ;;  %v6636_v8 = vld [vmem:[#allocation8] ss:$8 sps:$4 sm:$0xff] (!%p5598_p1)  }
 0x275   : > { %3854 = vmatprep.subr.bf16.mxu0 %v6574_v9  ;;  %4182 = vmatprep.subr.bf16.mxu1 %v6577_v10  ;;  %v6637_v9 = vld [vmem:[#allocation8 + $0x100] ss:$8 sps:$4 sm:$0xff] (!%p5598_p1)   ;;  %v6638_v10 = vld [vmem:[#allocation8 + $0x14] ss:$8 sps:$4 sm:$0xff] (!%p5598_p1)  }
 0x278   : > { %3855 = vmatpush1.bf16.msra.mxu0 %v6572_v11  ;;  %4183 = vmatpush1.bf16.msra.mxu1 %v6575_v12  ;;  %v6640_v11 = vld [vmem:[#allocation8 + $0x114] ss:$8 sps:$4 sm:$0xff] (!%p5598_p1)   ;;  %v6642_v12 = vld [vmem:[#allocation8 + $0x10] ss:$8 sps:$4 sm:$0xff] (!%p5598_p1)  }
 0x279   : > { %3856 = vmatprep.subr.bf16.mxu0 %v6580_v13  ;;  %4184 = vmatprep.subr.bf16.mxu1 %v6583_v15  ;;  %v6643_v13 = vld [vmem:[#allocation8 + $0x110] ss:$8 sps:$4 sm:$0xff] (!%p5598_p1)   ;;  %v6644_v15 = vld [vmem:[#allocation8 + $0x24] ss:$8 sps:$4 sm:$0xff] (!%p5598_p1)  }
 0x27c   : > { %3857 = vmatpush1.bf16.msra.mxu0 %v6578_v17  ;;  %4185 = vmatpush1.bf16.msra.mxu1 %v6581_v53  ;;  %v6646_v17 = vld [vmem:[#allocation8 + $0x124] ss:$8 sps:$4 sm:$0xff] (!%p5598_p1)   ;;  %v6648_v53 = vld [vmem:[#allocation8 + $0x20] ss:$8 sps:$4 sm:$0xff] (!%p5598_p1)  }
 0x27d   : > { %3858 = vmatprep.subr.bf16.mxu0 %v6586_v18  ;;  %4186 = vmatprep.subr.bf16.mxu1 %v6589_v19  ;;  %v6649_v18 = vld [vmem:[#allocation8 + $0x120] ss:$8 sps:$4 sm:$0xff] (!%p5598_p1)   ;;  %v6650_v19 = vld [vmem:[#allocation8 + $0x34] ss:$8 sps:$4 sm:$0xff] (!%p5598_p1)  }
 0x280   : > { %3859 = vmatpush1.bf16.msra.mxu0 %v6584_v20  ;;  %4187 = vmatpush1.bf16.msra.mxu1 %v6587_v21  ;;  %v6652_v20 = vld [vmem:[#allocation8 + $0x134] ss:$8 sps:$4 sm:$0xff] (!%p5598_p1)   ;;  %v6654_v21 = vld [vmem:[#allocation8 + $0x30] ss:$8 sps:$4 sm:$0xff] (!%p5598_p1)  }
 0x281   : > { %3860 = vmatprep.subr.bf16.mxu0 %v6592_v23  ;;  %4188 = vmatprep.subr.bf16.mxu1 %v6595_v24  ;;  %v6655_v23 = vld [vmem:[#allocation8 + $0x130] ss:$8 sps:$4 sm:$0xff] (!%p5598_p1)   ;;  %v6656_v24 = vld [vmem:[#allocation8 + $0x44] ss:$8 sps:$4 sm:$0xff] (!%p5598_p1)  }
 0x284   : > { %3861 = vmatpush1.bf16.msra.mxu0 %v6590_v25  ;;  %4189 = vmatpush1.bf16.msra.mxu1 %v6593_v27  ;;  %v6658_v25 = vld [vmem:[#allocation8 + $0x144] ss:$8 sps:$4 sm:$0xff] (!%p5598_p1)   ;;  %v6660_v27 = vld [vmem:[#allocation8 + $0x40] ss:$8 sps:$4 sm:$0xff] (!%p5598_p1)  }
 0x285   : > { %3862 = vmatprep.subr.bf16.mxu0 %v6598_v29  ;;  %4190 = vmatprep.subr.bf16.mxu1 %v6601_v30  ;;  %v6661_v29 = vld [vmem:[#allocation8 + $0x140] ss:$8 sps:$4 sm:$0xff] (!%p5598_p1)   ;;  %v6662_v30 = vld [vmem:[#allocation8 + $0x54] ss:$8 sps:$4 sm:$0xff] (!%p5598_p1)  }
 0x288   : > { %3863 = vmatpush1.bf16.msra.mxu0 %v6596_v31  ;;  %4191 = vmatpush1.bf16.msra.mxu1 %v6599_v16  ;;  %v6664_v31 = vld [vmem:[#allocation8 + $0x154] ss:$8 sps:$4 sm:$0xff] (!%p5598_p1)   ;;  %v6666_v16 = vld [vmem:[#allocation8 + $0x50] ss:$8 sps:$4 sm:$0xff] (!%p5598_p1)  }
 0x289   : > { %3864 = vmatprep.subr.bf16.mxu0 %v6604_v32  ;;  %4192 = vmatprep.subr.bf16.mxu1 %v6607_v33  ;;  %v6667_v32 = vld [vmem:[#allocation8 + $0x150] ss:$8 sps:$4 sm:$0xff] (!%p5598_p1)   ;;  %v6668_v33 = vld [vmem:[#allocation8 + $0x64] ss:$8 sps:$4 sm:$0xff] (!%p5598_p1)  }
 0x28c   : > { %3865 = vmatpush1.bf16.msra.mxu0 %v6602_v34  ;;  %4193 = vmatpush1.bf16.msra.mxu1 %v6605_v26  ;;  %v6670_v34 = vld [vmem:[#allocation8 + $0x164] ss:$8 sps:$4 sm:$0xff] (!%p5598_p1)   ;;  %v6672_v26 = vld [vmem:[#allocation8 + $0x60] ss:$8 sps:$4 sm:$0xff] (!%p5598_p1)  }
 0x28d   : > { %3866 = vmatprep.subr.bf16.mxu0 %v6610_v35  ;;  %4194 = vmatprep.subr.bf16.mxu1 %v6613_v36  ;;  %v6673_v35 = vld [vmem:[#allocation8 + $0x160] ss:$8 sps:$4 sm:$0xff] (!%p5598_p1)   ;;  %v6674_v36 = vld [vmem:[#allocation8 + $0x74] ss:$8 sps:$4 sm:$0xff] (!%p5598_p1)  }
 0x290   : > { %3867 = vmatpush1.bf16.msra.mxu0 %v6608_v14  ;;  %4195 = vmatpush1.bf16.msra.mxu1 %v6611_v39  ;;  %v6676_v14 = vld [vmem:[#allocation8 + $0x174] ss:$8 sps:$4 sm:$0xff] (!%p5598_p1)   ;;  %v6678_v39 = vld [vmem:[#allocation8 + $0x70] ss:$8 sps:$4 sm:$0xff] (!%p5598_p1)  }
 0x291   : > { %3868 = vmatprep.subr.bf16.mxu0 %v6616_v40  ;;  %4196 = vmatprep.subr.bf16.mxu1 %v6619_v22  ;;  %v6679_v40 = vld [vmem:[#allocation8 + $0x170] ss:$8 sps:$4 sm:$0xff] (!%p5598_p1)   ;;  %v6680_v22 = vld [vmem:[#allocation8 + $0x84] ss:$8 sps:$4 sm:$0xff] (!%p5598_p1)  }
 0x294   : > { %3869 = vmatpush1.bf16.msra.mxu0 %v6614_v42  ;;  %4197 = vmatpush1.bf16.msra.mxu1 %v6617_v43  ;;  %v6682_v42 = vld [vmem:[#allocation8 + $0x184] ss:$8 sps:$4 sm:$0xff] (!%p5598_p1)   ;;  %v6684_v43 = vld [vmem:[#allocation8 + $0x80] ss:$8 sps:$4 sm:$0xff] (!%p5598_p1)  }
 0x295   : > { %3870 = vmatprep.subr.bf16.mxu0 %v6622_v28  ;;  %4198 = vmatprep.subr.bf16.mxu1 %v6625_v45  ;;  %v6685_v28 = vld [vmem:[#allocation8 + $0x180] ss:$8 sps:$4 sm:$0xff] (!%p5598_p1)   ;;  %v6686_v45 = vld [vmem:[#allocation8 + $0x94] ss:$8 sps:$4 sm:$0xff] (!%p5598_p1)  }
 0x298   : > { %3871 = vmatpush1.bf16.msra.mxu0 %v6620_v46  ;;  %4199 = vmatpush1.bf16.msra.mxu1 %v6623_v47  ;;  %v6688_v46 = vld [vmem:[#allocation8 + $0x194] ss:$8 sps:$4 sm:$0xff] (!%p5598_p1)   ;;  %v6690_v47 = vld [vmem:[#allocation8 + $0x90] ss:$8 sps:$4 sm:$0xff] (!%p5598_p1)  }
 0x299   : > { %3872 = vmatprep.subr.bf16.mxu0 %v6628_v37  ;;  %4200 = vmatprep.subr.bf16.mxu1 %v6631_v48  ;;  %v6691_v37 = vld [vmem:[#allocation8 + $0x190] ss:$8 sps:$4 sm:$0xff] (!%p5598_p1)   ;;  %v6692_v48 = vld [vmem:[#allocation8 + $0xa4] ss:$8 sps:$4 sm:$0xff] (!%p5598_p1)  }
 0x29c   : > { %3873 = vmatpush1.bf16.msra.mxu0 %v6626_v49  ;;  %4201 = vmatpush1.bf16.msra.mxu1 %v6629_v52  ;;  %v6694_v49 = vld [vmem:[#allocation8 + $0x1a4] ss:$8 sps:$4 sm:$0xff] (!%p5598_p1)   ;;  %v6696_v52 = vld [vmem:[#allocation8 + $0xa0] ss:$8 sps:$4 sm:$0xff] (!%p5598_p1)  }
 0x29d   : > { %4700 = vmatprep.subr.bf16.mxu1 (!%p5598_p1), %v6632_v6  ;;  %4741 = vmatprep.subr.bf16.mxu0 (!%p5598_p1), %v6634_v7  ;;  %v6710_v7 = vld [vmem:[#allocation8 + $0xd4] ss:$8 sps:$4 sm:$0xff] (!%p5598_p1)  }
 0x29f   : > { %3875 = vmatmul.mubr.bf16.vlgmr.msra.gmra.mrb[0].mxu0 %v976_v54  ;;  %4203 = vmatmul.mubr.bf16.vlgmr.msra.gmra.mrb[0].mxu1 %v976_v54  ;;  %v6697_v54 = vld [vmem:[#allocation8 + $0x1a0] ss:$8 sps:$4 sm:$0xff] (!%p5598_p1)  }
 0x2a0   : > { %4701 = vmatpush1.bf16.msra.mxu1 (!%p5598_p1), %v6636_v8  ;;  %4742 = vmatpush1.bf16.msra.mxu0 (!%p5598_p1), %v6637_v9  ;;  %v6712_v9 = vld [vmem:[#allocation8 + $0x1d4] ss:$8 sps:$4 sm:$0xff] (!%p5598_p1)  }
 0x2a1   : > { %4702 = vmatprep.subr.bf16.mxu1 (!%p5598_p1), %v6638_v10  ;;  %4743 = vmatprep.subr.bf16.mxu0 (!%p5598_p1), %v6640_v11  ;;  %v6714_v11 = vld [vmem:[#allocation8 + $0xd0] ss:$8 sps:$4 sm:$0xff] (!%p5598_p1)  }
 0x2a4   : > { %4703 = vmatpush1.bf16.msra.mxu1 (!%p5598_p1), %v6642_v12  ;;  %4744 = vmatpush1.bf16.msra.mxu0 (!%p5598_p1), %v6643_v13  ;;  %v6715_v13 = vld [vmem:[#allocation8 + $0x1d0] ss:$8 sps:$4 sm:$0xff] (!%p5598_p1)  }
 0x2a5   : > { %4704 = vmatprep.subr.bf16.mxu1 (!%p5598_p1), %v6644_v15  ;;  %4745 = vmatprep.subr.bf16.mxu0 (!%p5598_p1), %v6646_v17  ;;  %v6716_v17 = vld [vmem:[#allocation8 + $0xe4] ss:$8 sps:$4 sm:$0xff] (!%p5598_p1)  }
 0x2a8   : > { %4705 = vmatpush1.bf16.msra.mxu1 (!%p5598_p1), %v6648_v53  ;;  %4746 = vmatpush1.bf16.msra.mxu0 (!%p5598_p1), %v6649_v18  ;;  %v6718_v53 = vld [vmem:[#allocation8 + $0x1e4] ss:$8 sps:$4 sm:$0xff] (!%p5598_p1)  }
 0x2a9   : > { %4706 = vmatprep.subr.bf16.mxu1 (!%p5598_p1), %v6650_v19  ;;  %4747 = vmatprep.subr.bf16.mxu0 (!%p5598_p1), %v6652_v20  ;;  %v6720_v19 = vld [vmem:[#allocation8 + $0xe0] ss:$8 sps:$4 sm:$0xff] (!%p5598_p1)  }
 0x2aa   : > { %v6721_v20 = vld [vmem:[#allocation8 + $0x1e0] ss:$8 sps:$4 sm:$0xff] (!%p5598_p1)  }
 0x2ac   : > { %4707 = vmatpush1.bf16.msra.mxu1 (!%p5598_p1), %v6654_v21  ;;  %4748 = vmatpush1.bf16.msra.mxu0 (!%p5598_p1), %v6655_v23  ;;  %v6722_v21 = vld [vmem:[#allocation8 + $0xf4] ss:$8 sps:$4 sm:$0xff] (!%p5598_p1)  }
 0x2ad   : > { %4708 = vmatprep.subr.bf16.mxu1 (!%p5598_p1), %v6656_v24  ;;  %4749 = vmatprep.subr.bf16.mxu0 (!%p5598_p1), %v6658_v25  ;;  %v6724_v23 = vld [vmem:[#allocation8 + $0x1f4] ss:$8 sps:$4 sm:$0xff] (!%p5598_p1)  }
 0x2b0   : > { %4709 = vmatpush1.bf16.msra.mxu1 (!%p5598_p1), %v6660_v27  ;;  %4750 = vmatpush1.bf16.msra.mxu0 (!%p5598_p1), %v6661_v29 }
 0x2b1   : > { %4710 = vmatprep.subr.bf16.mxu1 (!%p5598_p1), %v6662_v30  ;;  %4751 = vmatprep.subr.bf16.mxu0 (!%p5598_p1), %v6664_v31  ;;  %v6726_v31 = vld [vmem:[#allocation8 + $0xf0] ss:$8 sps:$4 sm:$0xff] (!%p5598_p1)  }
 0x2b4   : > { %4711 = vmatpush1.bf16.msra.mxu1 (!%p5598_p1), %v6666_v16  ;;  %4752 = vmatpush1.bf16.msra.mxu0 (!%p5598_p1), %v6667_v32  ;;  %v6727_v16 = vld [vmem:[#allocation8 + $0x1f0] ss:$8 sps:$4 sm:$0xff] (!%p5598_p1)  }
 0x2b5   : > { %4712 = vmatprep.subr.bf16.mxu1 (!%p5598_p1), %v6668_v33  ;;  %4753 = vmatprep.subr.bf16.mxu0 (!%p5598_p1), %v6670_v34  ;;  %v6728_v34 = vld [vmem:[%s7937_s5 + $0x40] sm:$0xff] (!%p5598_p1)  }
 0x2b8   : > { %4713 = vmatpush1.bf16.msra.mxu1 (!%p5598_p1), %v6672_v26  ;;  %4754 = vmatpush1.bf16.msra.mxu0 (!%p5598_p1), %v6673_v35 }
 0x2b9   : > { %4714 = vmatprep.subr.bf16.mxu1 (!%p5598_p1), %v6674_v36  ;;  %4755 = vmatprep.subr.bf16.mxu0 (!%p5598_p1), %v6676_v14  ;;  %v6730_v14 = vld [vmem:[%s7937_s5 + $0x48] sm:$0xff] (!%p5598_p1)  }
 0x2bc   : > { %4715 = vmatpush1.bf16.msra.mxu1 (!%p5598_p1), %v6678_v39  ;;  %4756 = vmatpush1.bf16.msra.mxu0 (!%p5598_p1), %v6679_v40  ;;  %v6731_v39 = vld [vmem:[%s7937_s5 + $0x8] sm:$0xff] (!%p5598_p1)   ;;  %v6732_v40 = vld [vmem:[%s7937_s5 + $0x50] sm:$0xff] (!%p5598_p1)  }
 0x2bd   : > { %4716 = vmatprep.subr.bf16.mxu1 (!%p5598_p1), %v6680_v22  ;;  %4757 = vmatprep.subr.bf16.mxu0 (!%p5598_p1), %v6682_v42  ;;  %v6733_v22 = vld [vmem:[%s7937_s5 + $0x10] sm:$0xff] (!%p5598_p1)   ;;  %v6734_v42 = vld [vmem:[%s7937_s5 + $0x58] sm:$0xff] (!%p5598_p1)  }
 0x2c0   : > { %4717 = vmatpush1.bf16.msra.mxu1 (!%p5598_p1), %v6684_v43  ;;  %4758 = vmatpush1.bf16.msra.mxu0 (!%p5598_p1), %v6685_v28  ;;  %v6735_v43 = vld [vmem:[%s7937_s5 + $0x18] sm:$0xff] (!%p5598_p1)   ;;  %v6736_v28 = vld [vmem:[%s7937_s5 + $0x60] sm:$0xff] (!%p5598_p1)  }
 0x2c1   : > { %4718 = vmatprep.subr.bf16.mxu1 (!%p5598_p1), %v6686_v45  ;;  %4759 = vmatprep.subr.bf16.mxu0 (!%p5598_p1), %v6688_v46  ;;  %v6737_v45 = vld [vmem:[%s7937_s5 + $0x20] sm:$0xff] (!%p5598_p1)   ;;  %v6738_v46 = vld [vmem:[%s7937_s5 + $0x68] sm:$0xff] (!%p5598_p1)  }
 0x2c4   : > { %4719 = vmatpush1.bf16.msra.mxu1 (!%p5598_p1), %v6690_v47  ;;  %4760 = vmatpush1.bf16.msra.mxu0 (!%p5598_p1), %v6691_v37  ;;  %v6739_v47 = vld [vmem:[%s7937_s5 + $0x28] sm:$0xff] (!%p5598_p1)   ;;  %v6740_v37 = vld [vmem:[%s7937_s5 + $0x70] sm:$0xff] (!%p5598_p1)  }
 0x2c5   : > { %4720 = vmatprep.subr.bf16.mxu1 (!%p5598_p1), %v6692_v48  ;;  %4761 = vmatprep.subr.bf16.mxu0 (!%p5598_p1), %v6694_v49  ;;  %v6741_v48 = vld [vmem:[%s7937_s5 + $0x30] sm:$0xff] (!%p5598_p1)   ;;  %v6742_v49 = vld [vmem:[%s7937_s5 + $0x78] sm:$0xff] (!%p5598_p1)  }
 0x2c8   : > { %4721 = vmatpush1.bf16.msra.mxu1 (!%p5598_p1), %v6696_v52  ;;  %4762 = vmatpush1.bf16.msra.mxu0 (!%p5598_p1), %v6697_v54  ;;  %v6743_v52 = vld [vmem:[%s7937_s5 + $0x38] sm:$0xff] (!%p5598_p1)   ;;  %v4368_v54 = vld [vmem:[#allocation9] sm:$0x3] (!%p5598_p1) }
 0x2c9   : > { %4722 = vmatprep.subr.bf16.mxu1 (!%p5598_p1), %v6698_v56  ;;  %v4373_v56 = vrot.slane (!%p5598_p1), %v4368_v54, %v4244_v55 }
 0x372   : > { %v3876_v50 = vpop.f32.mrb[0].mxu0  ;;  %v4204_v41 = vpop.f32.mrb[0].mxu1 }
 0x373   : > { %v3878_v59 = vpop.f32.mrb[1].mxu0  ;;  %v4206_v51 = vpop.f32.mrb[1].mxu1 }
 0x374   : > { %v4215_v60 = vcombine.low %v3876_v50, %v3878_v59  ;;  %v4216_v61 = vcombine.low %v4204_v41, %v4206_v51  ;;  %v3880_v62 = vpop.f32.mrb[2].mxu0  ;;  %v4208_v63 = vpop.f32.mrb[2].mxu1  ;;  %v4252_v50 = vsub.s32 (!%p5598_p1), 2, %v7267_v44  ;;  %v6700_v41 = vld [vmem:[#allocation8 + $0x1b4] ss:$8 sps:$4 sm:$0xff] (!%p5598_p1)   ;;  %v4256_v59 = vsub.s32 (!%p5598_p1), 3, %v7267_v44 }
 0x375   : > { %v3881_v0 = vpop.f32.mrb[3].mxu0  ;;  %v4209_v38 = vpop.f32.mrb[3].mxu1  ;;  %v6702_v51 = vld [vmem:[#allocation8 + $0xb0] ss:$8 sps:$4 sm:$0xff] (!%p5598_p1)   ;;  %v6704_v62 = vld [vmem:[#allocation8 + $0xc4] ss:$8 sps:$4 sm:$0xff] (!%p5598_p1)   ;;  %4763 = vmatprep.subr.bf16.mxu0 (!%p5598_p1), %v6700_v41 }
 0x376   : > { %v4223_v1 = vrot.slane %v4215_v60, %v7827_v58  ;;  %v4230_v2 = vrot.slane %v4216_v61, %v7827_v58  ;;  %4238 = sbr.rel (%p5598_p1) target bundleno = 1351 (0x547), region = 76  ;;  %v6703_v60 = vld [vmem:[#allocation8 + $0x1b0] ss:$8 sps:$4 sm:$0xff] (!%p5598_p1)   ;;  %v4240_v61 = vld [vmem:[#allocation6] sm:$0xf] (!%p5598_p1)  ;;  %4723 = vmatpush1.bf16.msra.mxu1 (!%p5598_p1), %v6702_v51 }
 0x377   : > { %v4245_v63 = vrot.slane (!%p5598_p1), %v4240_v61, %v4244_v55  ;;  %v4249_v0 = vrot.slane (!%p5598_p1), %v4240_v61, %v4248_v57  ;;  %v4253_v38 = vrot.slane (!%p5598_p1), %v4240_v61, %v4252_v50  ;;  %4764 = vmatpush1.bf16.msra.mxu0 (!%p5598_p1), %v6703_v60  ;;  %4724 = vmatprep.subr.bf16.mxu1 (!%p5598_p1), %v6704_v62  ;;  %v5663_v55 = vld [vmem:[#allocation11] ss:$0 sm:$0xff] (!%p5598_p1) }
 0x378   : > { %v4231_v4 = vcombine.low %v4223_v1, %v4230_v2  ;;  %v6706_v1 = vld [vmem:[#allocation8 + $0x1c4] ss:$8 sps:$4 sm:$0xff] (!%p5598_p1)   ;;  %v4257_v2 = vrot.slane (!%p5598_p1), %v4240_v61, %v4256_v59  ;;  %v4377_v50 = vrot.slane (!%p5598_p1), %v4368_v54, %v4248_v57 }
 0x379   : > { %4765 = vmatprep.subr.bf16.mxu0 (!%p5598_p1), %v6706_v1 }
 0x37a   : > { %v4233_v5 = vadd.f32 %v4231_v4, %v364_v3  ;;  %v6708_v3 = vld [vmem:[#allocation8 + $0xc0] ss:$8 sps:$4 sm:$0xff] (!%p5598_p1)   ;;  %v4258_v4 = vcombine.low (!%p5598_p1), %v4245_v63, %v4249_v0  ;;  %v4259_v6 = vcombine.low (!%p5598_p1), %v4253_v38, %v4257_v2 }
 0x37b   : > { %4725 = vmatpush1.bf16.msra.mxu1 (!%p5598_p1), %v6708_v3 }
 0x37c   : > { %4234 = vst [vmem:[#allocation2] sm:$0xff] %v4233_v5  ;;  %v6709_v5 = vld [vmem:[#allocation8 + $0x1c0] ss:$8 sps:$4 sm:$0xff] (!%p5598_p1)   ;;  %v4266_v8 = vrot.slane (!%p5598_p1), %v4258_v4, %v7827_v58  ;;  %v4273_v10 = vrot.slane (!%p5598_p1), %v4259_v6, %v7827_v58  ;;  %4726 = vmatprep.subr.bf16.mxu1 (!%p5598_p1), %v6710_v7 }
 0x37d   : > { %4766 = vmatpush1.bf16.msra.mxu0 %v6709_v5 }
 0x37e   : > { %v4274_v15 = vcombine.low %v4266_v8, %v4273_v10  ;;  %4767 = vmatprep.subr.bf16.mxu0 %v6712_v9 }
 0x37f   : > { %4727 = vmatpush1.bf16.msra.mxu1 %v6714_v11 }
 0x380   : > { %4728 = vmatprep.subr.bf16.mxu1 %v6716_v17 }
 0x381   : > { %4768 = vmatpush1.bf16.msra.mxu0 %v6715_v13 }
 0x382   : > { %4769 = vmatprep.subr.bf16.mxu0 %v6718_v53 }
 0x383   : > { %v4239_v12 = vld [vmem:[#allocation2] sm:$0xff]  ;;  %4729 = vmatpush1.bf16.msra.mxu1 %v6720_v19 }
 0x384   : > { %v4276_v18 = vadd.f32 %v4274_v15, %v4239_v12  ;;  %4730 = vmatprep.subr.bf16.mxu1 %v6722_v21 }
 0x385   : > { %4770 = vmatpush1.bf16.msra.mxu0 %v6721_v20 }
 0x386   : > { %v4277_v24 = vmax.f32 %v4276_v18, 0.0  ;;  %4771 = vmatprep.subr.bf16.mxu0 %v6724_v23 }
 0x387   : > { %4731 = vmatpush1.bf16.msra.mxu1 %v6726_v31 }
 0x388   : > { %v4286_v25 = vrot.slane %v4277_v24, %v7827_v58  ;;  %v4279_v27 = vcombine.high %v4277_v24, %v4277_v24  ;;  %5686 = vmatprep.subr.bf16.mxu1 %v6728_v34 }
 0x389   : > { %4772 = vmatpush1.bf16.msra.mxu0 %v6727_v16 }
 0x38a   : > { %v4294_v29 = vcombine.high %v4286_v25, %v4286_v25  ;;  %v4293_v30 = vrot.slane %v4279_v27, %v7827_v58  ;;  %v4300_v35 = vpack.c.bf16 %v4286_v25, %v4286_v25  ;;  %v6729_v58 = vld [vmem:[%s7937_s5] sm:$0xff]  }
 0x38c   : > { %v4301_v32 = vpack.c.bf16 %v4294_v29, %v4294_v29  ;;  %v4295_v33 = vcombine.high %v4293_v30, %v4293_v30  ;;  %v4302_v36 = vpack.c.bf16 %v4293_v30, %v4293_v30 }
 0x38e   : > { %4732 = vmatprep.mubr.bf16.mxu1 %v4301_v32  ;;  %v4303_v26 = vpack.c.bf16 %v4295_v33, %v4295_v33 }
 0x38f   : > { %4733 = vmatmul.mubr.bf16.vlgmr.msra.gmra.mrb[0].mxu1 %v4300_v35 }
 0x390   : > { %4773 = vmatprep.mubr.bf16.mxu0 %v4303_v26  ;;  %5687 = vmatpush3.bf16.msra.mxu1 %v6729_v58 }
 0x391   : > { %4774 = vmatmul.mubr.bf16.vlgmr.msra.gmra.mrb[0].mxu0 %v4302_v36  ;;  %5688 = vmatprep.subr.bf16.mxu1 %v6730_v14 }
 0x394   : > { %5689 = vmatpush3.bf16.msra.mxu1 %v6731_v39 }
 0x395   : > { %5690 = vmatprep.subr.bf16.mxu1 %v6732_v40 }
 0x398   : > { %5691 = vmatpush3.bf16.msra.mxu1 %v6733_v22 }
 0x399   : > { %5692 = vmatprep.subr.bf16.mxu1 %v6734_v42 }
 0x39c   : > { %5693 = vmatpush3.bf16.msra.mxu1 %v6735_v43 }
 0x39d   : > { %5694 = vmatprep.subr.bf16.mxu1 %v6736_v28 }
 0x3a0   : > { %5695 = vmatpush3.bf16.msra.mxu1 %v6737_v45 }
 0x3a1   : > { %5696 = vmatprep.subr.bf16.mxu1 %v6738_v46 }
 0x3a4   : > { %5697 = vmatpush3.bf16.msra.mxu1 %v6739_v47 }
 0x3a5   : > { %5698 = vmatprep.subr.bf16.mxu1 %v6740_v37 }
 0x3a8   : > { %5699 = vmatpush3.bf16.msra.mxu1 %v6741_v48 }
 0x3a9   : > { %5700 = vmatprep.subr.bf16.mxu1 %v6742_v49 }
 0x3ac   : > { %5701 = vmatpush3.bf16.msra.mxu1 %v6743_v52 }
 0x462   : > { %v4734_v41 = vpop.f32.mrb[0].mxu1 }
 0x463   : > { %v4735_v51 = vadd.f32 %v4734_v41, %v4373_v56  ;;  %v4736_v60 = vpop.f32.mrb[1].mxu1 }
 0x464   : > { %v4775_v59 = vpop.f32.mrb[0].mxu0  ;;  %v4737_v62 = vadd.f32 %v4736_v60, %v4377_v50  ;;  %v4738_v63 = vpop.f32.mrb[2].mxu1 }
 0x465   : > { %v4777_v61 = vpop.f32.mrb[1].mxu0  ;;  %v4776_v38 = vadd.f32 %v4775_v59, %v4735_v51  ;;  %v4739_v1 = vpop.f32.mrb[3].mxu1 }
 0x466   : > { %v4779_v0 = vpop.f32.mrb[2].mxu0  ;;  %v4778_v3 = vadd.f32 %v4777_v61, %v4737_v62 }
 0x467   : > { %v4780_v2 = vpop.f32.mrb[3].mxu0  ;;  %v4782_v4 = vmax.f32 %v4776_v38, 0.0 }
 0x468   : > { %v4783_v5 = vmax.f32 %v4778_v3, 0.0 }
 0x469   : > { %v4784_v7 = vpack.c.bf16 %v4782_v4, %v4782_v4 }
 0x46a   : > { %v4785_v6 = vpack.c.bf16 %v4783_v5, %v4783_v5 }
 0x46c   : > { %4953 = vmatprep.mubr.bf16.mxu1 %v4785_v6 }
 0x46d   : > { %4954 = vmatmul.mubr.bf16.vlgmr.msra.gmra.mrb[4].mxu1 %v4784_v7 }
 0x540   : > { %v5702_v44 = vpop.f32.mrb[4].mxu1 }
 0x541   : > { %v5703_v57 = vpop.f32.mrb[5].mxu1 }
 0x542   : > { %v5704_v8 = vadd.f32 %v5703_v57, %v5702_v44  ;;  %v5705_v9 = vpop.f32.mrb[6].mxu1 }
 0x543   : > { %v5706_v10 = vpop.f32.mrb[7].mxu1 }
 0x544   : > { %v4956_v11 = vadd.f32 %v5704_v8, %v5663_v55 }
 0x546   : > { %4962 = vst.msk [vmem:[#allocation12] sm:$0x3] %vm4961_vm0, %v4956_v11 }
 0x547 PF: > { %p5816_p4 = scmp.eq.s32.totalorder %s7032_s28, 3  ;;  %s6972_s30 = smov [#allocation12]  }
 0x548   : > { %s4970_s13 = sshll.u32 %s6972_s30, 4  ;;  %s4971_s13 = int_to_ptr.vmem [resolvable:$true] %s4970_s13 }
 0x549   : > { %s6886_s15 = scalar_lea.vmem %s4971_s13, 32  ;;  %p6893_p2 = scmp.lt.s32.totalorder %s4971_s13, %s4971_s13 }
 0x54a   : > { %p6887_p5 = scmp.ne.s32.totalorder %s4971_s13, %s6886_s15  ;;  %p6894_p6 = scmp.lt.s32.totalorder %s6886_s15, %s6886_s15 }
 0x54c   : > { %p6888_p12 = pnand %p6887_p5, %p5816_p4  ;;  %p6895_p13 = por %p6894_p6, %p6893_p2 }
 0x54e   : > { %p6889_p0 = pneg %p6888_p12 }
 0x550   : > { %p6896_p3 = pnand %p6895_p13, %p6889_p0 }
 0x552   : > { %6899 = shalt.err (!%p6896_p3)
}
 0x553   : > { %s6900_s27 = scalar_lea.hbm %s7939_s7, 32 }
 0x554   : > { %p6901_p8 = scmp.ne.s32.totalorder %s7939_s7, %s6900_s27  ;;  %p6906_p9 = scmp.lt.u32.totalorder %s6900_s27, %s7939_s7 }
 0x556   : > { %p6902_p7 = pnand %p6901_p8, %p5816_p4 }
 0x558   : > { %p6903_p10 = pneg %p6902_p7 }
 0x55a   : > { %p6908_p11 = pnand %p6906_p9, %p6903_p10 }
 0x55c   : > { %6911 = shalt.err (!%p6908_p11)
}
 0x55d   : > { %5787 = dma.vmem_to_hbm [thread:$0]  (%p5816_p4), %s4971_s13, 32, %s7939_s7, [#allocation5]  }
 0x55e   : > { %6941 = dma.done.wait (%p5816_p4), [#allocation5], 32  }
 0x55f   : > { %6943 = vsyncadd (%p5816_p4), [#allocation5], 4294967264 }
 0x560 PF: > { %p20_p1 = scmp.ge.s32.totalorder %s7150_s20, 6   ;;  %s7955_s24 = smov %s6950_s25 }
 0x561   : > { %s7956_s25 = smov %s6954_s26  ;;  %s7957_s26 = smov %s7161_s21 }
 0x562   : > { %s7958_s27 = smov %s7150_s20  ;;  %22 = sbr.rel (!%p20_p1) target bundleno = 6 (0x6), region = 112 }
 0x569   :  { %4983 = vsyncpa [#allocation4], 1 }
 0x56a   :  { %4985 = vsyncpa [#allocation4 + $0x1], 1 }
 0x56b   :  { %4986 = vsyncpa [#allocation7], 1 }
 0x56c   :  { %4987 = vsyncpa [#allocation10], 1 }
 0x56d   :  { %4988 = vsyncpa [#allocation5], 1 }
 0x56e   :  { %4990 = vsyncpa [#allocation5 + $0x1], 1 }

</bundles_post_ra>
